<compile_context>
chip_gen: v5e
topology: v5e:2x2
jax: 0.10.0
libtpu: 0.0.40
codegen_flags: <defaults>
</compile_context>

<pallas_src>
import math
from functools import partial

import jax
import jax.numpy as jnp
from jax import lax
from jax.experimental import pallas as pl
from jax.experimental.pallas import tpu as pltpu

NUM_HEADS = 4
LN_EPS = 1e-5  # torch nn.LayerNorm default


def _layernorm(x, gamma, beta):
    # x: (N, C) f32, gamma/beta: (1, C) f32 ; biased variance (matches torch).
    mean = jnp.mean(x, axis=-1, keepdims=True)
    centered = x - mean
    var = jnp.mean(centered * centered, axis=-1, keepdims=True)
    return centered * lax.rsqrt(var + LN_EPS) * gamma + beta


def _mm(a, b):
    # MXU matmul with bf16 operands, f32 accumulation.
    return jnp.dot(a.astype(jnp.bfloat16), b.astype(jnp.bfloat16),
                   preferred_element_type=jnp.float32)


def _mm_nt(a, b):
    # a @ b.T (contract last dims), bf16 operands, f32 accumulation.
    return lax.dot_general(a.astype(jnp.bfloat16), b.astype(jnp.bfloat16),
                           (((1,), (1,)), ((), ())),
                           preferred_element_type=jnp.float32)


def self_attention_kernel(x_ref, w_ref, vec_ref, out_ref, *, channels, batch, seq):
    C, B, S = channels, batch, seq
    H = NUM_HEADS
    d = C // H
    inv_sqrt2 = 1.0 / math.sqrt(2.0)

    w = w_ref[...]      # (C, 6C) bf16: [Wq*scale | Wk | Wv | Wo | W1 | W2]
    vec = vec_ref[...]  # (10, C) f32

    # Parameter slices / implicit broadcasts happen exactly once per call.
    ln_g, ln_b = vec[0:1], vec[1:2]
    bq, bk, bv = vec[2:3], vec[3:4], vec[4:5]   # bq already pre-scaled
    bo = vec[5:6]
    ln2_g, ln2_b = vec[6:7], vec[7:8]
    b1, b2 = vec[8:9], vec[9:10]

    w_qkv = w[:, 0:3 * C]        # fused in-projection weight (C, 3C)
    w_o = w[:, 3 * C:4 * C]      # (C, C)
    w_1 = w[:, 4 * C:5 * C]      # (C, C)
    w_2 = w[:, 5 * C:6 * C]      # (C, C)

    # ---- token-parallel stages on the flattened (B*S, C) slab ----
    x = x_ref[...]                               # (N, C) f32, N = B*S

    x_ln = _layernorm(x, ln_g, ln_b)             # self.ln(x)

    qkv = _mm(x_ln, w_qkv)                       # (N, 3C) f32, single MXU push
    q = qkv[:, 0:C] + bq                         # 1/sqrt(d) folded into Wq/bq
    k = qkv[:, C:2 * C] + bk
    v = qkv[:, 2 * C:3 * C] + bv

    # ---- per-(batch, head) attention: scores / softmax / ctx only ----
    ctx_rows = []
    for b in range(B):
        rows = slice(b * S, (b + 1) * S)
        qb, kb, vb = q[rows], k[rows], v[rows]   # (S, C) static slices
        head_ctx = []
        for h in range(H):
            cols = slice(h * d, (h + 1) * d)
            qh, kh, vh = qb[:, cols], kb[:, cols], vb[:, cols]
            scores = _mm_nt(qh, kh)              # (S, S) f32
            scores = scores - jnp.max(scores, axis=-1, keepdims=True)
            p = jnp.exp(scores)
            inv_denom = pl.reciprocal(jnp.sum(p, axis=-1, keepdims=True),
                                      approx=True)
            p = p * inv_denom
            head_ctx.append(_mm(p, vh))          # (S, d) f32
        ctx_rows.append(jnp.concatenate(head_ctx, axis=1))  # lane-concat -> (S, C)
    ctx_all = jnp.concatenate(ctx_rows, axis=0)  # sublane-stack -> (N, C)

    # ---- consolidated out-projection + remaining token-parallel stages ----
    attn = _mm(ctx_all, w_o) + bo                # single K=32 matmul

    res1 = attn + x                              # residual 1

    h1 = _layernorm(res1, ln2_g, ln2_b)          # ff_self: LN
    h1 = _mm(h1, w_1) + b1                       # Linear
    h1 = 0.5 * h1 * (1.0 + lax.erf(h1 * inv_sqrt2))  # exact GELU
    h2 = _mm(h1, w_2) + b2                       # Linear

    out_ref[...] = (h2 + res1).astype(out_ref.dtype)  # residual 2


def make_params(channels, key):
    """Deterministic synthetic parameters with PyTorch-equivalent shapes.

    Linear weights are stored pre-transposed as (in, out) so the kernel does x @ W.
    """
    C = channels
    ks = jax.random.split(key, 8)
    n = lambda k, shp: 0.1 * jax.random.normal(k, shp, dtype=jnp.float32)
    return dict(
        ln_g=jnp.ones((C,), jnp.float32), ln_b=jnp.zeros((C,), jnp.float32),
        wq=n(ks[0], (C, C)), wk=n(ks[1], (C, C)), wv=n(ks[2], (C, C)),
        bq=n(ks[3], (C,)), bk=n(ks[4], (C,)), bv=n(ks[5], (C,)),
        wo=n(ks[6], (C, C)), bo=jnp.zeros((C,), jnp.float32),
        ln2_g=jnp.ones((C,), jnp.float32), ln2_b=jnp.zeros((C,), jnp.float32),
        w1=n(ks[7], (C, C)), b1=jnp.zeros((C,), jnp.float32),
        w2=n(jax.random.fold_in(key, 99), (C, C)), b2=jnp.zeros((C,), jnp.float32),
    )


def pack_params(params):
    """Pack 16 tensors into one bf16 weight slab and one f32 vector slab.

    The 1/sqrt(head_dim) query scale is folded into Wq (bf16) and bq (f32) here
    so the kernel never multiplies q at runtime.  Rounding of (Wq*scale) to
    bf16 differs negligibly from scaling after the matmul (well under the
    existing bf16-operand error).
    """
    C = params["wq"].shape[0]
    scale = 1.0 / math.sqrt(C // NUM_HEADS)
    w_slab = jnp.concatenate(
        [params["wq"] * scale, params["wk"], params["wv"],
         params["wo"], params["w1"], params["w2"]],
        axis=1).astype(jnp.bfloat16)                       # (C, 6C)
    v_slab = jnp.stack(
        [params["ln_g"], params["ln_b"],
         params["bq"] * scale, params["bk"], params["bv"], params["bo"],
         params["ln2_g"], params["ln2_b"], params["b1"], params["b2"]],
        axis=0).astype(jnp.float32)                        # (10, C)
    return w_slab, v_slab


def self_attention(x_nchw, params):
    B, C, Hs, Ws = x_nchw.shape
    assert Hs == Ws, "module assumes square spatial size"
    assert C % NUM_HEADS == 0
    S = Hs * Ws
    N = B * S

    # NCHW -> (B, S, C) tokens -> flattened (B*S, C) slab.
    x_tok = jnp.transpose(x_nchw.reshape(B, C, S), (0, 2, 1))
    x_flat = x_tok.reshape(N, C).astype(jnp.float32)
    w_slab, v_slab = pack_params(params)

    kernel = partial(self_attention_kernel, channels=C, batch=B, seq=S)

    # Single grid step: at these shapes the kernel is latency/issue bound and
    # per-step pipeline overhead dominates; v5e/v6e have one TensorCore anyway.
    # (A 2-step "parallel" split for v7x's 2 TCs only pays off for much larger
    # per-step work.)
    out_flat = pl.pallas_call(
        kernel,
        out_shape=jax.ShapeDtypeStruct((N, C), jnp.float32),
        grid_spec=pltpu.PrefetchScalarGridSpec(
            num_scalar_prefetch=0,
            grid=(1,),
            in_specs=[
                pl.BlockSpec((N, C), lambda i: (0, 0)),        # token slab
                pl.BlockSpec((C, 6 * C), lambda i: (0, 0)),    # weight slab
                pl.BlockSpec((10, C), lambda i: (0, 0)),       # vector slab
            ],
            out_specs=pl.BlockSpec((N, C), lambda i: (0, 0)),
        ),
        compiler_params=pltpu.CompilerParams(
            dimension_semantics=("arbitrary",),
        ),
    )(x_flat, w_slab, v_slab)

    # (B*S, C) -> (B, S, C) -> NCHW: swapaxes(2, 1).view(-1, C, size, size)
    out_tok = out_flat.reshape(B, S, C)
    return jnp.transpose(out_tok, (0, 2, 1)).reshape(B, C, Hs, Ws)


if __name__ == "__main__":
    # channels must be divisible by num_heads=4
    B, C, SIZE = 2, 32, 8
    key = jax.random.PRNGKey(0)
    kx, kp = jax.random.split(key)
    x = jax.random.normal(kx, (B, C, SIZE, SIZE), dtype=jnp.float32)
    params = make_params(C, kp)

    out = self_attention(x, params)
    jax.block_until_ready(out)
    assert out.shape == (B, C, SIZE, SIZE)
    print("KERNEL_OK")
</pallas_src>

<mosaic_0001>
module attributes {stable_mosaic.version = 11 : i64} {
  func.func @self_attention_kernel(%arg0: i32, %arg1: memref<128x32xf32, #tpu.memory_space<vmem>>, %arg2: memref<32x192xbf16, #tpu.memory_space<vmem>>, %arg3: memref<10x32xf32, #tpu.memory_space<vmem>>, %arg4: memref<128x32xf32, #tpu.memory_space<vmem>>) attributes {dimension_semantics = [#tpu.dimension_semantics<arbitrary>], iteration_bounds = array<i64: 1>, scalar_prefetch = 0 : i64, scratch_operands = 0 : i64, tpu.core_type = #tpu.core_type<tc>, window_params = [{pipeline_mode = #tpu.pipeline_mode<synchronous>, transform_indices = @transform_0, window_bounds = array<i64: 128, 32>}, {pipeline_mode = #tpu.pipeline_mode<synchronous>, transform_indices = @transform_1, window_bounds = array<i64: 32, 192>}, {pipeline_mode = #tpu.pipeline_mode<synchronous>, transform_indices = @transform_2, window_bounds = array<i64: 10, 32>}, {pipeline_mode = #tpu.pipeline_mode<synchronous>, transform_indices = @transform_3, window_bounds = array<i64: 128, 32>}]} {
    %c0 = arith.constant 0 : index
    %c0_0 = arith.constant 0 : index
    %0 = vector.load %arg2[%c0, %c0_0] : memref<32x192xbf16, #tpu.memory_space<vmem>>, vector<32x192xbf16>
    %c0_1 = arith.constant 0 : index
    %c0_2 = arith.constant 0 : index
    %1 = vector.load %arg3[%c0_1, %c0_2] : memref<10x32xf32, #tpu.memory_space<vmem>>, vector<10x32xf32>
    %2 = vector.extract_strided_slice %1 {offsets = [0, 0], sizes = [1, 32], strides = [1, 1]} : vector<10x32xf32> to vector<1x32xf32>
    %3 = vector.extract_strided_slice %1 {offsets = [1, 0], sizes = [1, 32], strides = [1, 1]} : vector<10x32xf32> to vector<1x32xf32>
    %4 = vector.extract_strided_slice %1 {offsets = [2, 0], sizes = [1, 32], strides = [1, 1]} : vector<10x32xf32> to vector<1x32xf32>
    %5 = vector.extract_strided_slice %1 {offsets = [3, 0], sizes = [1, 32], strides = [1, 1]} : vector<10x32xf32> to vector<1x32xf32>
    %6 = vector.extract_strided_slice %1 {offsets = [4, 0], sizes = [1, 32], strides = [1, 1]} : vector<10x32xf32> to vector<1x32xf32>
    %7 = vector.extract_strided_slice %1 {offsets = [5, 0], sizes = [1, 32], strides = [1, 1]} : vector<10x32xf32> to vector<1x32xf32>
    %8 = vector.extract_strided_slice %1 {offsets = [6, 0], sizes = [1, 32], strides = [1, 1]} : vector<10x32xf32> to vector<1x32xf32>
    %9 = vector.extract_strided_slice %1 {offsets = [7, 0], sizes = [1, 32], strides = [1, 1]} : vector<10x32xf32> to vector<1x32xf32>
    %10 = vector.extract_strided_slice %1 {offsets = [8, 0], sizes = [1, 32], strides = [1, 1]} : vector<10x32xf32> to vector<1x32xf32>
    %11 = vector.extract_strided_slice %1 {offsets = [9, 0], sizes = [1, 32], strides = [1, 1]} : vector<10x32xf32> to vector<1x32xf32>
    %12 = vector.extract_strided_slice %0 {offsets = [0, 0], sizes = [32, 96], strides = [1, 1]} : vector<32x192xbf16> to vector<32x96xbf16>
    %13 = vector.extract_strided_slice %0 {offsets = [0, 96], sizes = [32, 32], strides = [1, 1]} : vector<32x192xbf16> to vector<32x32xbf16>
    %14 = vector.extract_strided_slice %0 {offsets = [0, 128], sizes = [32, 32], strides = [1, 1]} : vector<32x192xbf16> to vector<32x32xbf16>
    %15 = vector.extract_strided_slice %0 {offsets = [0, 160], sizes = [32, 32], strides = [1, 1]} : vector<32x192xbf16> to vector<32x32xbf16>
    %c0_3 = arith.constant 0 : index
    %c0_4 = arith.constant 0 : index
    %16 = vector.load %arg1[%c0_3, %c0_4] : memref<128x32xf32, #tpu.memory_space<vmem>>, vector<128x32xf32>
    %cst = arith.constant dense<0.000000e+00> : vector<128xf32>
    %17 = vector.multi_reduction <add>, %16, %cst [1] : vector<128x32xf32> to vector<128xf32>
    %18 = vector.shape_cast %17 : vector<128xf32> to vector<128x1xf32>
    %cst_5 = arith.constant 3.200000e+01 : f32
    %19 = vector.broadcast %cst_5 : f32 to vector<128x1xf32>
    %20 = arith.divf %18, %19 : vector<128x1xf32>
    %21 = vector.broadcast %20 : vector<128x1xf32> to vector<128x32xf32>
    %22 = arith.subf %16, %21 : vector<128x32xf32>
    %23 = arith.mulf %22, %22 : vector<128x32xf32>
    %cst_6 = arith.constant dense<0.000000e+00> : vector<128xf32>
    %24 = vector.multi_reduction <add>, %23, %cst_6 [1] : vector<128x32xf32> to vector<128xf32>
    %25 = vector.shape_cast %24 : vector<128xf32> to vector<128x1xf32>
    %cst_7 = arith.constant 3.200000e+01 : f32
    %26 = vector.broadcast %cst_7 : f32 to vector<128x1xf32>
    %27 = arith.divf %25, %26 : vector<128x1xf32>
    %cst_8 = arith.constant 9.99999974E-6 : f32
    %28 = vector.broadcast %cst_8 : f32 to vector<128x1xf32>
    %29 = arith.addf %27, %28 : vector<128x1xf32>
    %30 = math.rsqrt %29 : vector<128x1xf32>
    %31 = vector.broadcast %30 : vector<128x1xf32> to vector<128x32xf32>
    %32 = arith.mulf %22, %31 : vector<128x32xf32>
    %33 = vector.broadcast %2 : vector<1x32xf32> to vector<128x32xf32>
    %34 = arith.mulf %32, %33 : vector<128x32xf32>
    %35 = vector.broadcast %3 : vector<1x32xf32> to vector<128x32xf32>
    %36 = arith.addf %34, %35 : vector<128x32xf32>
    %37 = arith.truncf %36 : vector<128x32xf32> to vector<128x32xbf16>
    %cst_9 = arith.constant dense<0.000000e+00> : vector<128x96xf32>
    %38 = tpu.matmul %37, %12, %cst_9 {dimension_numbers = #tpu.dot_dimension_numbers<[1], [0], [0], [1], [0, 0, 1, 1], [], []>} : vector<128x32xbf16>, vector<32x96xbf16>, vector<128x96xf32> -> vector<128x96xf32>
    %39 = vector.extract_strided_slice %38 {offsets = [0, 0], sizes = [128, 32], strides = [1, 1]} : vector<128x96xf32> to vector<128x32xf32>
    %40 = vector.broadcast %4 : vector<1x32xf32> to vector<128x32xf32>
    %41 = arith.addf %39, %40 : vector<128x32xf32>
    %42 = vector.extract_strided_slice %38 {offsets = [0, 32], sizes = [128, 32], strides = [1, 1]} : vector<128x96xf32> to vector<128x32xf32>
    %43 = vector.broadcast %5 : vector<1x32xf32> to vector<128x32xf32>
    %44 = arith.addf %42, %43 : vector<128x32xf32>
    %45 = vector.extract_strided_slice %38 {offsets = [0, 64], sizes = [128, 32], strides = [1, 1]} : vector<128x96xf32> to vector<128x32xf32>
    %46 = vector.broadcast %6 : vector<1x32xf32> to vector<128x32xf32>
    %47 = arith.addf %45, %46 : vector<128x32xf32>
    %48 = vector.extract_strided_slice %41 {offsets = [0, 0], sizes = [64, 32], strides = [1, 1]} : vector<128x32xf32> to vector<64x32xf32>
    %49 = vector.extract_strided_slice %44 {offsets = [0, 0], sizes = [64, 32], strides = [1, 1]} : vector<128x32xf32> to vector<64x32xf32>
    %50 = vector.extract_strided_slice %47 {offsets = [0, 0], sizes = [64, 32], strides = [1, 1]} : vector<128x32xf32> to vector<64x32xf32>
    %51 = vector.extract_strided_slice %48 {offsets = [0, 0], sizes = [64, 8], strides = [1, 1]} : vector<64x32xf32> to vector<64x8xf32>
    %52 = vector.extract_strided_slice %49 {offsets = [0, 0], sizes = [64, 8], strides = [1, 1]} : vector<64x32xf32> to vector<64x8xf32>
    %53 = vector.extract_strided_slice %50 {offsets = [0, 0], sizes = [64, 8], strides = [1, 1]} : vector<64x32xf32> to vector<64x8xf32>
    %54 = arith.truncf %51 : vector<64x8xf32> to vector<64x8xbf16>
    %55 = arith.truncf %52 : vector<64x8xf32> to vector<64x8xbf16>
    %cst_10 = arith.constant dense<0.000000e+00> : vector<64x64xf32>
    %56 = tpu.matmul %54, %55, %cst_10 {dimension_numbers = #tpu.dot_dimension_numbers<[1], [1], [0], [0], [0, 0, 1, 0], [], []>} : vector<64x8xbf16>, vector<64x8xbf16>, vector<64x64xf32> -> vector<64x64xf32>
    %cst_11 = arith.constant dense<0xFF800000> : vector<64xf32>
    %57 = vector.multi_reduction <maximumf>, %56, %cst_11 [1] : vector<64x64xf32> to vector<64xf32>
    %58 = vector.shape_cast %57 : vector<64xf32> to vector<64x1xf32>
    %59 = vector.broadcast %58 : vector<64x1xf32> to vector<64x64xf32>
    %60 = arith.subf %56, %59 : vector<64x64xf32>
    %61 = math.exp %60 : vector<64x64xf32>
    %cst_12 = arith.constant dense<0.000000e+00> : vector<64xf32>
    %62 = vector.multi_reduction <add>, %61, %cst_12 [1] : vector<64x64xf32> to vector<64xf32>
    %63 = vector.shape_cast %62 : vector<64xf32> to vector<64x1xf32>
    %64 = tpu.reciprocal %63 {approx = true} : vector<64x1xf32> -> vector<64x1xf32>
    %65 = vector.broadcast %64 : vector<64x1xf32> to vector<64x64xf32>
    %66 = arith.mulf %61, %65 : vector<64x64xf32>
    %67 = arith.truncf %66 : vector<64x64xf32> to vector<64x64xbf16>
    %68 = arith.truncf %53 : vector<64x8xf32> to vector<64x8xbf16>
    %cst_13 = arith.constant dense<0.000000e+00> : vector<64x8xf32>
    %69 = tpu.matmul %67, %68, %cst_13 {dimension_numbers = #tpu.dot_dimension_numbers<[1], [0], [0], [1], [0, 0, 1, 1], [], []>} : vector<64x64xbf16>, vector<64x8xbf16>, vector<64x8xf32> -> vector<64x8xf32>
    %70 = vector.extract_strided_slice %48 {offsets = [0, 8], sizes = [64, 8], strides = [1, 1]} : vector<64x32xf32> to vector<64x8xf32>
    %71 = vector.extract_strided_slice %49 {offsets = [0, 8], sizes = [64, 8], strides = [1, 1]} : vector<64x32xf32> to vector<64x8xf32>
    %72 = vector.extract_strided_slice %50 {offsets = [0, 8], sizes = [64, 8], strides = [1, 1]} : vector<64x32xf32> to vector<64x8xf32>
    %73 = arith.truncf %70 : vector<64x8xf32> to vector<64x8xbf16>
    %74 = arith.truncf %71 : vector<64x8xf32> to vector<64x8xbf16>
    %cst_14 = arith.constant dense<0.000000e+00> : vector<64x64xf32>
    %75 = tpu.matmul %73, %74, %cst_14 {dimension_numbers = #tpu.dot_dimension_numbers<[1], [1], [0], [0], [0, 0, 1, 0], [], []>} : vector<64x8xbf16>, vector<64x8xbf16>, vector<64x64xf32> -> vector<64x64xf32>
    %cst_15 = arith.constant dense<0xFF800000> : vector<64xf32>
    %76 = vector.multi_reduction <maximumf>, %75, %cst_15 [1] : vector<64x64xf32> to vector<64xf32>
    %77 = vector.shape_cast %76 : vector<64xf32> to vector<64x1xf32>
    %78 = vector.broadcast %77 : vector<64x1xf32> to vector<64x64xf32>
    %79 = arith.subf %75, %78 : vector<64x64xf32>
    %80 = math.exp %79 : vector<64x64xf32>
    %cst_16 = arith.constant dense<0.000000e+00> : vector<64xf32>
    %81 = vector.multi_reduction <add>, %80, %cst_16 [1] : vector<64x64xf32> to vector<64xf32>
    %82 = vector.shape_cast %81 : vector<64xf32> to vector<64x1xf32>
    %83 = tpu.reciprocal %82 {approx = true} : vector<64x1xf32> -> vector<64x1xf32>
    %84 = vector.broadcast %83 : vector<64x1xf32> to vector<64x64xf32>
    %85 = arith.mulf %80, %84 : vector<64x64xf32>
    %86 = arith.truncf %85 : vector<64x64xf32> to vector<64x64xbf16>
    %87 = arith.truncf %72 : vector<64x8xf32> to vector<64x8xbf16>
    %cst_17 = arith.constant dense<0.000000e+00> : vector<64x8xf32>
    %88 = tpu.matmul %86, %87, %cst_17 {dimension_numbers = #tpu.dot_dimension_numbers<[1], [0], [0], [1], [0, 0, 1, 1], [], []>} : vector<64x64xbf16>, vector<64x8xbf16>, vector<64x8xf32> -> vector<64x8xf32>
    %89 = vector.extract_strided_slice %48 {offsets = [0, 16], sizes = [64, 8], strides = [1, 1]} : vector<64x32xf32> to vector<64x8xf32>
    %90 = vector.extract_strided_slice %49 {offsets = [0, 16], sizes = [64, 8], strides = [1, 1]} : vector<64x32xf32> to vector<64x8xf32>
    %91 = vector.extract_strided_slice %50 {offsets = [0, 16], sizes = [64, 8], strides = [1, 1]} : vector<64x32xf32> to vector<64x8xf32>
    %92 = arith.truncf %89 : vector<64x8xf32> to vector<64x8xbf16>
    %93 = arith.truncf %90 : vector<64x8xf32> to vector<64x8xbf16>
    %cst_18 = arith.constant dense<0.000000e+00> : vector<64x64xf32>
    %94 = tpu.matmul %92, %93, %cst_18 {dimension_numbers = #tpu.dot_dimension_numbers<[1], [1], [0], [0], [0, 0, 1, 0], [], []>} : vector<64x8xbf16>, vector<64x8xbf16>, vector<64x64xf32> -> vector<64x64xf32>
    %cst_19 = arith.constant dense<0xFF800000> : vector<64xf32>
    %95 = vector.multi_reduction <maximumf>, %94, %cst_19 [1] : vector<64x64xf32> to vector<64xf32>
    %96 = vector.shape_cast %95 : vector<64xf32> to vector<64x1xf32>
    %97 = vector.broadcast %96 : vector<64x1xf32> to vector<64x64xf32>
    %98 = arith.subf %94, %97 : vector<64x64xf32>
    %99 = math.exp %98 : vector<64x64xf32>
    %cst_20 = arith.constant dense<0.000000e+00> : vector<64xf32>
    %100 = vector.multi_reduction <add>, %99, %cst_20 [1] : vector<64x64xf32> to vector<64xf32>
    %101 = vector.shape_cast %100 : vector<64xf32> to vector<64x1xf32>
    %102 = tpu.reciprocal %101 {approx = true} : vector<64x1xf32> -> vector<64x1xf32>
    %103 = vector.broadcast %102 : vector<64x1xf32> to vector<64x64xf32>
    %104 = arith.mulf %99, %103 : vector<64x64xf32>
    %105 = arith.truncf %104 : vector<64x64xf32> to vector<64x64xbf16>
    %106 = arith.truncf %91 : vector<64x8xf32> to vector<64x8xbf16>
    %cst_21 = arith.constant dense<0.000000e+00> : vector<64x8xf32>
    %107 = tpu.matmul %105, %106, %cst_21 {dimension_numbers = #tpu.dot_dimension_numbers<[1], [0], [0], [1], [0, 0, 1, 1], [], []>} : vector<64x64xbf16>, vector<64x8xbf16>, vector<64x8xf32> -> vector<64x8xf32>
    %108 = vector.extract_strided_slice %48 {offsets = [0, 24], sizes = [64, 8], strides = [1, 1]} : vector<64x32xf32> to vector<64x8xf32>
    %109 = vector.extract_strided_slice %49 {offsets = [0, 24], sizes = [64, 8], strides = [1, 1]} : vector<64x32xf32> to vector<64x8xf32>
    %110 = vector.extract_strided_slice %50 {offsets = [0, 24], sizes = [64, 8], strides = [1, 1]} : vector<64x32xf32> to vector<64x8xf32>
    %111 = arith.truncf %108 : vector<64x8xf32> to vector<64x8xbf16>
    %112 = arith.truncf %109 : vector<64x8xf32> to vector<64x8xbf16>
    %cst_22 = arith.constant dense<0.000000e+00> : vector<64x64xf32>
    %113 = tpu.matmul %111, %112, %cst_22 {dimension_numbers = #tpu.dot_dimension_numbers<[1], [1], [0], [0], [0, 0, 1, 0], [], []>} : vector<64x8xbf16>, vector<64x8xbf16>, vector<64x64xf32> -> vector<64x64xf32>
    %cst_23 = arith.constant dense<0xFF800000> : vector<64xf32>
    %114 = vector.multi_reduction <maximumf>, %113, %cst_23 [1] : vector<64x64xf32> to vector<64xf32>
    %115 = vector.shape_cast %114 : vector<64xf32> to vector<64x1xf32>
    %116 = vector.broadcast %115 : vector<64x1xf32> to vector<64x64xf32>
    %117 = arith.subf %113, %116 : vector<64x64xf32>
    %118 = math.exp %117 : vector<64x64xf32>
    %cst_24 = arith.constant dense<0.000000e+00> : vector<64xf32>
    %119 = vector.multi_reduction <add>, %118, %cst_24 [1] : vector<64x64xf32> to vector<64xf32>
    %120 = vector.shape_cast %119 : vector<64xf32> to vector<64x1xf32>
    %121 = tpu.reciprocal %120 {approx = true} : vector<64x1xf32> -> vector<64x1xf32>
    %122 = vector.broadcast %121 : vector<64x1xf32> to vector<64x64xf32>
    %123 = arith.mulf %118, %122 : vector<64x64xf32>
    %124 = arith.truncf %123 : vector<64x64xf32> to vector<64x64xbf16>
    %125 = arith.truncf %110 : vector<64x8xf32> to vector<64x8xbf16>
    %cst_25 = arith.constant dense<0.000000e+00> : vector<64x8xf32>
    %126 = tpu.matmul %124, %125, %cst_25 {dimension_numbers = #tpu.dot_dimension_numbers<[1], [0], [0], [1], [0, 0, 1, 1], [], []>} : vector<64x64xbf16>, vector<64x8xbf16>, vector<64x8xf32> -> vector<64x8xf32>
    %127 = tpu.concatenate %69, %88, %107, %126 in 1 : vector<64x8xf32>, vector<64x8xf32>, vector<64x8xf32>, vector<64x8xf32> -> vector<64x32xf32>
    %128 = vector.extract_strided_slice %41 {offsets = [64, 0], sizes = [64, 32], strides = [1, 1]} : vector<128x32xf32> to vector<64x32xf32>
    %129 = vector.extract_strided_slice %44 {offsets = [64, 0], sizes = [64, 32], strides = [1, 1]} : vector<128x32xf32> to vector<64x32xf32>
    %130 = vector.extract_strided_slice %47 {offsets = [64, 0], sizes = [64, 32], strides = [1, 1]} : vector<128x32xf32> to vector<64x32xf32>
    %131 = vector.extract_strided_slice %128 {offsets = [0, 0], sizes = [64, 8], strides = [1, 1]} : vector<64x32xf32> to vector<64x8xf32>
    %132 = vector.extract_strided_slice %129 {offsets = [0, 0], sizes = [64, 8], strides = [1, 1]} : vector<64x32xf32> to vector<64x8xf32>
    %133 = vector.extract_strided_slice %130 {offsets = [0, 0], sizes = [64, 8], strides = [1, 1]} : vector<64x32xf32> to vector<64x8xf32>
    %134 = arith.truncf %131 : vector<64x8xf32> to vector<64x8xbf16>
    %135 = arith.truncf %132 : vector<64x8xf32> to vector<64x8xbf16>
    %cst_26 = arith.constant dense<0.000000e+00> : vector<64x64xf32>
    %136 = tpu.matmul %134, %135, %cst_26 {dimension_numbers = #tpu.dot_dimension_numbers<[1], [1], [0], [0], [0, 0, 1, 0], [], []>} : vector<64x8xbf16>, vector<64x8xbf16>, vector<64x64xf32> -> vector<64x64xf32>
    %cst_27 = arith.constant dense<0xFF800000> : vector<64xf32>
    %137 = vector.multi_reduction <maximumf>, %136, %cst_27 [1] : vector<64x64xf32> to vector<64xf32>
    %138 = vector.shape_cast %137 : vector<64xf32> to vector<64x1xf32>
    %139 = vector.broadcast %138 : vector<64x1xf32> to vector<64x64xf32>
    %140 = arith.subf %136, %139 : vector<64x64xf32>
    %141 = math.exp %140 : vector<64x64xf32>
    %cst_28 = arith.constant dense<0.000000e+00> : vector<64xf32>
    %142 = vector.multi_reduction <add>, %141, %cst_28 [1] : vector<64x64xf32> to vector<64xf32>
    %143 = vector.shape_cast %142 : vector<64xf32> to vector<64x1xf32>
    %144 = tpu.reciprocal %143 {approx = true} : vector<64x1xf32> -> vector<64x1xf32>
    %145 = vector.broadcast %144 : vector<64x1xf32> to vector<64x64xf32>
    %146 = arith.mulf %141, %145 : vector<64x64xf32>
    %147 = arith.truncf %146 : vector<64x64xf32> to vector<64x64xbf16>
    %148 = arith.truncf %133 : vector<64x8xf32> to vector<64x8xbf16>
    %cst_29 = arith.constant dense<0.000000e+00> : vector<64x8xf32>
    %149 = tpu.matmul %147, %148, %cst_29 {dimension_numbers = #tpu.dot_dimension_numbers<[1], [0], [0], [1], [0, 0, 1, 1], [], []>} : vector<64x64xbf16>, vector<64x8xbf16>, vector<64x8xf32> -> vector<64x8xf32>
    %150 = vector.extract_strided_slice %128 {offsets = [0, 8], sizes = [64, 8], strides = [1, 1]} : vector<64x32xf32> to vector<64x8xf32>
    %151 = vector.extract_strided_slice %129 {offsets = [0, 8], sizes = [64, 8], strides = [1, 1]} : vector<64x32xf32> to vector<64x8xf32>
    %152 = vector.extract_strided_slice %130 {offsets = [0, 8], sizes = [64, 8], strides = [1, 1]} : vector<64x32xf32> to vector<64x8xf32>
    %153 = arith.truncf %150 : vector<64x8xf32> to vector<64x8xbf16>
    %154 = arith.truncf %151 : vector<64x8xf32> to vector<64x8xbf16>
    %cst_30 = arith.constant dense<0.000000e+00> : vector<64x64xf32>
    %155 = tpu.matmul %153, %154, %cst_30 {dimension_numbers = #tpu.dot_dimension_numbers<[1], [1], [0], [0], [0, 0, 1, 0], [], []>} : vector<64x8xbf16>, vector<64x8xbf16>, vector<64x64xf32> -> vector<64x64xf32>
    %cst_31 = arith.constant dense<0xFF800000> : vector<64xf32>
    %156 = vector.multi_reduction <maximumf>, %155, %cst_31 [1] : vector<64x64xf32> to vector<64xf32>
    %157 = vector.shape_cast %156 : vector<64xf32> to vector<64x1xf32>
    %158 = vector.broadcast %157 : vector<64x1xf32> to vector<64x64xf32>
    %159 = arith.subf %155, %158 : vector<64x64xf32>
    %160 = math.exp %159 : vector<64x64xf32>
    %cst_32 = arith.constant dense<0.000000e+00> : vector<64xf32>
    %161 = vector.multi_reduction <add>, %160, %cst_32 [1] : vector<64x64xf32> to vector<64xf32>
    %162 = vector.shape_cast %161 : vector<64xf32> to vector<64x1xf32>
    %163 = tpu.reciprocal %162 {approx = true} : vector<64x1xf32> -> vector<64x1xf32>
    %164 = vector.broadcast %163 : vector<64x1xf32> to vector<64x64xf32>
    %165 = arith.mulf %160, %164 : vector<64x64xf32>
    %166 = arith.truncf %165 : vector<64x64xf32> to vector<64x64xbf16>
    %167 = arith.truncf %152 : vector<64x8xf32> to vector<64x8xbf16>
    %cst_33 = arith.constant dense<0.000000e+00> : vector<64x8xf32>
    %168 = tpu.matmul %166, %167, %cst_33 {dimension_numbers = #tpu.dot_dimension_numbers<[1], [0], [0], [1], [0, 0, 1, 1], [], []>} : vector<64x64xbf16>, vector<64x8xbf16>, vector<64x8xf32> -> vector<64x8xf32>
    %169 = vector.extract_strided_slice %128 {offsets = [0, 16], sizes = [64, 8], strides = [1, 1]} : vector<64x32xf32> to vector<64x8xf32>
    %170 = vector.extract_strided_slice %129 {offsets = [0, 16], sizes = [64, 8], strides = [1, 1]} : vector<64x32xf32> to vector<64x8xf32>
    %171 = vector.extract_strided_slice %130 {offsets = [0, 16], sizes = [64, 8], strides = [1, 1]} : vector<64x32xf32> to vector<64x8xf32>
    %172 = arith.truncf %169 : vector<64x8xf32> to vector<64x8xbf16>
    %173 = arith.truncf %170 : vector<64x8xf32> to vector<64x8xbf16>
    %cst_34 = arith.constant dense<0.000000e+00> : vector<64x64xf32>
    %174 = tpu.matmul %172, %173, %cst_34 {dimension_numbers = #tpu.dot_dimension_numbers<[1], [1], [0], [0], [0, 0, 1, 0], [], []>} : vector<64x8xbf16>, vector<64x8xbf16>, vector<64x64xf32> -> vector<64x64xf32>
    %cst_35 = arith.constant dense<0xFF800000> : vector<64xf32>
    %175 = vector.multi_reduction <maximumf>, %174, %cst_35 [1] : vector<64x64xf32> to vector<64xf32>
    %176 = vector.shape_cast %175 : vector<64xf32> to vector<64x1xf32>
    %177 = vector.broadcast %176 : vector<64x1xf32> to vector<64x64xf32>
    %178 = arith.subf %174, %177 : vector<64x64xf32>
    %179 = math.exp %178 : vector<64x64xf32>
    %cst_36 = arith.constant dense<0.000000e+00> : vector<64xf32>
    %180 = vector.multi_reduction <add>, %179, %cst_36 [1] : vector<64x64xf32> to vector<64xf32>
    %181 = vector.shape_cast %180 : vector<64xf32> to vector<64x1xf32>
    %182 = tpu.reciprocal %181 {approx = true} : vector<64x1xf32> -> vector<64x1xf32>
    %183 = vector.broadcast %182 : vector<64x1xf32> to vector<64x64xf32>
    %184 = arith.mulf %179, %183 : vector<64x64xf32>
    %185 = arith.truncf %184 : vector<64x64xf32> to vector<64x64xbf16>
    %186 = arith.truncf %171 : vector<64x8xf32> to vector<64x8xbf16>
    %cst_37 = arith.constant dense<0.000000e+00> : vector<64x8xf32>
    %187 = tpu.matmul %185, %186, %cst_37 {dimension_numbers = #tpu.dot_dimension_numbers<[1], [0], [0], [1], [0, 0, 1, 1], [], []>} : vector<64x64xbf16>, vector<64x8xbf16>, vector<64x8xf32> -> vector<64x8xf32>
    %188 = vector.extract_strided_slice %128 {offsets = [0, 24], sizes = [64, 8], strides = [1, 1]} : vector<64x32xf32> to vector<64x8xf32>
    %189 = vector.extract_strided_slice %129 {offsets = [0, 24], sizes = [64, 8], strides = [1, 1]} : vector<64x32xf32> to vector<64x8xf32>
    %190 = vector.extract_strided_slice %130 {offsets = [0, 24], sizes = [64, 8], strides = [1, 1]} : vector<64x32xf32> to vector<64x8xf32>
    %191 = arith.truncf %188 : vector<64x8xf32> to vector<64x8xbf16>
    %192 = arith.truncf %189 : vector<64x8xf32> to vector<64x8xbf16>
    %cst_38 = arith.constant dense<0.000000e+00> : vector<64x64xf32>
    %193 = tpu.matmul %191, %192, %cst_38 {dimension_numbers = #tpu.dot_dimension_numbers<[1], [1], [0], [0], [0, 0, 1, 0], [], []>} : vector<64x8xbf16>, vector<64x8xbf16>, vector<64x64xf32> -> vector<64x64xf32>
    %cst_39 = arith.constant dense<0xFF800000> : vector<64xf32>
    %194 = vector.multi_reduction <maximumf>, %193, %cst_39 [1] : vector<64x64xf32> to vector<64xf32>
    %195 = vector.shape_cast %194 : vector<64xf32> to vector<64x1xf32>
    %196 = vector.broadcast %195 : vector<64x1xf32> to vector<64x64xf32>
    %197 = arith.subf %193, %196 : vector<64x64xf32>
    %198 = math.exp %197 : vector<64x64xf32>
    %cst_40 = arith.constant dense<0.000000e+00> : vector<64xf32>
    %199 = vector.multi_reduction <add>, %198, %cst_40 [1] : vector<64x64xf32> to vector<64xf32>
    %200 = vector.shape_cast %199 : vector<64xf32> to vector<64x1xf32>
    %201 = tpu.reciprocal %200 {approx = true} : vector<64x1xf32> -> vector<64x1xf32>
    %202 = vector.broadcast %201 : vector<64x1xf32> to vector<64x64xf32>
    %203 = arith.mulf %198, %202 : vector<64x64xf32>
    %204 = arith.truncf %203 : vector<64x64xf32> to vector<64x64xbf16>
    %205 = arith.truncf %190 : vector<64x8xf32> to vector<64x8xbf16>
    %cst_41 = arith.constant dense<0.000000e+00> : vector<64x8xf32>
    %206 = tpu.matmul %204, %205, %cst_41 {dimension_numbers = #tpu.dot_dimension_numbers<[1], [0], [0], [1], [0, 0, 1, 1], [], []>} : vector<64x64xbf16>, vector<64x8xbf16>, vector<64x8xf32> -> vector<64x8xf32>
    %207 = tpu.concatenate %149, %168, %187, %206 in 1 : vector<64x8xf32>, vector<64x8xf32>, vector<64x8xf32>, vector<64x8xf32> -> vector<64x32xf32>
    %208 = tpu.concatenate %127, %207 in 0 : vector<64x32xf32>, vector<64x32xf32> -> vector<128x32xf32>
    %209 = arith.truncf %208 : vector<128x32xf32> to vector<128x32xbf16>
    %cst_42 = arith.constant dense<0.000000e+00> : vector<128x32xf32>
    %210 = tpu.matmul %209, %13, %cst_42 {dimension_numbers = #tpu.dot_dimension_numbers<[1], [0], [0], [1], [0, 0, 1, 1], [], []>} : vector<128x32xbf16>, vector<32x32xbf16>, vector<128x32xf32> -> vector<128x32xf32>
    %211 = vector.broadcast %7 : vector<1x32xf32> to vector<128x32xf32>
    %212 = arith.addf %210, %211 : vector<128x32xf32>
    %213 = arith.addf %212, %16 : vector<128x32xf32>
    %cst_43 = arith.constant dense<0.000000e+00> : vector<128xf32>
    %214 = vector.multi_reduction <add>, %213, %cst_43 [1] : vector<128x32xf32> to vector<128xf32>
    %215 = vector.shape_cast %214 : vector<128xf32> to vector<128x1xf32>
    %cst_44 = arith.constant 3.200000e+01 : f32
    %216 = vector.broadcast %cst_44 : f32 to vector<128x1xf32>
    %217 = arith.divf %215, %216 : vector<128x1xf32>
    %218 = vector.broadcast %217 : vector<128x1xf32> to vector<128x32xf32>
    %219 = arith.subf %213, %218 : vector<128x32xf32>
    %220 = arith.mulf %219, %219 : vector<128x32xf32>
    %cst_45 = arith.constant dense<0.000000e+00> : vector<128xf32>
    %221 = vector.multi_reduction <add>, %220, %cst_45 [1] : vector<128x32xf32> to vector<128xf32>
    %222 = vector.shape_cast %221 : vector<128xf32> to vector<128x1xf32>
    %cst_46 = arith.constant 3.200000e+01 : f32
    %223 = vector.broadcast %cst_46 : f32 to vector<128x1xf32>
    %224 = arith.divf %222, %223 : vector<128x1xf32>
    %cst_47 = arith.constant 9.99999974E-6 : f32
    %225 = vector.broadcast %cst_47 : f32 to vector<128x1xf32>
    %226 = arith.addf %224, %225 : vector<128x1xf32>
    %227 = math.rsqrt %226 : vector<128x1xf32>
    %228 = vector.broadcast %227 : vector<128x1xf32> to vector<128x32xf32>
    %229 = arith.mulf %219, %228 : vector<128x32xf32>
    %230 = vector.broadcast %8 : vector<1x32xf32> to vector<128x32xf32>
    %231 = arith.mulf %229, %230 : vector<128x32xf32>
    %232 = vector.broadcast %9 : vector<1x32xf32> to vector<128x32xf32>
    %233 = arith.addf %231, %232 : vector<128x32xf32>
    %234 = arith.truncf %233 : vector<128x32xf32> to vector<128x32xbf16>
    %cst_48 = arith.constant dense<0.000000e+00> : vector<128x32xf32>
    %235 = tpu.matmul %234, %14, %cst_48 {dimension_numbers = #tpu.dot_dimension_numbers<[1], [0], [0], [1], [0, 0, 1, 1], [], []>} : vector<128x32xbf16>, vector<32x32xbf16>, vector<128x32xf32> -> vector<128x32xf32>
    %236 = vector.broadcast %10 : vector<1x32xf32> to vector<128x32xf32>
    %237 = arith.addf %235, %236 : vector<128x32xf32>
    %cst_49 = arith.constant 5.000000e-01 : f32
    %238 = vector.broadcast %cst_49 : f32 to vector<128x32xf32>
    %239 = arith.mulf %238, %237 : vector<128x32xf32>
    %cst_50 = arith.constant 0.707106769 : f32
    %240 = vector.broadcast %cst_50 : f32 to vector<128x32xf32>
    %241 = arith.mulf %237, %240 : vector<128x32xf32>
    %242 = math.erf %241 : vector<128x32xf32>
    %cst_51 = arith.constant 1.000000e+00 : f32
    %243 = vector.broadcast %cst_51 : f32 to vector<128x32xf32>
    %244 = arith.addf %243, %242 : vector<128x32xf32>
    %245 = arith.mulf %239, %244 : vector<128x32xf32>
    %246 = arith.truncf %245 : vector<128x32xf32> to vector<128x32xbf16>
    %cst_52 = arith.constant dense<0.000000e+00> : vector<128x32xf32>
    %247 = tpu.matmul %246, %15, %cst_52 {dimension_numbers = #tpu.dot_dimension_numbers<[1], [0], [0], [1], [0, 0, 1, 1], [], []>} : vector<128x32xbf16>, vector<32x32xbf16>, vector<128x32xf32> -> vector<128x32xf32>
    %248 = vector.broadcast %11 : vector<1x32xf32> to vector<128x32xf32>
    %249 = arith.addf %247, %248 : vector<128x32xf32>
    %250 = arith.addf %249, %213 : vector<128x32xf32>
    %c0_53 = arith.constant 0 : index
    %c0_54 = arith.constant 0 : index
    %251 = vector.load %arg4[%c0_53, %c0_54] : memref<128x32xf32, #tpu.memory_space<vmem>>, vector<128x32xf32>
    tpu.vector_store %arg4[%c0_53, %c0_54], %250 {strides = array<i32>} : memref<128x32xf32, #tpu.memory_space<vmem>>, vector<128x32xf32>,
    return
  }
  func.func @transform_0(%arg0: i32) -> (i32, i32) {
    %c0_i32 = arith.constant 0 : i32
    %c0_i32_0 = arith.constant 0 : i32
    %c0_i32_1 = arith.constant 0 : i32
    return %c0_i32, %c0_i32_0 : i32, i32
  }
  func.func @transform_1(%arg0: i32) -> (i32, i32) {
    %c0_i32 = arith.constant 0 : i32
    %c0_i32_0 = arith.constant 0 : i32
    %c0_i32_1 = arith.constant 0 : i32
    return %c0_i32, %c0_i32_0 : i32, i32
  }
  func.func @transform_2(%arg0: i32) -> (i32, i32) {
    %c0_i32 = arith.constant 0 : i32
    %c0_i32_0 = arith.constant 0 : i32
    %c0_i32_1 = arith.constant 0 : i32
    return %c0_i32, %c0_i32_0 : i32, i32
  }
  func.func @transform_3(%arg0: i32) -> (i32, i32) {
    %c0_i32 = arith.constant 0 : i32
    %c0_i32_0 = arith.constant 0 : i32
    %c0_i32_1 = arith.constant 0 : i32
    return %c0_i32, %c0_i32_0 : i32, i32
  }
}

</mosaic_0001>

<bundles_post_ra>
// kernel: tpu_custom_call.1
= control target key start
LH: loop header
LB: loop body
LE: loop exit
PB: predicated region body
PF: predicated region fallthrough
CT: control target
= control target key end

     0   :  { %vm37_vm0 = vcmask 261120   ;;  %v4619_v14 = vmov 32.0   ;;  %s4620_s9 = smov 32   ;;  %s4621_s28 = smov 64   ;;  %s7423_s0 = inlined_call_operand.vmem [shape: f32[128,32], index: 0, kind: input, shape index: {}]   ;;  %s7424_s2 = inlined_call_operand.vmem [shape: f32[10,32], index: 2, kind: input, shape index: {}]   ;;  %s7425_s1 = inlined_call_operand.vmem [shape: bf16[32,192], index: 1, kind: input, shape index: {}]   ;;  %s7426_s3 = inlined_call_operand.vmem [shape: f32[128,32], index: 3, kind: output, shape index: {}]  }
   0x1   :  { %v25_v0 = vld [vmem:[%s7423_s0 + $0x20] sm:$0xff]  ;;  %v23_v1 = vld [vmem:[%s7423_s0 + $0x10] sm:$0xff]  ;;  %v26_v6 = vld [vmem:[%s7423_s0 + $0x28] sm:$0xff]  ;;  %4247 = vrcp.f32 %v4619_v14  ;;  %s4622_s29 = smov 96   ;;  %s4623_s30 = smov 120  }
   0x2   :  { %v21_v2 = vld [vmem:[%s7423_s0] sm:$0xff]  ;;  %v50_v3 = vsel %vm37_vm0, %v25_v0, 0.0  ;;  %v44_v4 = vsel %vm37_vm0, %v23_v1, 0.0  ;;  %v24_v7 = vld [vmem:[%s7423_s0 + $0x18] sm:$0xff]  ;;  %v22_v8 = vld [vmem:[%s7423_s0 + $0x8] sm:$0xff]  ;;  %v53_v9 = vsel %vm37_vm0, %v26_v6, 0.0 }
   0x3   :  { %v38_v5 = vsel %vm37_vm0, %v21_v2, 0.0  ;;  %51 = vadd.xlane.f32.xlu2 %v50_v3  ;;  %45 = vadd.xlane.f32.xlu1 %v44_v4  ;;  %v47_v10 = vsel %vm37_vm0, %v24_v7, 0.0  ;;  %v41_v11 = vsel %vm37_vm0, %v22_v8, 0.0  ;;  %v27_v12 = vld [vmem:[%s7423_s0 + $0x30] sm:$0xff]  ;;  %v4700_v36 = vld [vmem:[%s7423_s0 + $0x38] sm:$0xff]  ;;  %v4736_v57 = vld [vmem:[%s7423_s0 + $0x40] sm:$0xff] }
   0x4   :  { %39 = vadd.xlane.f32.xlu0 %v38_v5  ;;  %v56_v13 = vsel %vm37_vm0, %v27_v12, 0.0  ;;  %v59_v41 = vsel %vm37_vm0, %v4700_v36, 0.0  ;;  %v62_v58 = vsel %vm37_vm0, %v4736_v57, 0.0  ;;  %v4744_v60 = vld [vmem:[%s7423_s0 + $0x58] sm:$0xff]  ;;  %v4751_v62 = vld [vmem:[%s7423_s0 + $0x68] sm:$0xff]  ;;  %s4624_s4 = smov 88  }
   0x5   :  { %v71_v61 = vsel %vm37_vm0, %v4744_v60, 0.0  ;;  %v77_v63 = vsel %vm37_vm0, %v4751_v62, 0.0  ;;  %v4772_v4 = vld [vmem:[%s7423_s0 + $0x48] sm:$0xff]  ;;  %s4625_s5 = smov 56   ;;  %s4626_s6 = smov 80  }
   0x6   :  { %v65_v5 = vsel %vm37_vm0, %v4772_v4, 0.0  ;;  %s4627_s7 = smov 72   ;;  %s4628_s8 = smov 104  }
   0x7   :  { %v4248_v15 = vpop.eup %4247  ;;  %s4629_s10 = smov 112   ;;  %s4630_s11 = smov 48  }
   0x8   :  { %v87_v16 = vmul.f32 32.0, %v4248_v15  ;;  %vm91_vm1 = vweird.f32 %v4248_v15  ;;  %s4631_s12 = smov 40   ;;  %s4632_s13 = smov 8  }
   0x9   :  { %s4633_s14 = smov 16   ;;  %s4634_s15 = smov 24  }
   0xa   :  { %v88_v17 = vsub.f32 1.0, %v87_v16  ;;  %v4108_v16 = vld [vmem:[%s7425_s1 + $0x4] sm:$0xf0] }
   0xb   :  { %54 = vadd.xlane.f32.xlu2 %v53_v9  ;;  %48 = vadd.xlane.f32.xlu1 %v47_v10  ;;  %v3985_v10 = vld [vmem:[%s7425_s1 + $0x10] sm:$0xf] }
   0xc   :  { %42 = vadd.xlane.f32.xlu0 %v41_v11  ;;  %v89_v18 = vmul.f32 %v4248_v15, %v88_v17  ;;  %v4110_v11 = vld [vmem:[%s7425_s1 + $0x14] sm:$0xf0] }
   0xe   :  { %v90_v19 = vadd.f32 %v4248_v15, %v89_v18 }
  0x10   :  { %v4683_v20 = vsel %vm91_vm1, %v4248_v15, %v90_v19  ;;  %v3981_v15 = vld [vmem:[%s7425_s1] sm:$0xf] }
  0x11   :  { %7439 = vst [vmem:[#allocation2_spill] sm:$0xff] %v4683_v20  ;;  %v4806_v18 = vor.u32 %v4108_v16, %v3981_v15 }
  0x13   :  { %57 = vadd.xlane.f32.xlu2 %v56_v13  ;;  %7441 = vst [vmem:[#allocation4_spill] sm:$0xff] %v4806_v18 }
  0x76   :  { %v52_v21 = vpop.xlane.xlu2 %51  ;;  %v46_v22 = vpop.xlane.xlu1 %45 }
  0x77   :  { %v40_v23 = vpop.xlane.xlu0 %39  ;;  %v97_v32 = vmul.f32 %v4683_v20, %v52_v21  ;;  %v95_v33 = vmul.f32 %v4683_v20, %v46_v22 }
  0x78   :  { %v93_v24 = vmul.f32 %v4683_v20, %v40_v23 }
  0x79   :  { %v4706_v39 = vsub.f32 %v25_v0, %v97_v32  ;;  %v4708_v40 = vsub.f32 %v23_v1, %v95_v33  ;;  %v4758_v0 = vld [vmem:[%s7424_s2] sm:$0xff] }
  0x7a   :  { %v4686_v25 = vsub.f32 %v21_v2, %v93_v24  ;;  %v541_v1 = vperm.slane %v4758_v0, 3  ;;  %v4765_v2 = vld [vmem:[%s7423_s0 + $0x70] sm:$0xff] }
  0x7b   :  { %v129_v48 = vmul.f32 %v4706_v39, %v4706_v39  ;;  %v127_v49 = vmul.f32 %v4708_v40, %v4708_v40  ;;  %v80_v3 = vsel %vm37_vm0, %v4765_v2, 0.0 }
  0x7c   :  { %v125_v26 = vmul.f32 %v4686_v25, %v4686_v25 }
  0x7d   :  { %v153_v53 = vsel %vm37_vm0, %v129_v48, 0.0  ;;  %v147_v54 = vsel %vm37_vm0, %v127_v49, 0.0 }
  0x7e   :  { %v55_v27 = vpop.xlane.xlu2 %54  ;;  %v49_v28 = vpop.xlane.xlu1 %48  ;;  %v141_v29 = vsel %vm37_vm0, %v125_v26, 0.0 }
  0x7f   :  { %v96_v30 = vmul.f32 %v4683_v20, %v49_v28  ;;  %142 = vadd.xlane.f32.xlu0 %v141_v29  ;;  %v43_v31 = vpop.xlane.xlu0 %42  ;;  %v98_v47 = vmul.f32 %v4683_v20, %v55_v27 }
  0x80   :  { %v94_v34 = vmul.f32 %v4683_v20, %v43_v31 }
  0x81   :  { %v4695_v35 = vsub.f32 %v24_v7, %v96_v30  ;;  %v4726_v52 = vsub.f32 %v26_v6, %v98_v47  ;;  %v4779_v6 = vld [vmem:[%s7423_s0 + $0x60] sm:$0xff] }
  0x82   :  { %v4702_v37 = vsub.f32 %v22_v8, %v94_v34  ;;  %v74_v7 = vsel %vm37_vm0, %v4779_v6, 0.0  ;;  %v4786_v8 = vld [vmem:[%s7423_s0 + $0x78] sm:$0xff] }
  0x83   :  { %v128_v38 = vmul.f32 %v4695_v35, %v4695_v35  ;;  %v130_v56 = vmul.f32 %v4726_v52, %v4726_v52  ;;  %v83_v9 = vsel %vm37_vm0, %v4786_v8, 0.0 }
  0x84   :  { %v126_v42 = vmul.f32 %v4702_v37, %v4702_v37 }
  0x85   :  { %v150_v43 = vsel %vm37_vm0, %v128_v38, 0.0  ;;  %v156_v59 = vsel %vm37_vm0, %v130_v56, 0.0 }
  0x86   :  { %v58_v44 = vpop.xlane.xlu2 %57  ;;  %151 = vadd.xlane.f32.xlu2 %v150_v43  ;;  %v144_v45 = vsel %vm37_vm0, %v126_v42, 0.0 }
  0x87   :  { %v99_v46 = vmul.f32 %v4683_v20, %v58_v44  ;;  %60 = vadd.xlane.f32.xlu0 %v59_v41  ;;  %145 = vadd.xlane.f32.xlu1 %v144_v45 }
  0x89   :  { %v4722_v50 = vsub.f32 %v27_v12, %v99_v46  ;;  %v4796_v12 = vor.u32 %v4110_v11, %v3985_v10  ;;  %v4847_v11 = vperm.slane %v4758_v0, 0 }
  0x8b   :  { %v131_v51 = vmul.f32 %v4722_v50, %v4722_v50  ;;  %7440 = vst [vmem:[#allocation3_spill] sm:$0xff] %v4796_v12  ;;  %481 = vmatpush.bf16.msra.mxu0 %v4796_v12 }
  0x8d   :  { %v159_v55 = vsel %vm37_vm0, %v131_v51, 0.0 }
  0x8e   :  { %160 = vadd.xlane.f32.xlu2 %v159_v55 }
  0x8f   :  { %154 = vadd.xlane.f32.xlu0 %v153_v53  ;;  %148 = vadd.xlane.f32.xlu1 %v147_v54 }
  0x90   :  { %482 = vmatpush.bf16.msra.mxu0 %v4806_v18 }
  0x96   :  { %63 = vadd.xlane.f32.xlu2 %v62_v58 }
  0x97   :  { %157 = vadd.xlane.f32.xlu1 %v156_v59 }
  0x9e   :  { %72 = vadd.xlane.f32.xlu2 %v71_v61 }
  0xa6   :  { %78 = vadd.xlane.f32.xlu2 %v77_v63 }
  0xae   :  { %81 = vadd.xlane.f32.xlu2 %v80_v3 }
  0xb0   :  { %543 = vrot.lane.b32.xlu1 %v541_v1, %s4620_s9 }
  0xda   :  { %66 = vadd.xlane.f32.xlu1 %v65_v5 }
  0xe2   :  { %75 = vadd.xlane.f32.xlu1 %v74_v7 }
  0xea   :  { %84 = vadd.xlane.f32.xlu1 %v83_v9 }
  0xf2   :  { %v143_v13 = vpop.xlane.xlu0 %142 }
  0xf3   :  { %v189_v14 = vmul.f32 %v143_v13, %v4683_v20 }
  0xf5   :  { %v205_v17 = vadd.f32 1e-05, %v189_v14 }
  0xf7   :  { %4249 = vrsqrt.f32 %v205_v17  ;;  %vm227_vm3 = vweird.f32 %v205_v17 }
  0xf9   :  { %v152_v19 = vpop.xlane.xlu2 %151 }
  0xfa   :  { %v192_v21 = vmul.f32 %v152_v19, %v4683_v20  ;;  %v146_v22 = vpop.xlane.xlu1 %145  ;;  %v61_v23 = vpop.xlane.xlu0 %60 }
  0xfb   :  { %v190_v24 = vmul.f32 %v146_v22, %v4683_v20  ;;  %v100_v26 = vmul.f32 %v4683_v20, %v61_v23 }
  0xfc   :  { %v4812_v27 = vadd.f32 1e-05, %v192_v21 }
  0xfd   :  { %v4250_v28 = vpop.eup %4249  ;;  %v206_v29 = vadd.f32 1e-05, %v190_v24  ;;  %v4815_v30 = vsub.f32 %v4700_v36, %v100_v26  ;;  %v4827_v36 = vld [vmem:[%s7423_s0 + $0x50] sm:$0xff]  ;;  %v4854_v24 = vperm.slane %v4758_v0, 1 }
  0xfe   :  { %v222_v31 = vmul.f32 %v4250_v28, %v205_v17  ;;  %4251 = vrsqrt.f32 %v4812_v27  ;;  %v68_v53 = vsel %vm37_vm0, %v4827_v36, 0.0  ;;  %vm228_vm2 = vweird.f32 %v4250_v28 }
  0xff   :  { %4253 = vrsqrt.f32 %v206_v29  ;;  %v132_v32 = vmul.f32 %v4815_v30, %v4815_v30  ;;  %vm4838_vm4 = vmor %vm227_vm3, %vm228_vm2  ;;  %vm237_vm5 = vweird.f32 %v206_v29  ;;  %vm257_vm10 = vweird.f32 %v4812_v27 }
 0x100   :  { %v223_v33 = vmul.f32 %v4250_v28, %v222_v31 }
 0x101   :  { %v162_v34 = vsel %vm37_vm0, %v132_v32, 0.0  ;;  %v4821_v43 = vpop.xlane.xlu2 %160 }
 0x102   :  { %v224_v38 = vmul.f32 0.5, %v223_v33  ;;  %v149_v41 = vpop.xlane.xlu1 %148  ;;  %163 = vadd.xlane.f32.xlu0 %v162_v34  ;;  %v155_v42 = vpop.xlane.xlu0 %154 }
 0x103   :  { %v191_v44 = vmul.f32 %v149_v41, %v4683_v20  ;;  %v193_v49 = vmul.f32 %v155_v42, %v4683_v20 }
 0x104   :  { %v4829_v45 = vpop.eup %4251  ;;  %v225_v46 = vsub.f32 1.5, %v224_v38 }
 0x105   :  { %v4254_v47 = vpop.eup %4253  ;;  %v207_v48 = vadd.f32 1e-05, %v191_v44  ;;  %v252_v55 = vmul.f32 %v4829_v45, %v4812_v27  ;;  %v4836_v58 = vadd.f32 1e-05, %v193_v49  ;;  %vm258_vm11 = vweird.f32 %v4829_v45 }
 0x106   :  { %v232_v51 = vmul.f32 %v4254_v47, %v206_v29  ;;  %v226_v54 = vmul.f32 %v4250_v28, %v225_v46  ;;  %vm238_vm6 = vweird.f32 %v4254_v47  ;;  %vm259_vm13 = vmor %vm257_vm10, %vm258_vm11 }
 0x107   :  { %4255 = vrsqrt.f32 %v207_v48  ;;  %v253_v3 = vmul.f32 %v4829_v45, %v252_v55  ;;  %vm239_vm7 = vmor %vm237_vm5, %vm238_vm6  ;;  %vm247_vm8 = vweird.f32 %v207_v48  ;;  %vm267_vm1 = vweird.f32 %v4836_v58 }
 0x108   :  { %v233_v56 = vmul.f32 %v4254_v47, %v232_v51  ;;  %v230_v1 = vsel %vm4838_vm4, %v4250_v28, %v226_v54  ;;  %4257 = vrsqrt.f32 %v4836_v58 }
 0x109   :  { %v64_v7 = vpop.xlane.xlu2 %63  ;;  %v381_v16 = vmul.f32 %v230_v1, %v4686_v25  ;;  %v254_v19 = vmul.f32 0.5, %v253_v3 }
 0x10a   :  { %v234_v61 = vmul.f32 0.5, %v233_v56  ;;  %v158_v63 = vpop.xlane.xlu1 %157  ;;  %69 = vadd.xlane.f32.xlu0 %v68_v53  ;;  %v101_v17 = vmul.f32 %v4683_v20, %v64_v7 }
 0x10b   :  { %v194_v5 = vmul.f32 %v158_v63, %v4683_v20  ;;  %v398_v28 = vmul.f32 %v4847_v11, %v381_v16  ;;  %v255_v32 = vsub.f32 1.5, %v254_v19 }
 0x10c   :  { %v235_v9 = vsub.f32 1.5, %v234_v61  ;;  %v4858_v29 = vsub.f32 %v4736_v57, %v101_v17 }
 0x10d   :  { %v4256_v10 = vpop.eup %4255  ;;  %v210_v13 = vadd.f32 1e-05, %v194_v5  ;;  %v415_v42 = vadd.f32 %v4854_v24, %v398_v28  ;;  %v256_v46 = vmul.f32 %v4829_v45, %v255_v32 }
 0x10e   :  { %v236_v14 = vmul.f32 %v4254_v47, %v235_v9  ;;  %v242_v15 = vmul.f32 %v4256_v10, %v207_v48  ;;  %v4258_v31 = vpop.eup %4257  ;;  %vm248_vm9 = vweird.f32 %v4256_v10  ;;  %v133_v34 = vmul.f32 %v4858_v29, %v4858_v29 }
 0x10f   :  { %4259 = vrsqrt.f32 %v210_v13  ;;  %vm4866_vm12 = vmor %vm247_vm8, %vm248_vm9  ;;  %v260_v54 = vsel %vm259_vm13, %v4829_v45, %v256_v46  ;;  %vm277_vm14 = vweird.f32 %v210_v13  ;;  %vm268_vm2 = vweird.f32 %v4258_v31 }
 0x110   :  { %v240_v21 = vsel %vm239_vm7, %v4254_v47, %v236_v14  ;;  %v243_v22 = vmul.f32 %v4256_v10, %v242_v15  ;;  %v165_v44 = vsel %vm37_vm0, %v133_v34, 0.0  ;;  %v262_v47 = vmul.f32 %v4258_v31, %v4836_v58  ;;  %vm269_vm4 = vmor %vm267_vm1, %vm268_vm2 }
 0x111   :  { %v382_v23 = vmul.f32 %v240_v21, %v4702_v37  ;;  %166 = vadd.xlane.f32.xlu1 %v165_v44  ;;  %v73_v53 = vpop.xlane.xlu2 %72  ;;  %v384_v1 = vmul.f32 %v260_v54, %v4695_v35  ;;  %v195_v54 = vmul.f32 %v4821_v43, %v4683_v20 }
 0x112   :  { %v244_v26 = vmul.f32 0.5, %v243_v22  ;;  %v263_v55 = vmul.f32 %v4258_v31, %v262_v47  ;;  %v104_v56 = vmul.f32 %v4683_v20, %v73_v53 }
 0x113   :  { %v399_v25 = vmul.f32 %v4847_v11, %v382_v23 }
 0x114   :  { %v245_v33 = vsub.f32 1.5, %v244_v26  ;;  %v4881_v63 = vsub.f32 %v4744_v60, %v104_v56  ;;  %v264_v3 = vmul.f32 0.5, %v263_v55  ;;  %v211_v56 = vadd.f32 1e-05, %v195_v54 }
 0x115   :  { %v416_v37 = vadd.f32 %v4854_v24, %v399_v25  ;;  %v4260_v38 = vpop.eup %4259 }
 0x116   :  { %v246_v41 = vmul.f32 %v4256_v10, %v245_v33  ;;  %v272_v48 = vmul.f32 %v4260_v38, %v210_v13  ;;  %v136_v5 = vmul.f32 %v4881_v63, %v4881_v63  ;;  %v265_v14 = vsub.f32 1.5, %v264_v3 }
 0x117   :  { %v431_v27 = vpack.c.bf16 %v416_v37, %v415_v42  ;;  %vm278_vm15 = vweird.f32 %v4260_v38  ;;  %4261 = vrsqrt.f32 %v211_v56  ;;  %vm287_vm5 = vweird.f32 %v211_v56 }
 0x118   :  { %v250_v49 = vsel %vm4866_vm12, %v4256_v10, %v246_v41  ;;  %v273_v51 = vmul.f32 %v4260_v38, %v272_v48  ;;  %v174_v45 = vsel %vm37_vm0, %v136_v5, 0.0  ;;  %v401_v10 = vmul.f32 %v4847_v11, %v384_v1  ;;  %vm279_vm3 = vmor %vm277_vm14, %vm278_vm15 }
 0x119   :  { %3987 = vmatmul.msk.bf16.vlgmr.msra.gmra.mxu0 %vm37_vm0, %v431_v27  ;;  %v383_v59 = vmul.f32 %v250_v49, %v4708_v40  ;;  %175 = vadd.xlane.f32.xlu2 %v174_v45  ;;  %v79_v60 = vpop.xlane.xlu2 %78  ;;  %v266_v16 = vmul.f32 %v4258_v31, %v265_v14 }
 0x11a   :  { %v274_v61 = vmul.f32 0.5, %v273_v51  ;;  %v418_v15 = vadd.f32 %v4854_v24, %v401_v10  ;;  %v106_v19 = vmul.f32 %v4683_v20, %v79_v60 }
 0x11b   :  { %v400_v7 = vmul.f32 %v4847_v11, %v383_v59  ;;  %v270_v13 = vsel %vm269_vm4, %v4258_v31, %v266_v16 }
 0x11c   :  { %v275_v9 = vsub.f32 1.5, %v274_v61  ;;  %v4896_v23 = vsub.f32 %v4751_v62, %v106_v19  ;;  %v385_v58 = vmul.f32 %v270_v13, %v4706_v39 }
 0x11d   :  { %v417_v40 = vadd.f32 %v4854_v24, %v400_v7  ;;  %v4262_v61 = vpop.eup %4261 }
 0x11e   :  { %v276_v35 = vmul.f32 %v4260_v38, %v275_v9  ;;  %v138_v28 = vmul.f32 %v4896_v23, %v4896_v23  ;;  %v402_v32 = vmul.f32 %v4847_v11, %v385_v58  ;;  %v282_v1 = vmul.f32 %v4262_v61, %v211_v56 }
 0x11f   :  { %v432_v17 = vpack.c.bf16 %v418_v15, %v417_v40  ;;  %vm288_vm6 = vweird.f32 %v4262_v61 }
 0x120   :  { %v280_v21 = vsel %vm279_vm3, %v4260_v38, %v276_v35  ;;  %v180_v25 = vsel %vm37_vm0, %v138_v28, 0.0  ;;  %v419_v31 = vadd.f32 %v4854_v24, %v402_v32  ;;  %v283_v3 = vmul.f32 %v4262_v61, %v282_v1  ;;  %vm289_vm7 = vmor %vm287_vm5, %vm288_vm6 }
 0x121   :  { %v386_v22 = vmul.f32 %v280_v21, %v4726_v52  ;;  %181 = vadd.xlane.f32.xlu1 %v180_v25  ;;  %v82_v41 = vpop.xlane.xlu2 %81 }
 0x122   :  { %v4907_v62 = vpop.permute.xlu1 %543  ;;  %v107_v46 = vmul.f32 %v4683_v20, %v82_v41 }
 0x123   :  { %v403_v26 = vmul.f32 %v4847_v11, %v386_v22 }
 0x124   :  { %v4922_v48 = vsub.f32 %v4765_v2, %v107_v46 }
 0x125   :  { %v420_v33 = vadd.f32 %v4854_v24, %v403_v26 }
 0x126   :  { %v139_v53 = vmul.f32 %v4922_v48, %v4922_v48 }
 0x127   :  { %v433_v52 = vpack.c.bf16 %v420_v33, %v419_v31 }
 0x128   :  { %v183_v2 = vsel %vm37_vm0, %v139_v53, 0.0 }
 0x129   :  { %3988 = vmatmul.msk.bf16.gmra.mxu0 %vm37_vm0, %v432_v17 }
 0x139   :  { %3989 = vmatmul.msk.bf16.gmra.mxu0 %vm37_vm0, %v433_v52  ;;  %v562_v52 = vperm.slane %v4758_v0, 4 }
 0x14d   :  { %v67_v39 = vpop.xlane.xlu1 %66 }
 0x14e   :  { %v102_v34 = vmul.f32 %v4683_v20, %v67_v39 }
 0x150   :  { %v4911_v37 = vsub.f32 %v4772_v4, %v102_v34 }
 0x152   :  { %v134_v38 = vmul.f32 %v4911_v37, %v4911_v37 }
 0x154   :  { %v168_v57 = vsel %vm37_vm0, %v134_v38, 0.0 }
 0x155   :  { %v76_v42 = vpop.xlane.xlu1 %75  ;;  %169 = vadd.xlane.f32.xlu0 %v168_v57 }
 0x156   :  { %v105_v44 = vmul.f32 %v4683_v20, %v76_v42 }
 0x158   :  { %v4919_v47 = vsub.f32 %v4779_v6, %v105_v44 }
 0x15a   :  { %v137_v4 = vmul.f32 %v4919_v47, %v4919_v47 }
 0x15c   :  { %v177_v27 = vsel %vm37_vm0, %v137_v4, 0.0 }
 0x15d   :  { %178 = vadd.xlane.f32.xlu2 %v177_v27  ;;  %v85_v49 = vpop.xlane.xlu1 %84 }
 0x15e   :  { %v108_v51 = vmul.f32 %v4683_v20, %v85_v49 }
 0x160   :  { %v4933_v6 = vsub.f32 %v4786_v8, %v108_v51  ;;  %v284_v8 = vmul.f32 0.5, %v283_v3 }
 0x162   :  { %v140_v55 = vmul.f32 %v4933_v6, %v4933_v6  ;;  %v285_v9 = vsub.f32 1.5, %v284_v8 }
 0x164   :  { %v186_v59 = vsel %vm37_vm0, %v140_v55, 0.0  ;;  %v286_v35 = vmul.f32 %v4262_v61, %v285_v9 }
 0x165   :  { %184 = vadd.xlane.f32.xlu2 %v183_v2  ;;  %187 = vadd.xlane.f32.xlu1 %v186_v59 }
 0x166   :  { %v290_v19 = vsel %vm289_vm7, %v4262_v61, %v286_v35 }
 0x167   :  { %v387_v22 = vmul.f32 %v290_v19, %v4722_v50 }
 0x169   :  { %v404_v28 = vmul.f32 %v4847_v11, %v387_v22 }
 0x16b   :  { %v421_v25 = vadd.f32 %v4854_v24, %v404_v28 }
 0x175   :  { %v164_v5 = vpop.xlane.xlu0 %163 }
 0x176   :  { %v196_v43 = vmul.f32 %v164_v5, %v4683_v20 }
 0x178   :  { %v212_v7 = vadd.f32 1e-05, %v196_v43 }
 0x17a   :  { %4263 = vrsqrt.f32 %v212_v7  ;;  %vm297_vm9 = vweird.f32 %v212_v7 }
 0x17d   :  { %v70_v45 = vpop.xlane.xlu0 %69 }
 0x17e   :  { %v103_v10 = vmul.f32 %v4683_v20, %v70_v45 }
 0x180   :  { %v4264_v14 = vpop.eup %4263  ;;  %v4942_v40 = vsub.f32 %v4827_v36, %v103_v10 }
 0x181   :  { %v292_v60 = vmul.f32 %v4264_v14, %v212_v7  ;;  %vm298_vm8 = vweird.f32 %v4264_v14 }
 0x182   :  { %v135_v15 = vmul.f32 %v4942_v40, %v4942_v40  ;;  %vm299_vm10 = vmor %vm297_vm9, %vm298_vm8 }
 0x183   :  { %v293_v16 = vmul.f32 %v4264_v14, %v292_v60 }
 0x184   :  { %v171_v17 = vsel %vm37_vm0, %v135_v15, 0.0  ;;  %v167_v27 = vpop.xlane.xlu1 %166 }
 0x185   :  { %v294_v21 = vmul.f32 0.5, %v293_v16  ;;  %172 = vadd.xlane.f32.xlu0 %v171_v17  ;;  %v197_v53 = vmul.f32 %v167_v27, %v4683_v20 }
 0x187   :  { %v295_v13 = vsub.f32 1.5, %v294_v21  ;;  %v213_v2 = vadd.f32 1e-05, %v197_v53 }
 0x189   :  { %v296_v58 = vmul.f32 %v4264_v14, %v295_v13  ;;  %4265 = vrsqrt.f32 %v213_v2  ;;  %vm307_vm11 = vweird.f32 %v213_v2 }
 0x18b   :  { %v300_v36 = vsel %vm299_vm10, %v4264_v14, %v296_v58 }
 0x18c   :  { %v388_v26 = vmul.f32 %v300_v36, %v4815_v30  ;;  %v4959_v30 = vperm.slane %v4758_v0, 2 }
 0x18e   :  { %v405_v32 = vmul.f32 %v4847_v11, %v388_v26 }
 0x18f   :  { %v4266_v5 = vpop.eup %4265 }
 0x190   :  { %v422_v33 = vadd.f32 %v4854_v24, %v405_v32  ;;  %v302_v7 = vmul.f32 %v4266_v5, %v213_v2  ;;  %vm308_vm12 = vweird.f32 %v4266_v5  ;;  %v176_v32 = vpop.xlane.xlu2 %175 }
 0x191   :  { %vm309_vm13 = vmor %vm307_vm11, %vm308_vm12 }
 0x192   :  { %v434_v31 = vpack.c.bf16 %v422_v33, %v421_v25  ;;  %v303_v8 = vmul.f32 %v4266_v5, %v302_v7  ;;  %v200_v33 = vmul.f32 %v176_v32, %v4683_v20 }
 0x194   :  { %3990 = vmatmul.msk.bf16.gmra.mxu0 %vm37_vm0, %v434_v31  ;;  %v304_v14 = vmul.f32 0.5, %v303_v8 }
 0x196   :  { %v4955_v50 = vpop.f32.mrf.mxu0  ;;  %v305_v35 = vsub.f32 1.5, %v304_v14 }
 0x197   :  { %v525_v34 = vadd.f32 %v4959_v30, %v4955_v50  ;;  %v546_v38 = vadd.f32 %v4907_v62, %v4955_v50 }
 0x198   :  { %v306_v15 = vmul.f32 %v4266_v5, %v305_v35 }
 0x199   :  { %564 = vrot.lane.b32.xlu0 %v562_v52, %s4621_s28 }
 0x19a   :  { %v310_v19 = vsel %vm309_vm13, %v4266_v5, %v306_v15 }
 0x19b   :  { %v389_v22 = vmul.f32 %v310_v19, %v4858_v29 }
 0x19d   :  { %v406_v28 = vmul.f32 %v4847_v11, %v389_v22 }
 0x19e   :  { %v4961_v39 = vpop.f32.mrf.mxu0 }
 0x19f   :  { %v526_v41 = vadd.f32 %v4959_v30, %v4961_v39  ;;  %v547_v57 = vadd.f32 %v4907_v62, %v4961_v39  ;;  %v423_v31 = vadd.f32 %v4854_v24, %v406_v28 }
 0x1a1   :  { %v4971_v42 = vpack.c.bf16 %v547_v57, %v546_v38  ;;  %v4973_v44 = vpack.c.bf16 %v526_v41, %v525_v34  ;;  %v216_v38 = vadd.f32 1e-05, %v200_v33  ;;  %v182_v41 = vpop.xlane.xlu1 %181 }
 0x1a3   :  { %595 = vrot.lane.b32.xlu1 %v4971_v42, %s4622_s29  ;;  %815 = vrot.lane.b32.xlu2 %v4973_v44, %s4623_s30  ;;  %vm337_vm2 = vweird.f32 %v216_v38 }
 0x1a4   :  { %823 = vrot.lane.b32.xlu0 %v4971_v42, %s4624_s4 }
 0x1a6   :  { %v4981_v0 = vpop.f32.mrf.mxu0 }
 0x1a7   :  { %v548_v4 = vadd.f32 %v4907_v62, %v4981_v0  ;;  %v527_v56 = vadd.f32 %v4959_v30, %v4981_v0 }
 0x1ae   :  { %v4983_v46 = vpop.f32.mrf.mxu0 }
 0x1af   :  { %v549_v49 = vadd.f32 %v4907_v62, %v4983_v46  ;;  %v528_v54 = vadd.f32 %v4959_v30, %v4983_v46 }
 0x1b1   :  { %v4989_v51 = vpack.c.bf16 %v549_v49, %v548_v4  ;;  %v5002_v59 = vpack.c.bf16 %v528_v54, %v527_v56  ;;  %v202_v4 = vmul.f32 %v182_v41, %v4683_v20 }
 0x1b3   :  { %825 = vrot.lane.b32.xlu1 %v4989_v51, %s4624_s4  ;;  %597 = vrot.lane.b32.xlu2 %v4989_v51, %s4622_s29  ;;  %v5029_v53 = vadd.f32 1e-05, %v202_v4 }
 0x1b5   :  { %vm357_vm10 = vweird.f32 %v5029_v53 }
 0x1b6   :  { %v4998_v55 = vpop.f32.mrf.mxu0 }
 0x1b7   :  { %v550_v1 = vadd.f32 %v4907_v62, %v4998_v55 }
 0x1bb   :  { %817 = vrot.lane.b32.xlu1 %v5002_v59, %s4623_s30 }
 0x1be   :  { %v5006_v61 = vpop.f32.mrf.mxu0 }
 0x1bf   :  { %v551_v3 = vadd.f32 %v4907_v62, %v5006_v61 }
 0x1c1   :  { %v5012_v43 = vpack.c.bf16 %v551_v3, %v550_v1 }
 0x1c3   :  { %599 = vrot.lane.b32.xlu0 %v5012_v43, %s4622_s29 }
 0x1c8   :  { %v170_v9 = vpop.xlane.xlu0 %169 }
 0x1c9   :  { %v198_v45 = vmul.f32 %v170_v9, %v4683_v20 }
 0x1cb   :  { %v214_v10 = vadd.f32 1e-05, %v198_v45 }
 0x1cd   :  { %4267 = vrsqrt.f32 %v214_v10  ;;  %vm317_vm14 = vweird.f32 %v214_v10 }
 0x1ce   :  { %4269 = vrsqrt.f32 %v216_v38 }
 0x1d0   :  { %v179_v29 = vpop.xlane.xlu2 %178 }
 0x1d3   :  { %v4268_v60 = vpop.eup %4267 }
 0x1d4   :  { %v312_v16 = vmul.f32 %v4268_v60, %v214_v10  ;;  %vm318_vm15 = vweird.f32 %v4268_v60  ;;  %v4270_v57 = vpop.eup %4269 }
 0x1d5   :  { %vm319_vm1 = vmor %vm317_vm14, %vm318_vm15  ;;  %v332_v27 = vmul.f32 %v4270_v57, %v216_v38  ;;  %vm338_vm3 = vweird.f32 %v4270_v57 }
 0x1d6   :  { %v313_v17 = vmul.f32 %v4268_v60, %v312_v16  ;;  %vm339_vm4 = vmor %vm337_vm2, %vm338_vm3 }
 0x1d7   :  { %v333_v54 = vmul.f32 %v4270_v57, %v332_v27 }
 0x1d8   :  { %v314_v21 = vmul.f32 0.5, %v313_v17  ;;  %v185_v5 = vpop.xlane.xlu2 %184  ;;  %v188_v7 = vpop.xlane.xlu1 %187 }
 0x1d9   :  { %v334_v3 = vmul.f32 0.5, %v333_v54  ;;  %v203_v10 = vmul.f32 %v185_v5, %v4683_v20  ;;  %v204_v14 = vmul.f32 %v188_v7, %v4683_v20 }
 0x1da   :  { %v315_v13 = vsub.f32 1.5, %v314_v21 }
 0x1db   :  { %v335_v45 = vsub.f32 1.5, %v334_v3  ;;  %v5044_v17 = vadd.f32 1e-05, %v203_v10  ;;  %v5046_v21 = vadd.f32 1e-05, %v204_v14 }
 0x1dc   :  { %v316_v58 = vmul.f32 %v4268_v60, %v315_v13 }
 0x1dd   :  { %v336_v16 = vmul.f32 %v4270_v57, %v335_v45  ;;  %vm367_vm14 = vweird.f32 %v5044_v17 }
 0x1de   :  { %v320_v36 = vsel %vm319_vm1, %v4268_v60, %v316_v58  ;;  %vm377_vm1 = vweird.f32 %v5046_v21 }
 0x1df   :  { %v390_v26 = vmul.f32 %v320_v36, %v4911_v37  ;;  %v201_v37 = vmul.f32 %v179_v29, %v4683_v20  ;;  %v340_v36 = vsel %vm339_vm4, %v4270_v57, %v336_v16 }
 0x1e1   :  { %v407_v25 = vmul.f32 %v4847_v11, %v390_v26  ;;  %v5027_v49 = vadd.f32 1e-05, %v201_v37 }
 0x1e3   :  { %v424_v52 = vadd.f32 %v4854_v24, %v407_v25  ;;  %4271 = vrsqrt.f32 %v5027_v49  ;;  %vm347_vm8 = vweird.f32 %v5027_v49 }
 0x1e4   :  { %4273 = vrsqrt.f32 %v5029_v53 }
 0x1e5   :  { %v435_v34 = vpack.c.bf16 %v424_v52, %v423_v31  ;;  %v392_v31 = vmul.f32 %v340_v36, %v4881_v63 }
 0x1e7   :  { %3991 = vmatmul.msk.bf16.gmra.mxu0 %vm37_vm0, %v435_v34 }
 0x1e9   :  { %v5034_v8 = vpop.eup %4271 }
 0x1ea   :  { %v5036_v9 = vpop.eup %4273  ;;  %v342_v35 = vmul.f32 %v5034_v8, %v5027_v49  ;;  %vm348_vm9 = vweird.f32 %v5034_v8 }
 0x1eb   :  { %v352_v15 = vmul.f32 %v5036_v9, %v5029_v53  ;;  %vm358_vm11 = vweird.f32 %v5036_v9  ;;  %vm5089_vm12 = vmor %vm347_vm8, %vm348_vm9  ;;  %vm1570_vm8 = vcmask 195584  }
 0x1ec   :  { %v343_v13 = vmul.f32 %v5034_v8, %v342_v35  ;;  %vm5096_vm13 = vmor %vm357_vm10, %vm358_vm11 }
 0x1ed   :  { %v353_v58 = vmul.f32 %v5036_v9, %v352_v15 }
 0x1ee   :  { %v344_v28 = vmul.f32 0.5, %v343_v13 }
 0x1ef   :  { %v354_v25 = vmul.f32 0.5, %v353_v58 }
 0x1f0   :  { %v345_v37 = vsub.f32 1.5, %v344_v28  ;;  %v530_v28 = vadd.f32 %v4959_v30, %v5006_v61 }
 0x1f8   :  { %v173_v2 = vpop.xlane.xlu0 %172 }
 0x1f9   :  { %v199_v56 = vmul.f32 %v173_v2, %v4683_v20  ;;  %v355_v2 = vsub.f32 1.5, %v354_v25  ;;  %v529_v25 = vadd.f32 %v4959_v30, %v4998_v55 }
 0x1fb   :  { %v215_v1 = vadd.f32 1e-05, %v199_v56  ;;  %v356_v3 = vmul.f32 %v5036_v9, %v355_v2 }
 0x1fd   :  { %4275 = vrsqrt.f32 %v215_v1  ;;  %vm327_vm6 = vweird.f32 %v215_v1  ;;  %v360_v35 = vsel %vm5096_vm13, %v5036_v9, %v356_v3 }
 0x1fe   :  { %4277 = vrsqrt.f32 %v5044_v17 }
 0x1ff   :  { %4279 = vrsqrt.f32 %v5046_v21 }
 0x203   :  { %v4276_v60 = vpop.eup %4275 }
 0x204   :  { %v322_v19 = vmul.f32 %v4276_v60, %v215_v1  ;;  %vm328_vm5 = vweird.f32 %v4276_v60  ;;  %v5063_v57 = vpop.eup %4277 }
 0x205   :  { %vm329_vm7 = vmor %vm327_vm6, %vm328_vm5  ;;  %v5067_v63 = vpop.eup %4279  ;;  %vm368_vm15 = vweird.f32 %v5063_v57  ;;  %vm603_vm5 = vcmask 64512   ;;  %vm657_vm6 = vcmask 523264  }
 0x206   :  { %v323_v22 = vmul.f32 %v4276_v60, %v322_v19  ;;  %v372_v49 = vmul.f32 %v5067_v63, %v5046_v21  ;;  %v394_v19 = vmul.f32 %v360_v35, %v4896_v23  ;;  %vm378_vm2 = vweird.f32 %v5067_v63  ;;  %vm5137_vm3 = vmor %vm367_vm14, %vm368_vm15 }
 0x207   :  { %vm379_vm4 = vmor %vm377_vm1, %vm378_vm2 }
 0x208   :  { %v324_v26 = vmul.f32 0.5, %v323_v22  ;;  %v373_v14 = vmul.f32 %v5067_v63, %v372_v49 }
 0x20a   :  { %v325_v32 = vsub.f32 1.5, %v324_v26  ;;  %v374_v15 = vmul.f32 0.5, %v373_v14 }
 0x20b   :  { %v5052_v33 = vpop.permute.xlu0 %564 }
 0x20c   :  { %v326_v52 = vmul.f32 %v4276_v60, %v325_v32  ;;  %v569_v34 = vadd.f32 %v5052_v33, %v4981_v0  ;;  %v570_v38 = vadd.f32 %v5052_v33, %v4983_v46  ;;  %v567_v29 = vadd.f32 %v5052_v33, %v4955_v50 }
 0x20d   :  { %v568_v41 = vadd.f32 %v5052_v33, %v4961_v39  ;;  %v409_v46 = vmul.f32 %v4847_v11, %v392_v31  ;;  %v346_v50 = vmul.f32 %v5034_v8, %v345_v37  ;;  %v362_v39 = vmul.f32 %v5063_v57, %v5044_v17 }
 0x20e   :  { %v330_v4 = vsel %vm329_vm7, %v4276_v60, %v326_v52  ;;  %v5065_v27 = vpack.c.bf16 %v570_v38, %v569_v34  ;;  %v571_v16 = vadd.f32 %v5052_v33, %v4998_v55  ;;  %v572_v9 = vadd.f32 %v5052_v33, %v5006_v61 }
 0x20f   :  { %v5069_v54 = vpack.c.bf16 %v568_v41, %v567_v29  ;;  %v391_v0 = vmul.f32 %v330_v4, %v4942_v40  ;;  %v426_v1 = vadd.f32 %v4854_v24, %v409_v46  ;;  %v350_v45 = vsel %vm5089_vm12, %v5034_v8, %v346_v50 }
 0x210   :  { %760 = vrot.lane.b32.xlu1 %v5065_v27, %s4621_s28  ;;  %v363_v10 = vmul.f32 %v5063_v57, %v362_v39  ;;  %v393_v8 = vmul.f32 %v350_v45, %v4919_v47  ;;  %v375_v58 = vsub.f32 1.5, %v374_v15  ;;  %v5122_v36 = vpack.c.bf16 %v572_v9, %v571_v16 }
 0x211   :  { %976 = vrot.lane.b32.xlu2 %v5069_v54, %s4625_s5  ;;  %758 = vrot.lane.b32.xlu0 %v5069_v54, %s4621_s28  ;;  %v408_v40 = vmul.f32 %v4847_v11, %v391_v0  ;;  %v411_v47 = vmul.f32 %v4847_v11, %v394_v19  ;;  %v5152_v38 = vpack.c.bf16 %v530_v28, %v529_v25  ;;  %vm1561_vm7 = vcmask 130048  }
 0x212   :  { %v364_v60 = vmul.f32 0.5, %v363_v10  ;;  %v410_v13 = vmul.f32 %v4847_v11, %v393_v8  ;;  %v376_v21 = vmul.f32 %v5067_v63, %v375_v58 }
 0x213   :  { %v425_v56 = vadd.f32 %v4854_v24, %v408_v40  ;;  %v428_v32 = vadd.f32 %v4854_v24, %v411_v47 }
 0x214   :  { %v365_v22 = vsub.f32 1.5, %v364_v60  ;;  %v427_v23 = vadd.f32 %v4854_v24, %v410_v13  ;;  %v380_v34 = vsel %vm379_vm4, %v5067_v63, %v376_v21 }
 0x215   :  { %v436_v7 = vpack.c.bf16 %v426_v1, %v425_v56  ;;  %v396_v61 = vmul.f32 %v380_v34, %v4933_v6  ;;  %v5209_v49 = vpop.permute.xlu1 %595 }
 0x216   :  { %v366_v17 = vmul.f32 %v5063_v57, %v365_v22  ;;  %v437_v31 = vpack.c.bf16 %v428_v32, %v427_v23  ;;  %v5233_v35 = vpop.permute.xlu0 %823 }
 0x217   :  { %3992 = vmatmul.msk.bf16.gmra.mxu0 %vm37_vm0, %v436_v7  ;;  %v413_v41 = vmul.f32 %v4847_v11, %v396_v61 }
 0x218   :  { %1039 = vrot.lane.b32.xlu1 %v4989_v51, %s4626_s6  ;;  %v370_v52 = vsel %vm5137_vm3, %v5063_v57, %v366_v17 }
 0x219   :  { %1251 = vrot.lane.b32.xlu2 %v4971_v42, %s4627_s7  ;;  %978 = vrot.lane.b32.xlu0 %v5065_v27, %s4625_s5  ;;  %v395_v55 = vmul.f32 %v370_v52, %v4922_v48  ;;  %v430_v48 = vadd.f32 %v4854_v24, %v413_v41 }
 0x21b   :  { %v412_v29 = vmul.f32 %v4847_v11, %v395_v55 }
 0x21d   :  { %v429_v37 = vadd.f32 %v4854_v24, %v412_v29 }
 0x21f   :  { %v438_v0 = vpack.c.bf16 %v430_v48, %v429_v37 }
 0x220   :  { %980 = vrot.lane.b32.xlu1 %v5122_v36, %s4625_s5 }
 0x221   :  { %827 = vrot.lane.b32.xlu2 %v5012_v43, %s4624_s4  ;;  %1253 = vrot.lane.b32.xlu0 %v4989_v51, %s4627_s7  ;;  %v499_v51 = vpop.f32.mrf.mxu0 }
 0x222   :  { %v573_v11 = vadd.f32 %v5052_v33, %v499_v51  ;;  %v552_v63 = vadd.f32 %v4907_v62, %v499_v51 }
 0x225   :  { %v5227_v14 = vpop.permute.xlu1 %825 }
 0x227   :  { %3993 = vmatmul.msk.bf16.gmra.mxu0 %vm37_vm0, %v437_v31 }
 0x228   :  { %1243 = vrot.lane.b32.xlu1 %v4973_v44, %s4628_s8 }
 0x229   :  { %762 = vrot.lane.b32.xlu2 %v5122_v36, %s4621_s28  ;;  %819 = vrot.lane.b32.xlu0 %v5152_v38, %s4623_s30  ;;  %v501_v57 = vpop.f32.mrf.mxu0 }
 0x22a   :  { %v574_v6 = vadd.f32 %v5052_v33, %v501_v57  ;;  %v553_v4 = vadd.f32 %v4907_v62, %v501_v57  ;;  %v532_v24 = vadd.f32 %v4959_v30, %v501_v57 }
 0x22c   :  { %v5176_v46 = vpack.c.bf16 %v574_v6, %v573_v11  ;;  %v590_v2 = vpack.c.bf16 %v553_v4, %v552_v63 }
 0x22d   :  { %v5240_v60 = vpop.permute.xlu1 %817 }
 0x230   :  { %1031 = vrot.lane.b32.xlu1 %v5002_v59, %s4629_s10 }
 0x231   :  { %1255 = vrot.lane.b32.xlu2 %v5012_v43, %s4627_s7  ;;  %1041 = vrot.lane.b32.xlu0 %v5012_v43, %s4626_s6  ;;  %v531_v43 = vadd.f32 %v4959_v30, %v499_v51 }
 0x233   :  { %v5198_v40 = vpack.c.bf16 %v532_v24, %v531_v43 }
 0x235   :  { %v600_v15 = vpop.permute.xlu0 %599 }
 0x236   :  { %v623_v31 = vsel %vm603_vm5, %v600_v15, 0 }
 0x237   :  { %3994 = vmatmul.msk.bf16.gmra.mxu0 %vm37_vm0, %v438_v0 }
 0x238   :  { %764 = vrot.lane.b32.xlu1 %v5176_v46, %s4621_s28 }
 0x239   :  { %601 = vrot.lane.b32.xlu2 %v590_v2, %s4622_s29  ;;  %829 = vrot.lane.b32.xlu0 %v590_v2, %s4624_s4 }
 0x240   :  { %1043 = vrot.lane.b32.xlu1 %v590_v2, %s4626_s6 }
 0x241   :  { %1029 = vrot.lane.b32.xlu2 %v4973_v44, %s4629_s10  ;;  %1037 = vrot.lane.b32.xlu0 %v4971_v42, %s4626_s6  ;;  %v5204_v42 = vpop.permute.xlu2 %815 }
 0x249   :  { %1247 = vrot.lane.b32.xlu2 %v5152_v38, %s4628_s8  ;;  %1245 = vrot.lane.b32.xlu0 %v5002_v59, %s4628_s8  ;;  %v598_v50 = vpop.permute.xlu2 %597 }
 0x24a   :  { %v620_v4 = vsel %vm603_vm5, %v598_v50, 0 }
 0x251   :  { %982 = vrot.lane.b32.xlu2 %v5176_v46, %s4625_s5  ;;  %1033 = vrot.lane.b32.xlu0 %v5152_v38, %s4629_s10 }
 0x259   :  { %1249 = vrot.lane.b32.xlu2 %v5198_v40, %s4628_s8  ;;  %821 = vrot.lane.b32.xlu0 %v5198_v40, %s4623_s30 }
 0x261   :  { %1257 = vrot.lane.b32.xlu0 %v590_v2, %s4627_s7  ;;  %v617_v2 = vsel %vm603_vm5, %v5209_v49, 0 }
 0x264   :  { %v5207_v39 = vpop.f32.mrf.mxu0 }
 0x265   :  { %v533_v1 = vadd.f32 %v4959_v30, %v5207_v39  ;;  %v554_v3 = vadd.f32 %v4907_v62, %v5207_v39 }
 0x269   :  { %1035 = vrot.lane.b32.xlu0 %v5198_v40, %s4629_s10 }
 0x26b   :  { %v5213_v53 = vpop.permute.xlu2 %976 }
 0x26c   :  { %v5215_v56 = vpop.f32.mrf.mxu0 }
 0x26d   :  { %v534_v5 = vadd.f32 %v4959_v30, %v5215_v56  ;;  %v555_v7 = vadd.f32 %v4907_v62, %v5215_v56 }
 0x26f   :  { %v1583_v45 = vpack.c.bf16 %v555_v7, %v554_v3  ;;  %v5225_v10 = vpack.c.bf16 %v534_v5, %v533_v1 }
 0x271   :  { %1817 = vrot.lane.b32.xlu1 %v1583_v45, %s4624_s4  ;;  %1809 = vrot.lane.b32.xlu2 %v5225_v10, %s4623_s30 }
 0x272   :  { %1591 = vrot.lane.b32.xlu0 %v1583_v45, %s4622_s29 }
 0x273   :  { %v5235_v8 = vpop.permute.xlu2 %1251 }
 0x279   :  { %2245 = vrot.lane.b32.xlu1 %v1583_v45, %s4627_s7  ;;  %2023 = vrot.lane.b32.xlu2 %v5225_v10, %s4629_s10 }
 0x27a   :  { %2031 = vrot.lane.b32.xlu0 %v1583_v45, %s4626_s6 }
 0x27b   :  { %v828_v16 = vpop.permute.xlu2 %827 }
 0x27c   :  { %v850_v15 = vsel %vm603_vm5, %v828_v16, 0  ;;  %v847_v16 = vsel %vm603_vm5, %v5227_v14, 0  ;;  %v844_v14 = vsel %vm603_vm5, %v5233_v35, 0 }
 0x282   :  { %2237 = vrot.lane.b32.xlu0 %v5225_v10, %s4628_s8  ;;  %v761_v9 = vpop.permute.xlu1 %760 }
 0x283   :  { %v763_v19 = vpop.permute.xlu2 %762  ;;  %v759_v13 = vpop.permute.xlu0 %758 }
 0x28a   :  { %v5245_v22 = vpop.permute.xlu1 %1039 }
 0x28b   :  { %v5247_v58 = vpop.permute.xlu2 %1255  ;;  %v5249_v47 = vpop.permute.xlu0 %978 }
 0x292   :  { %v5251_v23 = vpop.permute.xlu1 %980 }
 0x293   :  { %v602_v17 = vpop.permute.xlu2 %601  ;;  %v5253_v26 = vpop.permute.xlu0 %1253 }
 0x294   :  { %v5255_v21 = vpop.f32.mrf.mxu0  ;;  %v626_v28 = vsel %vm603_vm5, %v602_v17, 0 }
 0x295   :  { %632 = vmatpush.bf16.xpose.msra.mxu1 %v626_v28  ;;  %v535_v52 = vadd.f32 %v4959_v30, %v5255_v21  ;;  %v556_v34 = vadd.f32 %v4907_v62, %v5255_v21 }
 0x29a   :  { %v5258_v32 = vpop.permute.xlu1 %1243 }
 0x29b   :  { %v5260_v25 = vpop.permute.xlu0 %819  ;;  %v5281_v37 = vpop.permute.xlu2 %1029 }
 0x29c   :  { %v5262_v51 = vpop.f32.mrf.mxu0 }
 0x29d   :  { %v536_v55 = vadd.f32 %v4959_v30, %v5262_v51  ;;  %v557_v61 = vadd.f32 %v4907_v62, %v5262_v51  ;;  %633 = vmatpush.bf16.xpose.msra.mxu1 %v623_v31 }
 0x29f   :  { %v1584_v29 = vpack.c.bf16 %v557_v61, %v556_v34  ;;  %v5273_v41 = vpack.c.bf16 %v536_v55, %v535_v52 }
 0x2a1   :  { %1593 = vrot.lane.b32.xlu1 %v1584_v29, %s4622_s29  ;;  %1819 = vrot.lane.b32.xlu2 %v1584_v29, %s4624_s4 }
 0x2a2   :  { %1811 = vrot.lane.b32.xlu0 %v5273_v41, %s4623_s30  ;;  %v5279_v57 = vpop.permute.xlu1 %1031 }
 0x2a3   :  { %v1042_v48 = vpop.permute.xlu0 %1041  ;;  %v5295_v43 = vpop.permute.xlu2 %1247 }
 0x2a4   :  { %v5283_v6 = vpop.f32.mrf.mxu0 }
 0x2a5   :  { %634 = vmatpush.bf16.xpose.msra.mxu1 %v620_v4  ;;  %v558_v50 = vadd.f32 %v4907_v62, %v5283_v6 }
 0x2a9   :  { %2025 = vrot.lane.b32.xlu1 %v5273_v41, %s4629_s10  ;;  %2247 = vrot.lane.b32.xlu2 %v1584_v29, %s4627_s7 }
 0x2aa   :  { %2033 = vrot.lane.b32.xlu0 %v1584_v29, %s4626_s6  ;;  %v765_v11 = vpop.permute.xlu1 %764 }
 0x2ab   :  { %v830_v63 = vpop.permute.xlu0 %829  ;;  %786 = vmatpush.bf16.msra.mxu2 %v765_v11  ;;  %v983_v17 = vpop.permute.xlu2 %982 }
 0x2ac   :  { %v5290_v0 = vpop.f32.mrf.mxu0  ;;  %v853_v24 = vsel %vm603_vm5, %v830_v63, 0 }
 0x2ad   :  { %v559_v1 = vadd.f32 %v4907_v62, %v5290_v0  ;;  %635 = vmatpush.bf16.xpose.msra.mxu1 %v617_v2  ;;  %859 = vmatpush.bf16.xpose.msra.mxu3 %v853_v24  ;;  %v538_v5 = vadd.f32 %v4959_v30, %v5290_v0 }
 0x2af   :  { %787 = vmatpush.bf16.msra.mxu2 %v763_v19  ;;  %v1585_v3 = vpack.c.bf16 %v559_v1, %v558_v50  ;;  %v537_v19 = vadd.f32 %v4959_v30, %v5283_v6 }
 0x2b1   :  { %1821 = vrot.lane.b32.xlu1 %v1585_v3, %s4624_s4  ;;  %2239 = vrot.lane.b32.xlu2 %v5273_v41, %s4628_s8  ;;  %v5315_v28 = vpack.c.bf16 %v538_v5, %v537_v19 }
 0x2b2   :  { %1595 = vrot.lane.b32.xlu0 %v1585_v3, %s4622_s29  ;;  %v1044_v49 = vpop.permute.xlu1 %1043 }
 0x2b3   :  { %788 = vmatpush.bf16.msra.mxu2 %v761_v9  ;;  %v1067_v7 = vsel %vm603_vm5, %v1044_v49, 0  ;;  %v1064_v9 = vsel %vm603_vm5, %v1042_v48, 0 }
 0x2b4   :  { %3995 = vmatmul.msk.bf16.vlgmr.msra.gmra.mxu1 %vm603_vm5, %v4973_v44  ;;  %v5310_v45 = vpop.f32.mrf.mxu0 }
 0x2b5   :  { %860 = vmatpush.bf16.xpose.msra.mxu3 %v850_v15  ;;  %1073 = vmatpush.bf16.xpose.msrb.mxu1 %v1067_v7 }
 0x2b7   :  { %789 = vmatpush.bf16.msra.mxu2 %v759_v13  ;;  %v560_v13 = vadd.f32 %v4907_v62, %v5310_v45 }
 0x2b9   :  { %2035 = vrot.lane.b32.xlu1 %v1585_v3, %s4626_s6  ;;  %1813 = vrot.lane.b32.xlu2 %v5315_v28, %s4623_s30 }
 0x2bb   :  { %1004 = vmatpush.bf16.msrb.mxu2 %v983_v17 }
 0x2bc   :  { %v5320_v44 = vpop.f32.mrf.mxu0 }
 0x2bd   :  { %v561_v31 = vadd.f32 %v4907_v62, %v5320_v44  ;;  %861 = vmatpush.bf16.xpose.msra.mxu3 %v847_v16  ;;  %1074 = vmatpush.bf16.xpose.msrb.mxu1 %v1064_v9  ;;  %v1061_v62 = vsel %vm603_vm5, %v5245_v22, 0 }
 0x2bf   :  { %1005 = vmatpush.bf16.msrb.mxu2 %v5251_v23  ;;  %v1586_v52 = vpack.c.bf16 %v561_v31, %v560_v13  ;;  %v540_v23 = vadd.f32 %v4959_v30, %v5320_v44 }
 0x2c1   :  { %1597 = vrot.lane.b32.xlu1 %v1586_v52, %s4622_s29  ;;  %2249 = vrot.lane.b32.xlu2 %v1585_v3, %s4627_s7 }
 0x2c2   :  { %2251 = vrot.lane.b32.xlu0 %v1586_v52, %s4627_s7 }
 0x2c3   :  { %1006 = vmatpush.bf16.msrb.mxu2 %v5249_v47  ;;  %v1038_v47 = vpop.permute.xlu0 %1037 }
 0x2c4   :  { %3996 = vmatmul.msk.bf16.gmra.mxu1 %vm603_vm5, %v5002_v59  ;;  %v1058_v59 = vsel %vm603_vm5, %v1038_v47, 0 }
 0x2c5   :  { %862 = vmatpush.bf16.xpose.msra.mxu3 %v844_v14  ;;  %1075 = vmatpush.bf16.xpose.msrb.mxu1 %v1061_v62 }
 0x2c7   :  { %1007 = vmatpush.bf16.msrb.mxu2 %v5213_v53  ;;  %v539_v53 = vadd.f32 %v4959_v30, %v5310_v45 }
 0x2c9   :  { %2037 = vrot.lane.b32.xlu1 %v1586_v52, %s4626_s6  ;;  %1823 = vrot.lane.b32.xlu2 %v1586_v52, %s4624_s4  ;;  %v5350_v35 = vpack.c.bf16 %v540_v23, %v539_v53 }
 0x2cb   :  { %v5352_v22 = vpop.permute.xlu0 %1245 }
 0x2cc   :  { %4003 = vmatmul.msk.bf16.vlgmr.msra.gmra.mxu3 %vm603_vm5, %v5204_v42  ;;  %v5360_v42 = vpop.permute.xlu2 %1249 }
 0x2cd   :  { %1076 = vmatpush.bf16.xpose.msrb.mxu1 %v1058_v59 }
 0x2d1   :  { %1815 = vrot.lane.b32.xlu1 %v5350_v35, %s4623_s30 }
 0x2d3   :  { %v1034_v34 = vpop.permute.xlu0 %1033 }
 0x2d4   :  { %3997 = vmatmul.msk.bf16.gmra.mxu1 %vm603_vm5, %v5152_v38  ;;  %v1810_v30 = vpop.permute.xlu2 %1809 }
 0x2db   :  { %v822_v55 = vpop.permute.xlu0 %821 }
 0x2dc   :  { %4004 = vmatmul.msk.bf16.gmra.mxu3 %vm603_vm5, %v5240_v60  ;;  %v5368_v29 = vpop.permute.xlu2 %2023 }
 0x2e3   :  { %v5366_v61 = vpop.permute.xlu0 %1257  ;;  %v1818_v60 = vpop.permute.xlu1 %1817 }
 0x2e4   :  { %3998 = vmatmul.msk.bf16.gmra.mxu1 %vm603_vm5, %v5198_v40  ;;  %v1838_v59 = vsel %vm603_vm5, %v1818_v60, 0 }
 0x2eb   :  { %v1036_v38 = vpop.permute.xlu0 %1035  ;;  %v2246_v40 = vpop.permute.xlu1 %2245 }
 0x2ec   :  { %4005 = vmatmul.msk.bf16.gmra.mxu3 %vm603_vm5, %v5260_v25 }
 0x2f3   :  { %v1592_v4 = vpop.permute.xlu0 %1591 }
 0x2f4   :  { %4011 = vmatmul.msk.bf16.vlgmr.msrb.gmra.mxu1 %vm603_vm5, %v5281_v37 }
 0x2fb   :  { %v1820_v48 = vpop.permute.xlu2 %1819  ;;  %v5377_v25 = vpop.permute.xlu0 %2031 }
 0x2fc   :  { %4006 = vmatmul.msk.bf16.gmra.mxu3 %vm603_vm5, %v822_v55  ;;  %v1841_v52 = vsel %vm603_vm5, %v1820_v48, 0 }
 0x303   :  { %v2248_v11 = vpop.permute.xlu2 %2247  ;;  %v5382_v37 = vpop.permute.xlu0 %2237 }
 0x304   :  { %4012 = vmatmul.msk.bf16.gmra.mxu1 %vm603_vm5, %v5279_v57 }
 0x30b   :  { %v5375_v63 = vpop.permute.xlu2 %2239 }
 0x313   :  { %v1594_v2 = vpop.permute.xlu1 %1593  ;;  %v5379_v24 = vpop.permute.xlu2 %1813 }
 0x314   :  { %4013 = vmatmul.msk.bf16.gmra.mxu1 %vm603_vm5, %v1034_v34  ;;  %v1812_v3 = vpop.permute.xlu0 %1811  ;;  %v1615_v34 = vsel %vm603_vm5, %v1594_v2, 0 }
 0x31b   :  { %v5384_v50 = vpop.permute.xlu1 %2025  ;;  %v2250_v1 = vpop.permute.xlu2 %2249 }
 0x31c   :  { %v2034_v7 = vpop.permute.xlu0 %2033  ;;  %v2272_v55 = vsel %vm603_vm5, %v2250_v1, 0 }
 0x323   :  { %v1822_v49 = vpop.permute.xlu1 %1821  ;;  %v1824_v5 = vpop.permute.xlu2 %1823 }
 0x324   :  { %4014 = vmatmul.msk.bf16.gmra.mxu1 %vm603_vm5, %v1036_v38  ;;  %v1847_v57 = vsel %vm603_vm5, %v1824_v5, 0  ;;  %v1844_v19 = vsel %vm603_vm5, %v1822_v49, 0  ;;  %v1596_v16 = vpop.permute.xlu0 %1595  ;;  %v1612_v49 = vsel %vm603_vm5, %v1592_v4, 0  ;;  %v2269_v5 = vsel %vm603_vm5, %v2248_v11, 0 }
 0x325   :  { %1853 = vmatpush.bf16.xpose.msrb.mxu0 %v1847_v57  ;;  %v1618_v23 = vsel %vm603_vm5, %v1596_v16, 0  ;;  %v2266_v11 = vsel %vm603_vm5, %v2246_v40, 0 }
 0x32b   :  { %v2036_v15 = vpop.permute.xlu1 %2035 }
 0x32c   :  { %v2058_v4 = vsel %vm603_vm5, %v2036_v15, 0  ;;  %v2052_v15 = vsel %vm603_vm5, %v5377_v25, 0 }
 0x32d   :  { %1854 = vmatpush.bf16.xpose.msrb.mxu0 %v1844_v19 }
 0x331   :  { %v5389_v17 = vpop.f32.mrf.mxu1 }
 0x332   :  { %v658_v9 = vsel %vm657_vm6, %v5389_v17, -inf }
 0x333   :  { %659 = vmax.xlane.f32.xlu1 %v658_v9  ;;  %v1598_v13 = vpop.permute.xlu1 %1597  ;;  %v2055_v9 = vsel %vm603_vm5, %v2034_v7, 0 }
 0x334   :  { %v1621_v31 = vsel %vm603_vm5, %v1598_v13, 0  ;;  %v2252_v62 = vpop.permute.xlu0 %2251 }
 0x335   :  { %1627 = vmatpush.bf16.xpose.msra.mxu1 %v1621_v31  ;;  %1855 = vmatpush.bf16.xpose.msrb.mxu0 %v1841_v52  ;;  %v2275_v53 = vsel %vm603_vm5, %v2252_v62, 0 }
 0x339   :  { %v5395_v14 = vpop.f32.mrf.mxu1 }
 0x33a   :  { %v661_v47 = vsel %vm657_vm6, %v5395_v14, -inf }
 0x33b   :  { %662 = vmax.xlane.f32.xlu0 %v661_v47  ;;  %v2038_v48 = vpop.permute.xlu1 %2037 }
 0x33c   :  { %v2061_v60 = vsel %vm603_vm5, %v2038_v48, 0 }
 0x33d   :  { %1628 = vmatpush.bf16.xpose.msra.mxu1 %v1618_v23  ;;  %1856 = vmatpush.bf16.xpose.msrb.mxu0 %v1838_v59 }
 0x341   :  { %v5405_v38 = vpop.f32.mrf.mxu1 }
 0x343   :  { %v1816_v52 = vpop.permute.xlu1 %1815 }
 0x344   :  { %4035 = vmatmul.msk.bf16.vlgmr.msrb.gmra.mxu0 %vm603_vm5, %v1810_v30 }
 0x345   :  { %2281 = vmatpush.bf16.xpose.msra.mxu0 %v2275_v53  ;;  %1629 = vmatpush.bf16.xpose.msra.mxu1 %v1615_v34 }
 0x349   :  { %v5416_v1 = vpop.f32.mrf.mxu1 }
 0x34d   :  { %2282 = vmatpush.bf16.xpose.msra.mxu0 %v2272_v55  ;;  %1630 = vmatpush.bf16.xpose.msra.mxu1 %v1612_v49 }
 0x34f   :  { %2027 = vrot.lane.b32.xlu0 %v5315_v28, %s4629_s10  ;;  %v5412_v30 = vpop.f32.mrf.mxu3 }
 0x350   :  { %v884_v2 = vsel %vm657_vm6, %v5412_v30, -inf }
 0x351   :  { %885 = vmax.xlane.f32.xlu1 %v884_v2  ;;  %v5427_v16 = vpop.f32.mrf.mxu1 }
 0x354   :  { %4027 = vmatmul.msk.bf16.vlgmr.msra.gmra.mxu1 %vm603_vm5, %v5225_v10  ;;  %4036 = vmatmul.msk.bf16.gmra.mxu0 %vm603_vm5, %v1812_v3  ;;  %v664_v3 = vsel %vm657_vm6, %v5405_v38, -inf }
 0x355   :  { %2067 = vmatpush.bf16.xpose.msrb.mxu1 %v2061_v60  ;;  %2283 = vmatpush.bf16.xpose.msra.mxu0 %v2269_v5 }
 0x357   :  { %v5423_v57 = vpop.f32.mrf.mxu3 }
 0x358   :  { %v887_v19 = vsel %vm657_vm6, %v5423_v57, -inf }
 0x359   :  { %888 = vmax.xlane.f32.xlu2 %v887_v19  ;;  %v5438_v40 = vpop.f32.mrf.mxu1 }
 0x35a   :  { %v673_v62 = vsel %vm657_vm6, %v5438_v40, -inf }
 0x35d   :  { %2068 = vmatpush.bf16.xpose.msrb.mxu1 %v2058_v4  ;;  %2284 = vmatpush.bf16.xpose.msra.mxu0 %v2266_v11 }
 0x35f   :  { %v5430_v10 = vpop.f32.mrf.mxu3 }
 0x360   :  { %v890_v5 = vsel %vm657_vm6, %v5430_v10, -inf }
 0x361   :  { %665 = vmax.xlane.f32.xlu2 %v664_v3  ;;  %v5448_v31 = vpop.f32.mrf.mxu1 }
 0x364   :  { %4028 = vmatmul.msk.bf16.gmra.mxu1 %vm603_vm5, %v5273_v41  ;;  %4037 = vmatmul.msk.bf16.gmra.mxu0 %vm603_vm5, %v5379_v24  ;;  %v670_v24 = vsel %vm657_vm6, %v5427_v16, -inf }
 0x365   :  { %2069 = vmatpush.bf16.xpose.msrb.mxu1 %v2055_v9 }
 0x367   :  { %v5442_v7 = vpop.f32.mrf.mxu3 }
 0x368   :  { %v893_v13 = vsel %vm657_vm6, %v5442_v7, -inf }
 0x369   :  { %894 = vmax.xlane.f32.xlu2 %v893_v13  ;;  %v5463_v23 = vpop.f32.mrf.mxu1 }
 0x36a   :  { %2241 = vrot.lane.b32.xlu1 %v5315_v28, %s4628_s8  ;;  %v679_v53 = vsel %vm657_vm6, %v5463_v23, -inf }
 0x36d   :  { %2070 = vmatpush.bf16.xpose.msrb.mxu1 %v2052_v15 }
 0x36f   :  { %v5450_v41 = vpop.f32.mrf.mxu3 }
 0x370   :  { %v896_v47 = vsel %vm657_vm6, %v5450_v41, -inf }
 0x371   :  { %671 = vmax.xlane.f32.xlu2 %v670_v24 }
 0x374   :  { %4029 = vmatmul.msk.bf16.gmra.mxu1 %vm603_vm5, %v5315_v28  ;;  %4038 = vmatmul.msk.bf16.gmra.mxu0 %vm603_vm5, %v1816_v52  ;;  %v5469_v28 = vpop.f32.mrf.mxu1 }
 0x375   :  { %v1098_v55 = vsel %vm657_vm6, %v5469_v28, -inf }
 0x377   :  { %v5457_v25 = vpop.f32.mrf.mxu3 }
 0x378   :  { %v899_v2 = vsel %vm657_vm6, %v5457_v25, -inf }
 0x379   :  { %674 = vmax.xlane.f32.xlu0 %v673_v62  ;;  %897 = vmax.xlane.f32.xlu2 %v896_v47 }
 0x37c   :  { %v5481_v49 = vpop.f32.mrf.mxu1 }
 0x37d   :  { %v1101_v60 = vsel %vm657_vm6, %v5481_v49, -inf }
 0x37f   :  { %v5465_v59 = vpop.f32.mrf.mxu3 }
 0x381   :  { %680 = vmax.xlane.f32.xlu2 %v679_v53 }
 0x384   :  { %4030 = vmatmul.msk.bf16.gmra.mxu1 %vm603_vm5, %v5350_v35  ;;  %4051 = vmatmul.msk.bf16.vlgmr.msra.gmra.mxu0 %vm603_vm5, %v5382_v37  ;;  %v667_v37 = vsel %vm657_vm6, %v5416_v1, -inf }
 0x387   :  { %v5475_v34 = vpop.f32.mrf.mxu3 }
 0x388   :  { %v905_v48 = vsel %vm657_vm6, %v5475_v34, -inf }
 0x389   :  { %1099 = vmax.xlane.f32.xlu2 %v1098_v55  ;;  %906 = vmax.xlane.f32.xlu0 %v905_v48 }
 0x391   :  { %1102 = vmax.xlane.f32.xlu0 %v1101_v60 }
 0x394   :  { %891 = vmax.xlane.f32.xlu1 %v890_v5  ;;  %4043 = vmatmul.msk.bf16.vlgmr.msrb.gmra.mxu1 %vm603_vm5, %v5368_v29  ;;  %v676_v29 = vsel %vm657_vm6, %v5448_v31, -inf }
 0x395   :  { %4052 = vmatmul.msk.bf16.gmra.mxu0 %vm603_vm5, %v5375_v63 }
 0x39c   :  { %668 = vmax.xlane.f32.xlu1 %v667_v37 }
 0x3a4   :  { %900 = vmax.xlane.f32.xlu1 %v899_v2  ;;  %4044 = vmatmul.msk.bf16.gmra.mxu1 %vm603_vm5, %v5384_v50  ;;  %v902_v50 = vsel %vm657_vm6, %v5465_v59, -inf }
 0x3a6   :  { %v660_v4 = vpop.xlane.xlu1 %659 }
 0x3a7   :  { %v682_v11 = vsub.f32 %v5389_v17, %v660_v4 }
 0x3a9   :  { %v690_v19 = vmul.f32 1.442695, %v682_v11 }
 0x3ab   :  { %4281 = vpow2.f32 %v690_v19 }
 0x3ac   :  { %677 = vmax.xlane.f32.xlu1 %v676_v29 }
 0x3ae   :  { %v663_v63 = vpop.xlane.xlu0 %662 }
 0x3af   :  { %v683_v9 = vsub.f32 %v5395_v14, %v663_v63 }
 0x3b1   :  { %v5501_v3 = vpop.eup %4281  ;;  %v692_v15 = vmul.f32 1.442695, %v683_v9 }
 0x3b2   :  { %v706_v13 = vsel %vm657_vm6, %v5501_v3, 0.0 }
 0x3b3   :  { %4283 = vpow2.f32 %v692_v15  ;;  %707 = vadd.xlane.f32.xlu2 %v706_v13 }
 0x3b4   :  { %903 = vmax.xlane.f32.xlu1 %v902_v50 }
 0x3b9   :  { %v5507_v17 = vpop.eup %4283 }
 0x3ba   :  { %v709_v24 = vsel %vm657_vm6, %v5507_v17, 0.0 }
 0x3bb   :  { %710 = vadd.xlane.f32.xlu2 %v709_v24 }
 0x3c1   :  { %v2028_v52 = vpop.permute.xlu0 %2027 }
 0x3c2   :  { %4045 = vmatmul.msk.bf16.gmra.mxu1 %vm603_vm5, %v2028_v52 }
 0x3c4   :  { %v886_v14 = vpop.xlane.xlu1 %885 }
 0x3c5   :  { %v908_v62 = vsub.f32 %v5412_v30, %v886_v14 }
 0x3c7   :  { %v916_v47 = vmul.f32 1.442695, %v908_v62 }
 0x3c9   :  { %4285 = vpow2.f32 %v916_v47 }
 0x3cc   :  { %v889_v53 = vpop.xlane.xlu2 %888 }
 0x3cd   :  { %v909_v55 = vsub.f32 %v5423_v57, %v889_v53 }
 0x3cf   :  { %v5514_v48 = vpop.eup %4285  ;;  %v918_v60 = vmul.f32 1.442695, %v909_v55 }
 0x3d0   :  { %v932_v5 = vsel %vm657_vm6, %v5514_v48, 0.0 }
 0x3d1   :  { %4287 = vpow2.f32 %v918_v60  ;;  %933 = vadd.xlane.f32.xlu1 %v932_v5 }
 0x3d4   :  { %v666_v37 = vpop.xlane.xlu2 %665 }
 0x3d5   :  { %v684_v2 = vsub.f32 %v5405_v38, %v666_v37 }
 0x3d7   :  { %v5519_v4 = vpop.eup %4287  ;;  %v694_v11 = vmul.f32 1.442695, %v684_v2 }
 0x3d8   :  { %v935_v30 = vsel %vm657_vm6, %v5519_v4, 0.0 }
 0x3d9   :  { %4289 = vpow2.f32 %v694_v11  ;;  %936 = vadd.xlane.f32.xlu0 %v935_v30 }
 0x3dc   :  { %v2242_v57 = vpop.permute.xlu1 %2241  ;;  %v895_v19 = vpop.xlane.xlu2 %894 }
 0x3dd   :  { %v911_v29 = vsub.f32 %v5442_v7, %v895_v19  ;;  %4053 = vmatmul.msk.bf16.gmra.mxu0 %vm603_vm5, %v2242_v57 }
 0x3df   :  { %v5525_v63 = vpop.eup %4289  ;;  %v922_v9 = vmul.f32 1.442695, %v911_v29  ;;  %v5547_v29 = vpop.f32.mrf.mxu1 }
 0x3e0   :  { %v712_v38 = vsel %vm657_vm6, %v5525_v63, 0.0 }
 0x3e1   :  { %4291 = vpow2.f32 %v922_v9  ;;  %713 = vadd.xlane.f32.xlu0 %v712_v38 }
 0x3e4   :  { %v672_v62 = vpop.xlane.xlu2 %671 }
 0x3e7   :  { %v5529_v15 = vpop.eup %4291 }
 0x3e8   :  { %v941_v13 = vsel %vm657_vm6, %v5529_v15, 0.0 }
 0x3e9   :  { %942 = vadd.xlane.f32.xlu0 %v941_v13 }
 0x3ec   :  { %v675_v50 = vpop.xlane.xlu0 %674  ;;  %v898_v55 = vpop.xlane.xlu2 %897 }
 0x3ed   :  { %v687_v24 = vsub.f32 %v5438_v40, %v675_v50  ;;  %v686_v40 = vsub.f32 %v5427_v16, %v672_v62 }
 0x3ef   :  { %v700_v7 = vmul.f32 1.442695, %v687_v24  ;;  %v698_v19 = vmul.f32 1.442695, %v686_v40  ;;  %v1104_v40 = vsel %vm657_vm6, %v5547_v29, -inf }
 0x3f1   :  { %4293 = vpow2.f32 %v700_v7 }
 0x3f4   :  { %v5545_v57 = vpop.xlane.xlu2 %680 }
 0x3f7   :  { %v5534_v52 = vpop.eup %4293 }
 0x3f8   :  { %v721_v14 = vsel %vm657_vm6, %v5534_v52, 0.0 }
 0x3f9   :  { %722 = vadd.xlane.f32.xlu0 %v721_v14 }
 0x3fc   :  { %v5555_v24 = vpop.xlane.xlu2 %1099 }
 0x407   :  { %v892_v47 = vpop.xlane.xlu1 %891 }
 0x408   :  { %v910_v53 = vsub.f32 %v5430_v10, %v892_v47  ;;  %v5562_v47 = vpop.f32.mrf.mxu1 }
 0x40a   :  { %v920_v60 = vmul.f32 1.442695, %v910_v53 }
 0x40c   :  { %4295 = vpow2.f32 %v920_v60 }
 0x40f   :  { %v669_v5 = vpop.xlane.xlu1 %668 }
 0x410   :  { %v685_v37 = vsub.f32 %v5416_v1, %v669_v5  ;;  %v912_v1 = vsub.f32 %v5450_v41, %v898_v55 }
 0x412   :  { %v5540_v2 = vpop.eup %4295  ;;  %v696_v11 = vmul.f32 1.442695, %v685_v37  ;;  %v924_v50 = vmul.f32 1.442695, %v912_v1 }
 0x413   :  { %v938_v30 = vsel %vm657_vm6, %v5540_v2, 0.0 }
 0x414   :  { %4297 = vpow2.f32 %v696_v11  ;;  %939 = vadd.xlane.f32.xlu2 %v938_v30  ;;  %v5578_v30 = vpop.f32.mrf.mxu1 }
 0x415   :  { %4299 = vpow2.f32 %v698_v19 }
 0x417   :  { %v901_v10 = vpop.xlane.xlu1 %900 }
 0x418   :  { %v913_v9 = vsub.f32 %v5457_v25, %v901_v10 }
 0x41a   :  { %v5550_v38 = vpop.eup %4297  ;;  %v926_v16 = vmul.f32 1.442695, %v913_v9  ;;  %v1107_v9 = vsel %vm657_vm6, %v5562_v47, -inf }
 0x41b   :  { %v715_v13 = vsel %vm657_vm6, %v5550_v38, 0.0  ;;  %v5557_v14 = vpop.eup %4299 }
 0x41c   :  { %4301 = vpow2.f32 %v926_v16  ;;  %716 = vadd.xlane.f32.xlu1 %v715_v13  ;;  %v718_v53 = vsel %vm657_vm6, %v5557_v14, 0.0  ;;  %v5582_v16 = vpop.f32.mrf.mxu1 }
 0x41d   :  { %4303 = vpow2.f32 %v924_v50 }
 0x41f   :  { %v678_v7 = vpop.xlane.xlu1 %677 }
 0x420   :  { %v688_v62 = vsub.f32 %v5448_v31, %v678_v7 }
 0x422   :  { %v5560_v25 = vpop.eup %4301  ;;  %v702_v41 = vmul.f32 1.442695, %v688_v62  ;;  %v1281_v62 = vsel %vm603_vm5, %v5366_v61, 0  ;;  %v1275_v61 = vsel %vm603_vm5, %v5253_v26, 0  ;;  %v5613_v26 = vpop.xlane.xlu0 %906 }
 0x423   :  { %v947_v55 = vsel %vm657_vm6, %v5560_v25, 0.0  ;;  %v5568_v5 = vpop.eup %4303 }
 0x424   :  { %4305 = vpow2.f32 %v702_v41  ;;  %719 = vadd.xlane.f32.xlu1 %v718_v53  ;;  %948 = vadd.xlane.f32.xlu2 %v947_v55  ;;  %v944_v31 = vsel %vm657_vm6, %v5568_v5, 0.0  ;;  %v1110_v41 = vsel %vm657_vm6, %v5578_v30, -inf  ;;  %v5591_v53 = vpop.f32.mrf.mxu1  ;;  %v1272_v55 = vsel %vm603_vm5, %v5235_v8, 0 }
 0x425   :  { %v1113_v8 = vsel %vm657_vm6, %v5582_v16, -inf }
 0x426   :  { %v708_v60 = vpop.xlane.xlu2 %707 }
 0x427   :  { %4307 = vrcp.f32 %v708_v60 }
 0x42a   :  { %v5570_v37 = vpop.eup %4305  ;;  %v5617_v60 = vpop.xlane.xlu0 %1102 }
 0x42b   :  { %v724_v11 = vsel %vm657_vm6, %v5570_v37, 0.0 }
 0x42c   :  { %945 = vadd.xlane.f32.xlu1 %v944_v31  ;;  %1105 = vmax.xlane.f32.xlu2 %v1104_v40  ;;  %v689_v31 = vsub.f32 %v5463_v23, %v5545_v57 }
 0x42d   :  { %725 = vadd.xlane.f32.xlu0 %v724_v11  ;;  %v4308_v10 = vpop.eup %4307  ;;  %v904_v11 = vpop.xlane.xlu1 %903 }
 0x42e   :  { %v711_v19 = vpop.xlane.xlu2 %710  ;;  %v738_v13 = vmul.f32 %v4308_v10, %v5501_v3  ;;  %v1278_v3 = vsel %vm603_vm5, %v5247_v58, 0  ;;  %v5609_v58 = vpop.f32.mrf.mxu1  ;;  %v704_v40 = vmul.f32 1.442695, %v689_v31 }
 0x42f   :  { %4309 = vrcp.f32 %v711_v19  ;;  %7452 = vst [vmem:[#allocation5_spill] sm:$0xff] %v5609_v58 }
 0x430   :  { %4311 = vpow2.f32 %v704_v40  ;;  %v914_v40 = vsub.f32 %v5465_v59, %v904_v11 }
 0x434   :  { %1108 = vmax.xlane.f32.xlu2 %v1107_v9 }
 0x435   :  { %v4310_v1 = vpop.eup %4309 }
 0x436   :  { %v739_v50 = vmul.f32 %v4310_v1, %v5507_v17  ;;  %v1116_v17 = vsel %vm657_vm6, %v5591_v53, -inf  ;;  %v5631_v9 = vpop.eup %4311  ;;  %v5635_v57 = vpop.f32.mrf.mxu1 }
 0x437   :  { %v727_v23 = vsel %vm657_vm6, %v5631_v9, 0.0 }
 0x438   :  { %v746_v7 = vpack.c.bf16 %v739_v50, %v738_v13 }
 0x43a   :  { %3999 = vmatmul.msk.bf16.vlgmr.msra.gmra.mxu2 %vm657_vm6, %v746_v7 }
 0x43b   :  { %1287 = vmatpush.bf16.xpose.msra.mxu2 %v1281_v62 }
 0x43c   :  { %1111 = vmax.xlane.f32.xlu2 %v1110_v41  ;;  %v5641_v41 = vpop.f32.mrf.mxu0 }
 0x441   :  { %2029 = vrot.lane.b32.xlu0 %v5350_v35, %s4629_s10 }
 0x443   :  { %1288 = vmatpush.bf16.xpose.msra.mxu2 %v1278_v3 }
 0x444   :  { %1117 = vmax.xlane.f32.xlu2 %v1116_v17  ;;  %v5625_v10 = vpop.xlane.xlu1 %933 }
 0x445   :  { %2243 = vrot.lane.b32.xlu1 %v5350_v35, %s4628_s8  ;;  %v1119_v35 = vsel %vm657_vm6, %v5609_v58, -inf }
 0x44b   :  { %1289 = vmatpush.bf16.xpose.msra.mxu2 %v1275_v61  ;;  %v5647_v61 = vpop.f32.mrf.mxu1 }
 0x44c   :  { %v5621_v19 = vpop.xlane.xlu0 %936 }
 0x453   :  { %1290 = vmatpush.bf16.xpose.msra.mxu2 %v1272_v55 }
 0x454   :  { %v714_v1 = vpop.xlane.xlu0 %713 }
 0x455   :  { %4313 = vrcp.f32 %v714_v1  ;;  %v5653_v1 = vpop.f32.mrf.mxu0 }
 0x45b   :  { %v4314_v7 = vpop.eup %4313 }
 0x45c   :  { %1196 = vrot.lane.b32.xlu2 %v5176_v46, %s4630_s11  ;;  %v5639_v50 = vpop.xlane.xlu0 %942  ;;  %v740_v3 = vmul.f32 %v4314_v7, %v5525_v63 }
 0x464   :  { %1408 = vrot.lane.b32.xlu2 %v5122_v36, %s4631_s12 }
 0x46b   :  { %1120 = vmax.xlane.f32.xlu0 %v1119_v35 }
 0x46f   :  { %1114 = vmax.xlane.f32.xlu1 %v1113_v8  ;;  %v723_v8 = vpop.xlane.xlu0 %722 }
 0x47f   :  { %1410 = vrot.lane.b32.xlu0 %v5176_v46, %s4631_s12 }
 0x487   :  { %1192 = vrot.lane.b32.xlu0 %v5065_v27, %s4630_s11  ;;  %v5637_v46 = vpop.xlane.xlu2 %939 }
 0x488   :  { %1194 = vrot.lane.b32.xlu1 %v5122_v36, %s4630_s11 }
 0x48d   :  { %728 = vadd.xlane.f32.xlu2 %v727_v23 }
 0x48f   :  { %v717_v13 = vpop.xlane.xlu1 %716 }
 0x490   :  { %4315 = vrcp.f32 %v717_v13  ;;  %v5655_v13 = vpop.f32.mrf.mxu1 }
 0x491   :  { %7453 = vst [vmem:[#allocation6_spill] sm:$0xff] %v5655_v13 }
 0x496   :  { %v4316_v62 = vpop.eup %4315 }
 0x497   :  { %v5643_v36 = vpop.xlane.xlu2 %948  ;;  %v741_v17 = vmul.f32 %v4316_v62, %v5550_v38  ;;  %v720_v55 = vpop.xlane.xlu1 %719  ;;  %v928_v38 = vmul.f32 1.442695, %v914_v40 }
 0x498   :  { %4317 = vrcp.f32 %v720_v55  ;;  %v5663_v55 = vpop.f32.mrf.mxu0  ;;  %v5668_v11 = vpop.f32.mrf.mxu1 }
 0x499   :  { %v747_v35 = vpack.c.bf16 %v741_v17, %v740_v3  ;;  %4319 = vrcp.f32 %v723_v8  ;;  %7454 = vst [vmem:[#allocation7_spill] sm:$0xff] %v5663_v55  ;;  %v1884_v20 = vsel %vm657_vm6, %v5663_v55, -inf }
 0x49a   :  { %4321 = vpow2.f32 %v928_v38 }
 0x49b   :  { %4000 = vmatmul.msk.bf16.gmra.mxu2 %vm657_vm6, %v747_v35 }
 0x49e   :  { %v4318_v23 = vpop.eup %4317 }
 0x49f   :  { %v5650_v31 = vpop.xlane.xlu2 %1105  ;;  %v4320_v63 = vpop.eup %4319  ;;  %v742_v7 = vmul.f32 %v4318_v23, %v5557_v14  ;;  %v1652_v14 = vsel %vm657_vm6, %v5635_v57, -inf }
 0x4a0   :  { %v743_v3 = vmul.f32 %v4320_v63, %v5534_v52  ;;  %v5665_v59 = vpop.xlane.xlu0 %725  ;;  %v5670_v35 = vpop.eup %4321 }
 0x4a1   :  { %v5672_v8 = vpop.xlane.xlu1 %945  ;;  %v950_v52 = vsel %vm657_vm6, %v5670_v35, 0.0  ;;  %v5681_v23 = vpop.f32.mrf.mxu0 }
 0x4a2   :  { %v748_v17 = vpack.c.bf16 %v743_v3, %v742_v7  ;;  %v5683_v63 = vpop.f32.mrf.mxu1  ;;  %v1881_v3 = vsel %vm657_vm6, %v5653_v1, -inf }
 0x4a3   :  { %7455 = vst [vmem:[#allocation8_spill] sm:$0xff] %v5683_v63 }
 0x4a5   :  { %1406 = vrot.lane.b32.xlu2 %v5065_v27, %s4631_s12 }
 0x4a7   :  { %v5660_v62 = vpop.xlane.xlu2 %1108 }
 0x4aa   :  { %v5696_v18 = vpop.f32.mrf.mxu1 }
 0x4ab   :  { %4001 = vmatmul.msk.bf16.gmra.mxu2 %vm657_vm6, %v748_v17  ;;  %v915_v17 = vsub.f32 %v5475_v34, %v5613_v26 }
 0x4af   :  { %v5674_v27 = vpop.xlane.xlu2 %1111 }
 0x4b1   :  { %1653 = vmax.xlane.f32.xlu0 %v1652_v14  ;;  %v5692_v14 = vpop.f32.mrf.mxu0 }
 0x4b2   :  { %951 = vadd.xlane.f32.xlu1 %v950_v52  ;;  %v5704_v34 = vpop.f32.mrf.mxu1 }
 0x4b3   :  { %v2030_v40 = vpop.permute.xlu0 %2029 }
 0x4b4   :  { %4046 = vmatmul.msk.bf16.gmra.mxu1 %vm603_vm5, %v2030_v40  ;;  %v930_v40 = vmul.f32 1.442695, %v915_v17 }
 0x4b6   :  { %4323 = vpow2.f32 %v930_v40 }
 0x4b7   :  { %v2244_v38 = vpop.permute.xlu1 %2243  ;;  %v5685_v7 = vpop.xlane.xlu2 %1117  ;;  %4325 = vrcp.f32 %v5665_v59  ;;  %v1655_v59 = vsel %vm657_vm6, %v5647_v61, -inf }
 0x4b8   :  { %4054 = vmatmul.msk.bf16.gmra.mxu0 %vm603_vm5, %v2244_v38  ;;  %v1664_v38 = vsel %vm657_vm6, %v5683_v63, -inf }
 0x4b9   :  { %1882 = vmax.xlane.f32.xlu0 %v1881_v3  ;;  %v5700_v12 = vpop.f32.mrf.mxu0 }
 0x4ba   :  { %7456 = vst [vmem:[#allocation9_spill] sm:$0xff] %v5700_v12 }
 0x4bc   :  { %v5702_v3 = vpop.eup %4323 }
 0x4bd   :  { %v953_v26 = vsel %vm657_vm6, %v5702_v3, 0.0 }
 0x4bf   :  { %v1197_v52 = vpop.permute.xlu2 %1196 }
 0x4c0   :  { %1218 = vmatpush.bf16.msrb.mxu3 %v1197_v52  ;;  %v5714_v52 = vpop.f32.mrf.mxu1 }
 0x4c1   :  { %1885 = vmax.xlane.f32.xlu0 %v1884_v20  ;;  %v1893_v20 = vsel %vm657_vm6, %v5700_v12, -inf  ;;  %v5712_v17 = vpop.f32.mrf.mxu0  ;;  %7457 = vst [vmem:[#allocation10_spill] sm:$0xff] %v5714_v52  ;;  %v1673_v40 = vsel %vm657_vm6, %v5714_v52, -inf  ;;  %v577_v12 = vadd.f32 %v5052_v33, %v5255_v21 }
 0x4c9   :  { %1665 = vmax.xlane.f32.xlu0 %v1664_v38  ;;  %v5718_v38 = vpop.f32.mrf.mxu0 }
 0x4ca   :  { %7458 = vst [vmem:[#allocation11_spill] sm:$0xff] %v5718_v38  ;;  %v1899_v63 = vsel %vm657_vm6, %v5718_v38, -inf  ;;  %v1878_v38 = vsel %vm657_vm6, %v5641_v41, -inf }
 0x4cb   :  { %1190 = vrot.lane.b32.xlu1 %v5069_v54, %s4630_s11 }
 0x4ce   :  { %954 = vadd.xlane.f32.xlu2 %v953_v26 }
 0x4d1   :  { %1894 = vmax.xlane.f32.xlu0 %v1893_v20  ;;  %v578_v20 = vadd.f32 %v5052_v33, %v5262_v51  ;;  %v575_v51 = vadd.f32 %v5052_v33, %v5207_v39  ;;  %v1887_v39 = vsel %vm657_vm6, %v5681_v23, -inf }
 0x4d9   :  { %1674 = vmax.xlane.f32.xlu0 %v1673_v40  ;;  %v5732_v40 = vpack.c.bf16 %v578_v20, %v577_v12  ;;  %v1658_v12 = vsel %vm657_vm6, %v5655_v13, -inf }
 0x4de   :  { %v5724_v26 = vpop.xlane.xlu0 %1120 }
 0x4e1   :  { %1900 = vmax.xlane.f32.xlu0 %v1899_v63  ;;  %v1409_v63 = vpop.permute.xlu2 %1408 }
 0x4e2   :  { %v5730_v55 = vpop.xlane.xlu1 %1114 }
 0x4e6   :  { %1404 = vrot.lane.b32.xlu2 %v5069_v54, %s4631_s12  ;;  %v576_v54 = vadd.f32 %v5052_v33, %v5215_v56 }
 0x4e8   :  { %v5742_v58 = vpack.c.bf16 %v576_v54, %v575_v51 }
 0x4f1   :  { %v1411_v52 = vpop.permute.xlu0 %1410 }
 0x4f5   :  { %1754 = vrot.lane.b32.xlu0 %v5732_v40, %s4621_s28  ;;  %1879 = vmax.xlane.f32.xlu1 %v1878_v38  ;;  %v4326_v38 = vpop.eup %4325 }
 0x4f6   :  { %v744_v51 = vmul.f32 %v4326_v38, %v5570_v37 }
 0x4f9   :  { %v1193_v20 = vpop.permute.xlu0 %1192 }
 0x4fa   :  { %v1195_v21 = vpop.permute.xlu1 %1194 }
 0x4fb   :  { %1219 = vmatpush.bf16.msrb.mxu3 %v1195_v21 }
 0x4fd   :  { %1970 = vrot.lane.b32.xlu0 %v5742_v58, %s4625_s5  ;;  %1659 = vmax.xlane.f32.xlu1 %v1658_v12  ;;  %v1667_v12 = vsel %vm657_vm6, %v5696_v18, -inf }
 0x4ff   :  { %1220 = vmatpush.bf16.msrb.mxu3 %v1193_v20 }
 0x500   :  { %v729_v56 = vpop.xlane.xlu2 %728 }
 0x501   :  { %4327 = vrcp.f32 %v729_v56 }
 0x502   :  { %4329 = vrcp.f32 %v5621_v19  ;;  %v1890_v19 = vsel %vm657_vm6, %v5692_v14, -inf }
 0x503   :  { %4331 = vrcp.f32 %v5625_v10  ;;  %v581_v10 = vadd.f32 %v5052_v33, %v5310_v45 }
 0x504   :  { %4333 = vrcp.f32 %v5637_v46  ;;  %v1670_v46 = vsel %vm657_vm6, %v5704_v34, -inf }
 0x505   :  { %1888 = vmax.xlane.f32.xlu1 %v1887_v39  ;;  %4335 = vrcp.f32 %v5639_v50 }
 0x506   :  { %4337 = vrcp.f32 %v5672_v8 }
 0x507   :  { %v4328_v54 = vpop.eup %4327  ;;  %4339 = vrcp.f32 %v5643_v36  ;;  %v1122_v36 = vsub.f32 %v5469_v28, %v5555_v24 }
 0x508   :  { %v745_v21 = vmul.f32 %v4328_v54, %v5631_v9  ;;  %v4330_v20 = vpop.eup %4329  ;;  %v1661_v9 = vsel %vm657_vm6, %v5668_v11, -inf  ;;  %v1407_v38 = vpop.permute.xlu2 %1406 }
 0x509   :  { %v4332_v56 = vpop.eup %4331  ;;  %v965_v37 = vmul.f32 %v4330_v20, %v5519_v4  ;;  %v582_v4 = vadd.f32 %v5052_v33, %v5320_v44  ;;  %v580_v44 = vadd.f32 %v5052_v33, %v5290_v0 }
 0x50a   :  { %v749_v13 = vpack.c.bf16 %v745_v21, %v744_v51 }
 0x50b   :  { %v5773_v54 = vpack.c.bf16 %v582_v4, %v581_v10 }
 0x50c   :  { %4002 = vmatmul.msk.bf16.gmra.mxu2 %vm657_vm6, %v749_v13  ;;  %v964_v13 = vmul.f32 %v4332_v56, %v5514_v48  ;;  %v4334_v48 = vpop.eup %4333 }
 0x50d   :  { %1668 = vmax.xlane.f32.xlu1 %v1667_v12  ;;  %v4336_v51 = vpop.eup %4335  ;;  %v966_v50 = vmul.f32 %v4334_v48, %v5540_v2  ;;  %v1896_v2 = vsel %vm657_vm6, %v5712_v17, -inf }
 0x50e   :  { %v972_v39 = vpack.c.bf16 %v965_v37, %v964_v13  ;;  %v967_v45 = vmul.f32 %v4336_v51, %v5529_v15  ;;  %v4338_v0 = vpop.eup %4337 }
 0x50f   :  { %1656 = vmax.xlane.f32.xlu2 %v1655_v59  ;;  %v4340_v15 = vpop.eup %4339 }
 0x517   :  { %1662 = vmax.xlane.f32.xlu2 %v1661_v9 }
 0x51c   :  { %4007 = vmatmul.msk.bf16.vlgmr.msrb.gmra.mxu2 %vm657_vm6, %v972_v39  ;;  %v1130_v39 = vmul.f32 1.442695, %v1122_v36 }
 0x51d   :  { %1432 = vmatpush.bf16.msrb.mxu2 %v1411_v52  ;;  %v579_v52 = vadd.f32 %v5052_v33, %v5283_v6  ;;  %v968_v33 = vmul.f32 %v4338_v0, %v5568_v5  ;;  %v969_v6 = vmul.f32 %v4340_v15, %v5560_v25  ;;  %v1127_v0 = vsub.f32 %v5582_v16, %v5730_v55 }
 0x51f   :  { %1891 = vmax.xlane.f32.xlu2 %v1890_v19  ;;  %v5786_v21 = vpack.c.bf16 %v580_v44, %v579_v52  ;;  %v974_v59 = vpack.c.bf16 %v969_v6, %v968_v33 }
 0x521   :  { %1433 = vmatpush.bf16.msrb.mxu2 %v1409_v63  ;;  %v973_v63 = vpack.c.bf16 %v967_v45, %v966_v50  ;;  %v1125_v45 = vsub.f32 %v5562_v47, %v5660_v62  ;;  %v1123_v47 = vsub.f32 %v5481_v49, %v5617_v60  ;;  %v1140_v62 = vmul.f32 1.442695, %v1127_v0 }
 0x522   :  { %v1124_v49 = vsub.f32 %v5547_v29, %v5650_v31 }
 0x523   :  { %v1132_v33 = vmul.f32 1.442695, %v1123_v47 }
 0x524   :  { %v5797_v20 = vpop.xlane.xlu0 %1653 }
 0x525   :  { %1434 = vmatpush.bf16.msrb.mxu2 %v1407_v38  ;;  %v952_v12 = vpop.xlane.xlu1 %951  ;;  %v1676_v6 = vsub.f32 %v5635_v57, %v5797_v20  ;;  %v1134_v57 = vmul.f32 1.442695, %v1124_v49 }
 0x526   :  { %1758 = vrot.lane.b32.xlu1 %v5773_v54, %s4621_s28  ;;  %4341 = vrcp.f32 %v952_v12 }
 0x527   :  { %1671 = vmax.xlane.f32.xlu2 %v1670_v46 }
 0x52c   :  { %4008 = vmatmul.msk.bf16.gmra.mxu2 %vm657_vm6, %v973_v63  ;;  %v4342_v37 = vpop.eup %4341  ;;  %v1883_v19 = vpop.xlane.xlu0 %1882  ;;  %v1136_v63 = vmul.f32 1.442695, %v1125_v45 }
 0x52d   :  { %v970_v25 = vmul.f32 %v4342_v37, %v5670_v35  ;;  %v1903_v10 = vsub.f32 %v5653_v1, %v1883_v19  ;;  %v1128_v35 = vsub.f32 %v5591_v53, %v5685_v7 }
 0x52e   :  { %1756 = vrot.lane.b32.xlu1 %v5786_v21, %s4621_s28 }
 0x52f   :  { %1897 = vmax.xlane.f32.xlu2 %v1896_v2  ;;  %v1912_v28 = vmul.f32 1.442695, %v1903_v10  ;;  %v1142_v1 = vmul.f32 1.442695, %v1128_v35 }
 0x534   :  { %v5846_v12 = vpop.xlane.xlu0 %1885 }
 0x53c   :  { %4009 = vmatmul.msk.bf16.gmra.mxu2 %vm657_vm6, %v974_v59  ;;  %v5866_v60 = vpop.xlane.xlu0 %1665 }
 0x53d   :  { %v1191_v8 = vpop.permute.xlu1 %1190 }
 0x53e   :  { %1221 = vmatpush.bf16.msrb.mxu3 %v1191_v8  ;;  %v1684_v8 = vmul.f32 1.442695, %v1676_v6 }
 0x541   :  { %v955_v56 = vpop.xlane.xlu2 %954 }
 0x542   :  { %4343 = vrcp.f32 %v955_v56 }
 0x543   :  { %4345 = vpow2.f32 %v1130_v39 }
 0x544   :  { %4347 = vpow2.f32 %v1912_v28  ;;  %v5897_v28 = vpop.f32.mrf.mxu1 }
 0x545   :  { %4349 = vpow2.f32 %v1142_v1 }
 0x547   :  { %1976 = vrot.lane.b32.xlu2 %v5773_v54, %s4625_s5 }
 0x548   :  { %v4344_v5 = vpop.eup %4343 }
 0x549   :  { %v1405_v9 = vpop.permute.xlu2 %1404  ;;  %v971_v13 = vmul.f32 %v4344_v5, %v5702_v3  ;;  %v5809_v24 = vpop.eup %4345 }
 0x54a   :  { %1435 = vmatpush.bf16.msrb.mxu2 %v1405_v9  ;;  %v5813_v3 = vpop.f32.mrf.mxu2  ;;  %v1146_v48 = vsel %vm657_vm6, %v5809_v24, 0.0  ;;  %v5819_v38 = vpop.eup %4347 }
 0x54b   :  { %v975_v4 = vpack.c.bf16 %v971_v13, %v970_v25  ;;  %7459 = vst [vmem:[#allocation12_spill] sm:$0xff] %v5813_v3  ;;  %v1929_v53 = vsel %vm657_vm6, %v5819_v38, 0.0  ;;  %v5829_v51 = vpop.eup %4349  ;;  %v5883_v13 = vpop.xlane.xlu0 %1894 }
 0x54c   :  { %v1164_v46 = vsel %vm657_vm6, %v5829_v51, 0.0  ;;  %v5919_v0 = vpop.f32.mrf.mxu1 }
 0x54d   :  { %4010 = vmatmul.msk.bf16.gmra.mxu2 %vm657_vm6, %v975_v4 }
 0x54f   :  { %1974 = vrot.lane.b32.xlu2 %v5786_v21, %s4625_s5 }
 0x552   :  { %v5827_v7 = vpop.f32.mrf.mxu2 }
 0x553   :  { %7460 = vst [vmem:[#allocation13_spill] sm:$0xff] %v5827_v7 }
 0x557   :  { %1972 = vrot.lane.b32.xlu2 %v5732_v40, %s4625_s5 }
 0x558   :  { %1147 = vadd.xlane.f32.xlu1 %v1146_v48 }
 0x55a   :  { %v5833_v44 = vpop.f32.mrf.mxu2 }
 0x55b   :  { %7461 = vst [vmem:[#allocation14_spill] sm:$0xff] %v5833_v44 }
 0x55d   :  { %4019 = vmatmul.msk.bf16.vlgmr.msra.gmra.mxu2 %vm603_vm5, %v5258_v32 }
 0x55f   :  { %1752 = vrot.lane.b32.xlu2 %v5742_v58, %s4621_s28 }
 0x560   :  { %1930 = vadd.xlane.f32.xlu1 %v1929_v53 }
 0x562   :  { %v5844_v15 = vpop.f32.mrf.mxu2 }
 0x563   :  { %7462 = vst [vmem:[#allocation15_spill] sm:$0xff] %v5844_v15 }
 0x568   :  { %v1880_v50 = vpop.xlane.xlu1 %1879  ;;  %1165 = vadd.xlane.f32.xlu1 %v1164_v46 }
 0x569   :  { %v1902_v32 = vsub.f32 %v5641_v41, %v1880_v50  ;;  %v5907_v50 = vpop.xlane.xlu0 %1674 }
 0x56a   :  { %v5860_v59 = vpop.f32.mrf.mxu2 }
 0x56b   :  { %v1910_v52 = vmul.f32 1.442695, %v1902_v32  ;;  %7463 = vst [vmem:[#allocation16_spill] sm:$0xff] %v5860_v59 }
 0x56d   :  { %4351 = vpow2.f32 %v1910_v52  ;;  %4020 = vmatmul.msk.bf16.gmra.mxu2 %vm603_vm5, %v5352_v22 }
 0x56e   :  { %4353 = vpow2.f32 %v1136_v63 }
 0x56f   :  { %4355 = vpow2.f32 %v1140_v62 }
 0x570   :  { %v5856_v16 = vpop.xlane.xlu1 %1659  ;;  %4357 = vpow2.f32 %v1132_v33  ;;  %v2095_v33 = vsel %vm657_vm6, %v5919_v0, -inf }
 0x571   :  { %4359 = vpow2.f32 %v1684_v8  ;;  %v5925_v62 = vpop.xlane.xlu0 %1900 }
 0x572   :  { %4361 = vpow2.f32 %v1134_v57  ;;  %v5879_v31 = vpop.f32.mrf.mxu2 }
 0x573   :  { %v5840_v2 = vpop.eup %4351  ;;  %7464 = vst [vmem:[#allocation17_spill] sm:$0xff] %v5879_v31 }
 0x574   :  { %v1926_v41 = vsel %vm657_vm6, %v5840_v2, 0.0  ;;  %v5852_v22 = vpop.eup %4353 }
 0x575   :  { %1927 = vadd.xlane.f32.xlu0 %v1926_v41  ;;  %v1155_v55 = vsel %vm657_vm6, %v5852_v22, 0.0  ;;  %v5868_v56 = vpop.eup %4355 }
 0x576   :  { %v5871_v36 = vpop.eup %4357  ;;  %v1161_v5 = vsel %vm657_vm6, %v5868_v56, 0.0 }
 0x577   :  { %v1149_v25 = vsel %vm657_vm6, %v5871_v36, 0.0 }
 0x578   :  { %v5877_v29 = vpop.xlane.xlu1 %1888 }
 0x579   :  { %v1755_v57 = vpop.permute.xlu0 %1754 }
 0x57d   :  { %1156 = vadd.xlane.f32.xlu0 %v1155_v55  ;;  %4021 = vmatmul.msk.bf16.gmra.mxu2 %vm603_vm5, %v5295_v43  ;;  %v1126_v43 = vsub.f32 %v5578_v30, %v5674_v27  ;;  %v7465_v27 = vld [vmem:[#allocation5_spill] sm:$0xff] }
 0x57e   :  { %v1129_v10 = vsub.f32 %v7465_v27, %v5724_v26 }
 0x57f   :  { %v1138_v39 = vmul.f32 1.442695, %v1126_v43 }
 0x580   :  { %v5903_v1 = vpop.xlane.xlu1 %1668  ;;  %v1144_v46 = vmul.f32 1.442695, %v1129_v10 }
 0x582   :  { %v1657_v20 = vpop.xlane.xlu2 %1656 }
 0x583   :  { %v1677_v37 = vsub.f32 %v5647_v61, %v1657_v20  ;;  %v5885_v61 = vpop.eup %4359 }
 0x584   :  { %v5889_v4 = vpop.eup %4361  ;;  %v1700_v30 = vsel %vm657_vm6, %v5885_v61, 0.0 }
 0x585   :  { %1162 = vadd.xlane.f32.xlu0 %v1161_v5  ;;  %v1686_v9 = vmul.f32 1.442695, %v1677_v37  ;;  %v1152_v48 = vsel %vm657_vm6, %v5889_v4, 0.0 }
 0x587   :  { %4363 = vpow2.f32 %v1686_v9 }
 0x588   :  { %1150 = vadd.xlane.f32.xlu2 %v1149_v25  ;;  %4365 = vpow2.f32 %v1138_v39  ;;  %v1971_v39 = vpop.permute.xlu0 %1970 }
 0x589   :  { %4367 = vpow2.f32 %v1144_v46 }
 0x58a   :  { %v5887_v19 = vpop.xlane.xlu2 %1662 }
 0x58d   :  { %4022 = vmatmul.msk.bf16.gmra.mxu2 %vm603_vm5, %v5360_v42  ;;  %1701 = vadd.xlane.f32.xlu0 %v1700_v30  ;;  %v5905_v53 = vpop.eup %4363 }
 0x58e   :  { %v5911_v32 = vpop.eup %4365  ;;  %v1703_v26 = vsel %vm657_vm6, %v5905_v53, 0.0 }
 0x58f   :  { %v5899_v35 = vpop.f32.mrf.mxu2  ;;  %v1158_v52 = vsel %vm657_vm6, %v5911_v32, 0.0  ;;  %v5923_v47 = vpop.eup %4367 }
 0x590   :  { %7466 = vst [vmem:[#allocation5_spill] sm:$0xff] %v5899_v35  ;;  %1153 = vadd.xlane.f32.xlu2 %v1152_v48  ;;  %v1167_v55 = vsel %vm657_vm6, %v5923_v47, 0.0 }
 0x592   :  { %v5909_v42 = vpop.xlane.xlu2 %1891 }
 0x595   :  { %1704 = vadd.xlane.f32.xlu0 %v1703_v26 }
 0x597   :  { %v5915_v45 = vpop.f32.mrf.mxu2 }
 0x598   :  { %7467 = vst [vmem:[#allocation18_spill] sm:$0xff] %v5915_v45  ;;  %v1759_v63 = vpop.permute.xlu1 %1758  ;;  %1159 = vadd.xlane.f32.xlu2 %v1158_v52 }
 0x599   :  { %1780 = vmatpush.bf16.msra.mxu3 %v1759_v63 }
 0x59a   :  { %v5921_v41 = vpop.xlane.xlu2 %1671 }
 0x59d   :  { %2096 = vmax.xlane.f32.xlu0 %v2095_v33 }
 0x59f   :  { %v5929_v6 = vpop.f32.mrf.mxu2 }
 0x5a0   :  { %v1757_v49 = vpop.permute.xlu1 %1756  ;;  %1168 = vadd.xlane.f32.xlu2 %v1167_v55  ;;  %v5953_v55 = vpop.f32.mrf.mxu0 }
 0x5a1   :  { %1781 = vmatpush.bf16.msra.mxu3 %v1757_v49  ;;  %v1905_v49 = vsub.f32 %v5681_v23, %v5877_v29 }
 0x5a2   :  { %v5933_v8 = vpop.xlane.xlu2 %1897 }
 0x5a5   :  { %1782 = vmatpush.bf16.msra.mxu3 %v1755_v57 }
 0x5a7   :  { %v5935_v20 = vpop.f32.mrf.mxu2 }
 0x5a8   :  { %v5965_v23 = vpop.f32.mrf.mxu0 }
 0x5aa   :  { %v1977_v37 = vpop.permute.xlu2 %1976 }
 0x5ab   :  { %1998 = vmatpush.bf16.msra.mxu2 %v1977_v37 }
 0x5af   :  { %v5937_v5 = vpop.f32.mrf.mxu2 }
 0x5b2   :  { %v1975_v43 = vpop.permute.xlu2 %1974 }
 0x5b3   :  { %1999 = vmatpush.bf16.msra.mxu2 %v1975_v43  ;;  %v7469_v43 = vld [vmem:[#allocation6_spill] sm:$0xff] }
 0x5b7   :  { %v5939_v9 = vpop.f32.mrf.mxu2 }
 0x5ba   :  { %v1973_v25 = vpop.permute.xlu2 %1972 }
 0x5bb   :  { %2000 = vmatpush.bf16.msra.mxu2 %v1973_v25  ;;  %v1678_v25 = vsub.f32 %v7469_v43, %v5856_v16  ;;  %v7470_v43 = vld [vmem:[#allocation7_spill] sm:$0xff] }
 0x5bc   :  { %v1904_v59 = vsub.f32 %v7470_v43, %v5846_v12  ;;  %v5997_v43 = vpop.f32.mrf.mxu1 }
 0x5bd   :  { %v1688_v35 = vmul.f32 1.442695, %v1678_v25 }
 0x5bf   :  { %v5941_v30 = vpop.f32.mrf.mxu2  ;;  %2001 = vmatpush.bf16.msra.mxu2 %v1971_v39 }
 0x5c2   :  { %v1753_v27 = vpop.permute.xlu2 %1752 }
 0x5c3   :  { %1783 = vmatpush.bf16.msra.mxu3 %v1753_v27  ;;  %v2306_v27 = vsel %vm657_vm6, %v5953_v55, -inf }
 0x5c4   :  { %v6017_v3 = vpop.f32.mrf.mxu1 }
 0x5c7   :  { %v5943_v10 = vpop.f32.mrf.mxu2 }
 0x5cb   :  { %v1148_v26 = vpop.xlane.xlu1 %1147 }
 0x5d0   :  { %v5945_v48 = vpop.f32.mrf.mxu2 }
 0x5d3   :  { %v1931_v33 = vpop.xlane.xlu1 %1930 }
 0x5d4   :  { %4369 = vrcp.f32 %v1931_v33 }
 0x5d8   :  { %v5947_v46 = vpop.f32.mrf.mxu2 }
 0x5d9   :  { %7468 = vst [vmem:[#allocation19_spill] sm:$0xff] %v5947_v46 }
 0x5da   :  { %v4370_v33 = vpop.eup %4369 }
 0x5db   :  { %v5968_v29 = vmul.f32 %v4370_v33, %v5819_v38  ;;  %v2309_v38 = vsel %vm657_vm6, %v5965_v23, -inf }
 0x5e0   :  { %v5949_v52 = vpop.f32.mrf.mxu2 }
 0x5e1   :  { %v1312_v63 = vsel %vm657_vm6, %v5949_v52, -inf }
 0x5e2   :  { %1313 = vmax.xlane.f32.xlu1 %v1312_v63  ;;  %v1916_v63 = vmul.f32 1.442695, %v1905_v49  ;;  %v2092_v49 = vsel %vm657_vm6, %v5897_v28, -inf }
 0x5e8   :  { %v5957_v57 = vpop.f32.mrf.mxu2  ;;  %v1928_v37 = vpop.xlane.xlu0 %1927 }
 0x5e9   :  { %4371 = vrcp.f32 %v1928_v37  ;;  %v1315_v39 = vsel %vm657_vm6, %v5957_v57, -inf }
 0x5ea   :  { %1316 = vmax.xlane.f32.xlu2 %v1315_v39  ;;  %2307 = vmax.xlane.f32.xlu1 %v2306_v27  ;;  %4373 = vpow2.f32 %v1916_v63 }
 0x5eb   :  { %4375 = vpow2.f32 %v1688_v35 }
 0x5ef   :  { %v4372_v45 = vpop.eup %4371 }
 0x5f0   :  { %v5971_v16 = vmul.f32 %v4372_v45, %v5840_v2  ;;  %v5973_v37 = vpop.f32.mrf.mxu2  ;;  %v1914_v2 = vmul.f32 1.442695, %v1904_v59  ;;  %v5985_v45 = vpop.eup %4373 }
 0x5f1   :  { %v1318_v25 = vsel %vm657_vm6, %v5973_v37, -inf  ;;  %v5987_v12 = vpop.eup %4375  ;;  %v1935_v63 = vsel %vm657_vm6, %v5985_v45, 0.0  ;;  %v1157_v7 = vpop.xlane.xlu0 %1156 }
 0x5f2   :  { %2093 = vmax.xlane.f32.xlu2 %v2092_v49  ;;  %1319 = vmax.xlane.f32.xlu0 %v1318_v25  ;;  %4377 = vpow2.f32 %v1914_v2  ;;  %v1706_v33 = vsel %vm657_vm6, %v5987_v12, 0.0  ;;  %v5999_v49 = vpop.f32.mrf.mxu0 }
 0x5f3   :  { %2310 = vmax.xlane.f32.xlu1 %v2309_v38  ;;  %4379 = vrcp.f32 %v1148_v26  ;;  %v1679_v38 = vsub.f32 %v5668_v11, %v5887_v19  ;;  %v7471_v26 = vld [vmem:[#allocation8_spill] sm:$0xff] }
 0x5f5   :  { %v1690_v44 = vmul.f32 1.442695, %v1679_v38 }
 0x5f8   :  { %v5989_v35 = vpop.f32.mrf.mxu2  ;;  %v6001_v25 = vpop.eup %4377 }
 0x5f9   :  { %v1321_v27 = vsel %vm657_vm6, %v5989_v35, -inf  ;;  %v4380_v2 = vpop.eup %4379  ;;  %v1932_v31 = vsel %vm657_vm6, %v6001_v25, 0.0 }
 0x5fa   :  { %1322 = vmax.xlane.f32.xlu2 %v1321_v27  ;;  %1936 = vadd.xlane.f32.xlu0 %v1935_v63  ;;  %v1680_v27 = vsub.f32 %v7471_v26, %v5866_v60  ;;  %v1178_v11 = vmul.f32 %v4380_v2, %v5809_v24  ;;  %v2101_v24 = vsel %vm657_vm6, %v6017_v3, -inf }
 0x5fb   :  { %1707 = vadd.xlane.f32.xlu1 %v1706_v33  ;;  %v1151_v59 = vpop.xlane.xlu2 %1150  ;;  %v2312_v33 = vsel %vm657_vm6, %v5999_v49, -inf }
 0x5fc   :  { %4381 = vrcp.f32 %v1151_v59  ;;  %v1692_v15 = vmul.f32 1.442695, %v1680_v27 }
 0x5fd   :  { %4383 = vpow2.f32 %v1690_v44 }
 0x600   :  { %v6005_v39 = vpop.f32.mrf.mxu2 }
 0x601   :  { %v1324_v63 = vsel %vm657_vm6, %v6005_v39, -inf }
 0x602   :  { %v4382_v59 = vpop.eup %4381  ;;  %1325 = vmax.xlane.f32.xlu2 %v1324_v63  ;;  %2313 = vmax.xlane.f32.xlu0 %v2312_v33  ;;  %v7472_v33 = vld [vmem:[#allocation9_spill] sm:$0xff] }
 0x603   :  { %v1179_v19 = vmul.f32 %v4382_v59, %v5871_v36  ;;  %1933 = vadd.xlane.f32.xlu1 %v1932_v31  ;;  %v1154_v60 = vpop.xlane.xlu2 %1153  ;;  %v6026_v36 = vpop.eup %4383 }
 0x604   :  { %4385 = vrcp.f32 %v1154_v60  ;;  %v1709_v59 = vsel %vm657_vm6, %v6026_v36, 0.0 }
 0x605   :  { %v1186_v26 = vpack.c.bf16 %v1179_v19, %v1178_v11  ;;  %4387 = vpow2.f32 %v1692_v15  ;;  %v1907_v15 = vsub.f32 %v7472_v33, %v5883_v13  ;;  %v1163_v13 = vpop.xlane.xlu0 %1162  ;;  %v1906_v33 = vsub.f32 %v5692_v14, %v5909_v42 }
 0x606   :  { %4389 = vrcp.f32 %v1157_v7 }
 0x607   :  { %4015 = vmatmul.msk.bf16.vlgmr.msrb.gmra.mxu3 %vm657_vm6, %v1186_v26  ;;  %v1920_v26 = vmul.f32 1.442695, %v1907_v15  ;;  %v6051_v15 = vpop.f32.mrf.mxu0 }
 0x608   :  { %v6020_v63 = vpop.f32.mrf.mxu2  ;;  %v2315_v42 = vsel %vm657_vm6, %v6051_v15, -inf }
 0x609   :  { %v1327_v38 = vsel %vm657_vm6, %v6020_v63, -inf }
 0x60a   :  { %1328 = vmax.xlane.f32.xlu2 %v1327_v38  ;;  %v4386_v31 = vpop.eup %4385 }
 0x60b   :  { %2102 = vmax.xlane.f32.xlu1 %v2101_v24  ;;  %v6028_v44 = vpop.eup %4387  ;;  %v1180_v11 = vmul.f32 %v4386_v31, %v5889_v4  ;;  %v1160_v38 = vpop.xlane.xlu2 %1159  ;;  %v2098_v4 = vsel %vm657_vm6, %v5997_v43, -inf }
 0x60c   :  { %v4390_v2 = vpop.eup %4389  ;;  %v1712_v19 = vsel %vm657_vm6, %v6028_v44, 0.0  ;;  %4391 = vrcp.f32 %v1160_v38 }
 0x60d   :  { %v1181_v60 = vmul.f32 %v4390_v2, %v5852_v22  ;;  %4393 = vpow2.f32 %v1920_v26  ;;  %v1918_v22 = vmul.f32 1.442695, %v1906_v33 }
 0x60e   :  { %4395 = vrcp.f32 %v1163_v13 }
 0x60f   :  { %v1187_v24 = vpack.c.bf16 %v1181_v60, %v1180_v11  ;;  %4397 = vpow2.f32 %v1918_v22 }
 0x610   :  { %v6030_v27 = vpop.f32.mrf.mxu2 }
 0x611   :  { %v1330_v7 = vsel %vm657_vm6, %v6030_v27, -inf }
 0x612   :  { %1710 = vadd.xlane.f32.xlu2 %v1709_v59  ;;  %1331 = vmax.xlane.f32.xlu0 %v1330_v7  ;;  %v4392_v2 = vpop.eup %4391 }
 0x613   :  { %1713 = vadd.xlane.f32.xlu1 %v1712_v19  ;;  %v6053_v59 = vpop.eup %4393  ;;  %v1182_v7 = vmul.f32 %v4392_v2, %v5911_v32  ;;  %v1169_v60 = vpop.xlane.xlu2 %1168 }
 0x614   :  { %v4396_v14 = vpop.eup %4395  ;;  %v1941_v11 = vsel %vm657_vm6, %v6053_v59, 0.0  ;;  %4399 = vrcp.f32 %v1169_v60  ;;  %v1702_v32 = vpop.xlane.xlu0 %1701 }
 0x615   :  { %v1183_v19 = vmul.f32 %v4396_v14, %v5868_v56  ;;  %v6061_v38 = vpop.eup %4397 }
 0x616   :  { %v1938_v13 = vsel %vm657_vm6, %v6061_v38, 0.0 }
 0x617   :  { %4016 = vmatmul.msk.bf16.gmra.mxu3 %vm657_vm6, %v1187_v24  ;;  %v1188_v26 = vpack.c.bf16 %v1183_v19, %v1182_v7  ;;  %v1166_v24 = vpop.xlane.xlu1 %1165 }
 0x618   :  { %v6045_v46 = vpop.f32.mrf.mxu2  ;;  %4401 = vrcp.f32 %v1166_v24 }
 0x619   :  { %v1333_v31 = vsel %vm657_vm6, %v6045_v46, -inf }
 0x61a   :  { %2099 = vmax.xlane.f32.xlu2 %v2098_v4  ;;  %v4400_v33 = vpop.eup %4399 }
 0x61b   :  { %1334 = vmax.xlane.f32.xlu1 %v1333_v31  ;;  %v1185_v31 = vmul.f32 %v4400_v33, %v5923_v47 }
 0x61c   :  { %v1705_v22 = vpop.xlane.xlu0 %1704 }
 0x61d   :  { %4403 = vrcp.f32 %v1705_v22 }
 0x61e   :  { %v4402_v4 = vpop.eup %4401  ;;  %4405 = vrcp.f32 %v1702_v32 }
 0x61f   :  { %v1184_v56 = vmul.f32 %v4402_v4, %v5829_v51  ;;  %v1681_v51 = vsub.f32 %v5696_v18, %v5903_v1 }
 0x621   :  { %v1189_v2 = vpack.c.bf16 %v1185_v31, %v1184_v56  ;;  %v1694_v24 = vmul.f32 1.442695, %v1681_v51 }
 0x622   :  { %2316 = vmax.xlane.f32.xlu2 %v2315_v42 }
 0x623   :  { %1942 = vadd.xlane.f32.xlu1 %v1941_v11  ;;  %v4404_v14 = vpop.eup %4403 }
 0x624   :  { %v4406_v42 = vpop.eup %4405  ;;  %v1733_v7 = vmul.f32 %v4404_v14, %v5905_v53 }
 0x625   :  { %v1732_v11 = vmul.f32 %v4406_v42, %v5885_v61 }
 0x627   :  { %4017 = vmatmul.msk.bf16.gmra.mxu3 %vm657_vm6, %v1188_v26  ;;  %v1740_v19 = vpack.c.bf16 %v1733_v7, %v1732_v11  ;;  %v6097_v7 = vpop.f32.mrf.mxu1 }
 0x62a   :  { %1939 = vadd.xlane.f32.xlu2 %v1938_v13  ;;  %v6075_v13 = vpop.xlane.xlu0 %2096 }
 0x637   :  { %4018 = vmatmul.msk.bf16.gmra.mxu3 %vm657_vm6, %v1189_v2 }
 0x647   :  { %4031 = vmatmul.msk.bf16.vlgmr.msra.gmra.mxu3 %vm657_vm6, %v1740_v19  ;;  %v6099_v19 = vpop.f32.mrf.mxu0 }
 0x648   :  { %v2318_v51 = vsel %vm657_vm6, %v6099_v19, -inf }
 0x655   :  { %v1314_v60 = vpop.xlane.xlu1 %1313 }
 0x656   :  { %v1336_v47 = vsub.f32 %v5949_v52, %v1314_v60 }
 0x658   :  { %v1344_v26 = vmul.f32 1.442695, %v1336_v47 }
 0x65a   :  { %4407 = vpow2.f32 %v1344_v26 }
 0x65b   :  { %4409 = vpow2.f32 %v1694_v24 }
 0x65d   :  { %v1317_v32 = vpop.xlane.xlu2 %1316  ;;  %v6077_v33 = vpop.xlane.xlu1 %2307 }
 0x65e   :  { %v1337_v53 = vsub.f32 %v5957_v57, %v1317_v32 }
 0x660   :  { %v6080_v61 = vpop.eup %4407  ;;  %v1346_v4 = vmul.f32 1.442695, %v1337_v53 }
 0x661   :  { %v1360_v52 = vsel %vm657_vm6, %v6080_v61, 0.0  ;;  %v6086_v31 = vpop.eup %4409 }
 0x662   :  { %4411 = vpow2.f32 %v1346_v4  ;;  %1361 = vadd.xlane.f32.xlu0 %v1360_v52  ;;  %v1715_v14 = vsel %vm657_vm6, %v6086_v31, 0.0 }
 0x665   :  { %v6084_v18 = vpop.xlane.xlu2 %2093  ;;  %v1320_v1 = vpop.xlane.xlu0 %1319 }
 0x666   :  { %v6088_v56 = vpop.xlane.xlu1 %2310  ;;  %v1338_v22 = vsub.f32 %v5973_v37, %v1320_v1  ;;  %v6111_v1 = vpop.f32.mrf.mxu1 }
 0x668   :  { %v6091_v2 = vpop.eup %4411  ;;  %v1348_v57 = vmul.f32 1.442695, %v1338_v22  ;;  %v7473_v22 = vld [vmem:[#allocation10_spill] sm:$0xff] }
 0x669   :  { %v1363_v42 = vsel %vm657_vm6, %v6091_v2, 0.0 }
 0x66a   :  { %1716 = vadd.xlane.f32.xlu0 %v1715_v14  ;;  %1364 = vadd.xlane.f32.xlu1 %v1363_v42  ;;  %4413 = vpow2.f32 %v1348_v57  ;;  %v1683_v57 = vsub.f32 %v7473_v22, %v5907_v50  ;;  %v1908_v22 = vsub.f32 %v5712_v17, %v5933_v8 }
 0x66d   :  { %v1323_v11 = vpop.xlane.xlu2 %1322  ;;  %v1937_v24 = vpop.xlane.xlu0 %1936 }
 0x66e   :  { %v1339_v60 = vsub.f32 %v5989_v35, %v1323_v11  ;;  %v1708_v37 = vpop.xlane.xlu1 %1707 }
 0x670   :  { %v1350_v47 = vmul.f32 1.442695, %v1339_v60  ;;  %v6104_v26 = vpop.eup %4413  ;;  %v2107_v60 = vsel %vm657_vm6, %v6111_v1, -inf }
 0x671   :  { %v1366_v32 = vsel %vm657_vm6, %v6104_v26, 0.0 }
 0x672   :  { %4415 = vpow2.f32 %v1350_v47  ;;  %2319 = vmax.xlane.f32.xlu1 %v2318_v51  ;;  %1367 = vadd.xlane.f32.xlu2 %v1366_v32 }
 0x673   :  { %4417 = vrcp.f32 %v1937_v24 }
 0x675   :  { %v1326_v53 = vpop.xlane.xlu2 %1325  ;;  %v6119_v51 = vpop.xlane.xlu0 %2313 }
 0x676   :  { %v1340_v4 = vsub.f32 %v6005_v39, %v1326_v53  ;;  %v1934_v52 = vpop.xlane.xlu1 %1933  ;;  %v1698_v39 = vmul.f32 1.442695, %v1683_v57 }
 0x677   :  { %4419 = vrcp.f32 %v1934_v52 }
 0x678   :  { %v6109_v35 = vpop.eup %4415  ;;  %v1352_v14 = vmul.f32 1.442695, %v1340_v4 }
 0x679   :  { %v1369_v42 = vsel %vm657_vm6, %v6109_v35, 0.0  ;;  %v4418_v11 = vpop.eup %4417 }
 0x67a   :  { %4421 = vpow2.f32 %v1352_v14  ;;  %1370 = vadd.xlane.f32.xlu0 %v1369_v42  ;;  %2108 = vmax.xlane.f32.xlu2 %v2107_v60  ;;  %v6122_v32 = vmul.f32 %v4418_v11, %v5985_v45  ;;  %v1682_v45 = vsub.f32 %v5704_v34, %v5921_v41  ;;  %v6142_v42 = vpop.f32.mrf.mxu0  ;;  %v1922_v11 = vmul.f32 1.442695, %v1908_v22 }
 0x67b   :  { %4423 = vpow2.f32 %v1698_v39 }
 0x67c   :  { %v1696_v17 = vmul.f32 1.442695, %v1682_v45 }
 0x67d   :  { %v4420_v47 = vpop.eup %4419  ;;  %v1329_v24 = vpop.xlane.xlu2 %1328 }
 0x67e   :  { %v6125_v50 = vmul.f32 %v4420_v47, %v6001_v25  ;;  %v1341_v53 = vsub.f32 %v6020_v63, %v1329_v24  ;;  %v6128_v4 = vpop.xlane.xlu1 %2102  ;;  %v2104_v25 = vsel %vm657_vm6, %v6097_v7, -inf  ;;  %v2321_v24 = vsel %vm657_vm6, %v6142_v42, -inf }
 0x680   :  { %v6130_v52 = vpop.eup %4421  ;;  %v1354_v57 = vmul.f32 1.442695, %v1341_v53  ;;  %v7474_v53 = vld [vmem:[#allocation11_spill] sm:$0xff] }
 0x681   :  { %v1372_v63 = vsel %vm657_vm6, %v6130_v52, 0.0  ;;  %v6144_v39 = vpop.eup %4423  ;;  %v1909_v22 = vsub.f32 %v7474_v53, %v5925_v62  ;;  %v6163_v62 = vpop.f32.mrf.mxu1 }
 0x682   :  { %4425 = vpow2.f32 %v1354_v57  ;;  %2105 = vmax.xlane.f32.xlu0 %v2104_v25  ;;  %1373 = vadd.xlane.f32.xlu1 %v1372_v63 }
 0x683   :  { %4427 = vrcp.f32 %v1708_v37  ;;  %v1721_v37 = vsel %vm657_vm6, %v6144_v39, 0.0 }
 0x685   :  { %v1711_v8 = vpop.xlane.xlu2 %1710  ;;  %v1332_v60 = vpop.xlane.xlu0 %1331 }
 0x686   :  { %4429 = vrcp.f32 %v1711_v8  ;;  %v6146_v34 = vpop.xlane.xlu1 %1713  ;;  %v1342_v47 = vsub.f32 %v6030_v27, %v1332_v60  ;;  %v1924_v27 = vmul.f32 1.442695, %v1909_v22 }
 0x687   :  { %4431 = vpow2.f32 %v1922_v11 }
 0x688   :  { %v6148_v41 = vpop.eup %4425  ;;  %4433 = vpow2.f32 %v1696_v17  ;;  %v1356_v63 = vmul.f32 1.442695, %v1342_v47 }
 0x689   :  { %v1375_v57 = vsel %vm657_vm6, %v6148_v41, 0.0  ;;  %v4428_v45 = vpop.eup %4427 }
 0x68a   :  { %2322 = vmax.xlane.f32.xlu0 %v2321_v24  ;;  %1722 = vadd.xlane.f32.xlu1 %v1721_v37  ;;  %v1734_v11 = vmul.f32 %v4428_v45, %v5987_v12  ;;  %4435 = vpow2.f32 %v1356_v63  ;;  %v2110_v12 = vsel %vm657_vm6, %v6163_v62, -inf }
 0x68b   :  { %1376 = vadd.xlane.f32.xlu2 %v1375_v57  ;;  %4437 = vpow2.f32 %v1924_v27  ;;  %v6177_v57 = vpop.f32.mrf.mxu0  ;;  %v6189_v27 = vpop.f32.mrf.mxu1 }
 0x68c   :  { %v4430_v25 = vpop.eup %4429 }
 0x68d   :  { %v1735_v8 = vmul.f32 %v4430_v25, %v6026_v36  ;;  %v6161_v60 = vpop.eup %4431 }
 0x68e   :  { %v1335_v17 = vpop.xlane.xlu1 %1334  ;;  %v6165_v53 = vpop.eup %4433  ;;  %v1944_v47 = vsel %vm657_vm6, %v6161_v60, 0.0 }
 0x68f   :  { %v1741_v14 = vpack.c.bf16 %v1735_v8, %v1734_v11  ;;  %v1343_v24 = vsub.f32 %v6045_v46, %v1335_v17  ;;  %v1718_v36 = vsel %vm657_vm6, %v6165_v53, 0.0  ;;  %v2116_v11 = vsub.f32 %v5897_v28, %v6084_v18 }
 0x690   :  { %v6175_v37 = vpop.eup %4435  ;;  %v2113_v17 = vsel %vm657_vm6, %v6189_v27, -inf }
 0x691   :  { %4032 = vmatmul.msk.bf16.gmra.mxu3 %vm657_vm6, %v1741_v14  ;;  %v1358_v22 = vmul.f32 1.442695, %v1343_v24  ;;  %v6179_v46 = vpop.eup %4437  ;;  %v2324_v14 = vsel %vm657_vm6, %v6177_v57, -inf  ;;  %v1378_v45 = vsel %vm657_vm6, %v6175_v37, 0.0  ;;  %v2124_v24 = vmul.f32 1.442695, %v2116_v11 }
 0x692   :  { %1945 = vadd.xlane.f32.xlu0 %v1944_v47  ;;  %2111 = vmax.xlane.f32.xlu1 %v2110_v12  ;;  %v1947_v25 = vsel %vm657_vm6, %v6179_v46, 0.0  ;;  %v2117_v12 = vsub.f32 %v5919_v0, %v6075_v13  ;;  %v2331_v11 = vsub.f32 %v5965_v23, %v6088_v56 }
 0x693   :  { %1719 = vadd.xlane.f32.xlu2 %v1718_v36  ;;  %4439 = vpow2.f32 %v1358_v22  ;;  %v6197_v47 = vpop.f32.mrf.mxu0  ;;  %v2330_v22 = vsub.f32 %v5953_v55, %v6077_v33 }
 0x694   :  { %4441 = vpow2.f32 %v2124_v24  ;;  %v2327_v36 = vsel %vm657_vm6, %v6197_v47, -inf  ;;  %v2126_v28 = vmul.f32 1.442695, %v2117_v12 }
 0x695   :  { %v2338_v0 = vmul.f32 1.442695, %v2330_v22 }
 0x696   :  { %4443 = vpow2.f32 %v2126_v28 }
 0x697   :  { %4445 = vpow2.f32 %v2338_v0 }
 0x699   :  { %v6187_v63 = vpop.eup %4439 }
 0x69a   :  { %2325 = vmax.xlane.f32.xlu1 %v2324_v14  ;;  %1379 = vadd.xlane.f32.xlu0 %v1378_v45  ;;  %v1381_v8 = vsel %vm657_vm6, %v6187_v63, 0.0  ;;  %v6203_v18 = vpop.eup %4441 }
 0x69b   :  { %1948 = vadd.xlane.f32.xlu2 %v1947_v25  ;;  %v2140_v14 = vsel %vm657_vm6, %v6203_v18, 0.0  ;;  %v2100_v25 = vpop.xlane.xlu2 %2099 }
 0x69c   :  { %v6211_v13 = vpop.eup %4443 }
 0x69d   :  { %v2143_v45 = vsel %vm657_vm6, %v6211_v13, 0.0  ;;  %v6219_v55 = vpop.eup %4445 }
 0x69e   :  { %v2354_v33 = vsel %vm657_vm6, %v6219_v55, 0.0 }
 0x6a2   :  { %1382 = vadd.xlane.f32.xlu1 %v1381_v8  ;;  %2114 = vmax.xlane.f32.xlu0 %v2113_v17  ;;  %v2340_v17 = vmul.f32 1.442695, %v2331_v11 }
 0x6a3   :  { %v2317_v24 = vpop.xlane.xlu2 %2316 }
 0x6a4   :  { %4447 = vpow2.f32 %v2340_v17  ;;  %v2333_v22 = vsub.f32 %v6051_v15, %v2317_v24 }
 0x6aa   :  { %2328 = vmax.xlane.f32.xlu0 %v2327_v36  ;;  %v6240_v36 = vpop.eup %4447 }
 0x6ab   :  { %v6242_v28 = vpop.xlane.xlu2 %1939 }
 0x6b2   :  { %2141 = vadd.xlane.f32.xlu0 %v2140_v14 }
 0x6b3   :  { %2190 = vrot.lane.b32.xlu2 %v5773_v54, %s4630_s11 }
 0x6ba   :  { %2144 = vadd.xlane.f32.xlu0 %v2143_v45  ;;  %v2344_v45 = vmul.f32 1.442695, %v2333_v22 }
 0x6bb   :  { %2188 = vrot.lane.b32.xlu2 %v5786_v21, %s4630_s11  ;;  %2404 = vrot.lane.b32.xlu1 %v5773_v54, %s4631_s12  ;;  %v6231_v54 = vpop.xlane.xlu1 %1942 }
 0x6c2   :  { %2355 = vadd.xlane.f32.xlu0 %v2354_v33 }
 0x6c3   :  { %2402 = vrot.lane.b32.xlu1 %v5786_v21, %s4631_s12  ;;  %v2332_v21 = vsub.f32 %v5999_v49, %v6119_v51 }
 0x6c5   :  { %v2342_v12 = vmul.f32 1.442695, %v2332_v21 }
 0x6cb   :  { %2400 = vrot.lane.b32.xlu1 %v5732_v40, %s4631_s12 }
 0x6d3   :  { %2184 = vrot.lane.b32.xlu1 %v5742_v58, %s4630_s11 }
 0x6d5   :  { %v1362_v8 = vpop.xlane.xlu0 %1361 }
 0x6d6   :  { %2186 = vrot.lane.b32.xlu0 %v5732_v40, %s4630_s11  ;;  %4449 = vrcp.f32 %v1362_v8 }
 0x6d7   :  { %4451 = vrcp.f32 %v6146_v34 }
 0x6db   :  { %2398 = vrot.lane.b32.xlu1 %v5742_v58, %s4631_s12  ;;  %v2357_v58 = vsel %vm657_vm6, %v6240_v36, 0.0 }
 0x6dc   :  { %v4450_v40 = vpop.eup %4449 }
 0x6dd   :  { %v1365_v23 = vpop.xlane.xlu1 %1364  ;;  %v1717_v56 = vpop.xlane.xlu0 %1716  ;;  %v1392_v14 = vmul.f32 %v4450_v40, %v6080_v61 }
 0x6de   :  { %4453 = vrcp.f32 %v1365_v23  ;;  %v4452_v49 = vpop.eup %4451 }
 0x6df   :  { %4455 = vrcp.f32 %v1717_v56  ;;  %v1736_v33 = vmul.f32 %v4452_v49, %v6028_v44  ;;  %v2118_v44 = vsub.f32 %v5997_v43, %v2100_v25 }
 0x6e0   :  { %4457 = vpow2.f32 %v2342_v12  ;;  %v2119_v12 = vsub.f32 %v6017_v3, %v6128_v4 }
 0x6e1   :  { %4459 = vpow2.f32 %v2344_v45  ;;  %v2128_v56 = vmul.f32 1.442695, %v2118_v44 }
 0x6e4   :  { %v4454_v51 = vpop.eup %4453  ;;  %2358 = vadd.xlane.f32.xlu2 %v2357_v58 }
 0x6e5   :  { %v4456_v34 = vpop.eup %4455  ;;  %v1393_v0 = vmul.f32 %v4454_v51, %v6091_v2  ;;  %v1368_v24 = vpop.xlane.xlu2 %1367 }
 0x6e6   :  { %v1737_v11 = vmul.f32 %v4456_v34, %v6086_v31  ;;  %v6251_v17 = vpop.eup %4457  ;;  %4461 = vrcp.f32 %v1368_v24  ;;  %v2320_v2 = vpop.xlane.xlu1 %2319 }
 0x6e7   :  { %v1400_v8 = vpack.c.bf16 %v1393_v0, %v1392_v14  ;;  %v2360_v61 = vsel %vm657_vm6, %v6251_v17, 0.0  ;;  %v6258_v31 = vpop.eup %4459  ;;  %v2334_v25 = vsub.f32 %v6099_v19, %v2320_v2  ;;  %v2130_v0 = vmul.f32 1.442695, %v2119_v12 }
 0x6e8   :  { %v1742_v15 = vpack.c.bf16 %v1737_v11, %v1736_v33  ;;  %v2363_v40 = vsel %vm657_vm6, %v6258_v31, 0.0 }
 0x6e9   :  { %4023 = vmatmul.msk.bf16.vlgmr.msrb.gmra.mxu2 %vm657_vm6, %v1400_v8  ;;  %v2346_v33 = vmul.f32 1.442695, %v2334_v25 }
 0x6ea   :  { %4033 = vmatmul.msk.bf16.gmra.mxu3 %vm657_vm6, %v1742_v15 }
 0x6ec   :  { %2361 = vadd.xlane.f32.xlu2 %v2360_v61  ;;  %v4462_v23 = vpop.eup %4461 }
 0x6ed   :  { %v1371_v21 = vpop.xlane.xlu0 %1370  ;;  %v2109_v49 = vpop.xlane.xlu2 %2108  ;;  %v1394_v58 = vmul.f32 %v4462_v23, %v6104_v26 }
 0x6ee   :  { %4463 = vrcp.f32 %v1371_v21  ;;  %v2121_v3 = vsub.f32 %v6111_v1, %v2109_v49 }
 0x6ef   :  { %4465 = vpow2.f32 %v2128_v56 }
 0x6f4   :  { %v4464_v22 = vpop.eup %4463  ;;  %2364 = vadd.xlane.f32.xlu2 %v2363_v40 }
 0x6f5   :  { %v1395_v51 = vmul.f32 %v4464_v22, %v6109_v35  ;;  %v1374_v34 = vpop.xlane.xlu1 %1373  ;;  %v2106_v43 = vpop.xlane.xlu0 %2105  ;;  %v2134_v35 = vmul.f32 1.442695, %v2121_v3 }
 0x6f6   :  { %v2120_v14 = vsub.f32 %v6097_v7, %v2106_v43  ;;  %v6270_v26 = vpop.eup %4465 }
 0x6f7   :  { %v1401_v45 = vpack.c.bf16 %v1395_v51, %v1394_v58  ;;  %v2146_v7 = vsel %vm657_vm6, %v6270_v26, 0.0 }
 0x6f8   :  { %v2132_v4 = vmul.f32 1.442695, %v2120_v14 }
 0x6f9   :  { %4024 = vmatmul.msk.bf16.gmra.mxu2 %vm657_vm6, %v1401_v45 }
 0x6fa   :  { %4467 = vpow2.f32 %v2132_v4 }
 0x6fb   :  { %4469 = vpow2.f32 %v2130_v0 }
 0x6fc   :  { %4471 = vrcp.f32 %v1374_v34 }
 0x6fd   :  { %v1723_v11 = vpop.xlane.xlu1 %1722  ;;  %v2323_v8 = vpop.xlane.xlu0 %2322  ;;  %4473 = vpow2.f32 %v2346_v33 }
 0x6fe   :  { %v1377_v19 = vpop.xlane.xlu2 %1376  ;;  %v2335_v24 = vsub.f32 %v6142_v42, %v2323_v8  ;;  %v6302_v8 = vpop.f32.mrf.mxu3 }
 0x6ff   :  { %4475 = vrcp.f32 %v1377_v19 }
 0x700   :  { %v6274_v15 = vpop.eup %4467  ;;  %4477 = vpow2.f32 %v2134_v35  ;;  %2147 = vadd.xlane.f32.xlu0 %v2146_v7  ;;  %v2348_v56 = vmul.f32 1.442695, %v2335_v24 }
 0x701   :  { %v6276_v1 = vpop.eup %4469  ;;  %v2152_v61 = vsel %vm657_vm6, %v6274_v15, 0.0  ;;  %4479 = vrcp.f32 %v1723_v11 }
 0x702   :  { %2153 = vadd.xlane.f32.xlu2 %v2152_v61  ;;  %v4472_v2 = vpop.eup %4471  ;;  %v2149_v44 = vsel %vm657_vm6, %v6276_v1, 0.0 }
 0x703   :  { %v6281_v21 = vpop.eup %4473  ;;  %v1396_v42 = vmul.f32 %v4472_v2, %v6130_v52 }
 0x704   :  { %v2366_v34 = vsel %vm657_vm6, %v6281_v21, 0.0 }
 0x705   :  { %v4476_v23 = vpop.eup %4475  ;;  %2150 = vadd.xlane.f32.xlu1 %v2149_v44  ;;  %v2112_v12 = vpop.xlane.xlu1 %2111 }
 0x706   :  { %v1946_v40 = vpop.xlane.xlu0 %1945  ;;  %v6285_v22 = vpop.eup %4477  ;;  %v1397_v49 = vmul.f32 %v4476_v23, %v6148_v41  ;;  %v2122_v58 = vsub.f32 %v6163_v62, %v2112_v12 }
 0x707   :  { %v1720_v51 = vpop.xlane.xlu2 %1719  ;;  %v2155_v14 = vsel %vm657_vm6, %v6285_v22, 0.0  ;;  %v4480_v52 = vpop.eup %4479 }
 0x708   :  { %4481 = vrcp.f32 %v1720_v51  ;;  %v2136_v43 = vmul.f32 1.442695, %v2122_v58  ;;  %2367 = vadd.xlane.f32.xlu0 %v2366_v34  ;;  %v1402_v25 = vpack.c.bf16 %v1397_v49, %v1396_v42  ;;  %v1739_v33 = vmul.f32 %v4480_v52, %v6144_v39 }
 0x709   :  { %4483 = vpow2.f32 %v2348_v56 }
 0x70a   :  { %4485 = vpow2.f32 %v2136_v43  ;;  %4025 = vmatmul.msk.bf16.gmra.mxu2 %vm657_vm6, %v1402_v25  ;;  %2156 = vadd.xlane.f32.xlu2 %v2155_v14 }
 0x70b   :  { %4487 = vrcp.f32 %v1946_v40 }
 0x70d   :  { %v2326_v62 = vpop.xlane.xlu1 %2325 }
 0x70e   :  { %v4482_v41 = vpop.eup %4481  ;;  %v1380_v0 = vpop.xlane.xlu0 %1379  ;;  %v2336_v45 = vsub.f32 %v6177_v57, %v2326_v62 }
 0x70f   :  { %v1949_v3 = vpop.xlane.xlu2 %1948  ;;  %v1738_v4 = vmul.f32 %v4482_v41, %v6165_v53  ;;  %v6298_v35 = vpop.eup %4483 }
 0x710   :  { %4489 = vrcp.f32 %v1949_v3  ;;  %v6300_v11 = vpop.eup %4485  ;;  %v2350_v19 = vmul.f32 1.442695, %v2336_v45  ;;  %v2369_v53 = vsel %vm657_vm6, %v6298_v35, 0.0 }
 0x711   :  { %v1743_v7 = vpack.c.bf16 %v1739_v33, %v1738_v4  ;;  %v2158_v24 = vsel %vm657_vm6, %v6300_v11, 0.0  ;;  %v4488_v39 = vpop.eup %4487  ;;  %v4127_v33 = vpack.i.bf16 %v5935_v20, %v5929_v6 }
 0x712   :  { %4491 = vpow2.f32 %v2350_v19  ;;  %2159 = vadd.xlane.f32.xlu1 %v2158_v24  ;;  %2370 = vadd.xlane.f32.xlu2 %v2369_v53  ;;  %v6310_v44 = vmul.f32 %v4488_v39, %v6161_v60  ;;  %v1225_v60 = vpop.f32.mrf.mxu3  ;;  %v7475_v19 = vpack.c.bf16 %v5968_v29, %v5971_v16  ;;  %v7476_v53 = vld [vmem:[#allocation3_spill] sm:$0xff]  ;;  %v4157_v29 = vpack.i.bf16 %v5943_v10, %v5941_v30 }
 0x713   :  { %4034 = vmatmul.msk.bf16.gmra.mxu3 %vm657_vm6, %v1743_v7  ;;  %4493 = vrcp.f32 %v1380_v0  ;;  %v4132_v16 = vpack.i.bf16 %v1225_v60, %v6302_v8 }
 0x715   :  { %v1383_v61 = vpop.xlane.xlu1 %1382 }
 0x716   :  { %v4490_v57 = vpop.eup %4489  ;;  %v2115_v2 = vpop.xlane.xlu0 %2114  ;;  %4495 = vrcp.f32 %v1383_v61  ;;  %v7477_v61 = vpack.c.bf16 %v6122_v32, %v6125_v50  ;;  %v7478_v32 = vld [vmem:[#allocation19_spill] sm:$0xff] }
 0x717   :  { %v6313_v23 = vmul.f32 %v4490_v57, %v6179_v46  ;;  %v2191_v56 = vpop.permute.xlu2 %2190  ;;  %v2123_v12 = vsub.f32 %v6189_v27, %v2115_v2  ;;  %v4142_v57 = vpack.i.bf16 %v5939_v9, %v5937_v5  ;;  %v4172_v50 = vpack.i.bf16 %v7478_v32, %v5945_v48 }
 0x718   :  { %2212 = vmatpush.bf16.msrb.mxu3 %v2191_v56  ;;  %v6316_v40 = vpop.eup %4491 }
 0x719   :  { %v2138_v42 = vmul.f32 1.442695, %v2123_v12  ;;  %v1969_v49 = vpack.c.bf16 %v6313_v23, %v6310_v44  ;;  %v2372_v58 = vsel %vm657_vm6, %v6316_v40, 0.0  ;;  %v4494_v51 = vpop.eup %4493 }
 0x71a   :  { %2373 = vadd.xlane.f32.xlu2 %v2372_v58  ;;  %v1398_v34 = vmul.f32 %v4494_v51, %v6175_v37  ;;  %v1228_v45 = vpop.f32.mrf.mxu3 }
 0x71b   :  { %4497 = vpow2.f32 %v2138_v42 }
 0x71c   :  { %v4496_v46 = vpop.eup %4495 }
 0x71d   :  { %v1399_v43 = vmul.f32 %v4496_v46, %v6187_v63 }
 0x71e   :  { %v2329_v27 = vpop.xlane.xlu0 %2328 }
 0x71f   :  { %v2189_v25 = vpop.permute.xlu2 %2188  ;;  %v2337_v14 = vsub.f32 %v6197_v47, %v2329_v27  ;;  %v1403_v52 = vpack.c.bf16 %v1399_v43, %v1398_v34 }
 0x720   :  { %2213 = vmatpush.bf16.msrb.mxu3 %v2189_v25 }
 0x721   :  { %v6325_v41 = vpop.eup %4497  ;;  %v2352_v62 = vmul.f32 1.442695, %v2337_v14  ;;  %4026 = vmatmul.msk.bf16.gmra.mxu2 %vm657_vm6, %v1403_v52 }
 0x722   :  { %v2161_v0 = vsel %vm657_vm6, %v6325_v41, 0.0  ;;  %v1230_v4 = vpop.f32.mrf.mxu3 }
 0x723   :  { %4499 = vpow2.f32 %v2352_v62  ;;  %2162 = vadd.xlane.f32.xlu0 %v2161_v0  ;;  %v4147_v56 = vpack.i.bf16 %v1230_v4, %v1228_v45 }
 0x726   :  { %v2142_v47 = vpop.xlane.xlu0 %2141 }
 0x729   :  { %v6330_v37 = vpop.eup %4499 }
 0x72a   :  { %v2375_v63 = vsel %vm657_vm6, %v6330_v37, 0.0  ;;  %v1233_v39 = vpop.f32.mrf.mxu3 }
 0x72b   :  { %2376 = vadd.xlane.f32.xlu1 %v2375_v63 }
 0x72d   :  { %v2405_v3 = vpop.permute.xlu1 %2404 }
 0x72e   :  { %2426 = vmatpush.bf16.msrb.mxu2 %v2405_v3  ;;  %v2145_v24 = vpop.xlane.xlu0 %2144 }
 0x72f   :  { %4501 = vrcp.f32 %v2145_v24  ;;  %v7479_v24 = vld [vmem:[#allocation4_spill] sm:$0xff] }
 0x730   :  { %4503 = vrcp.f32 %v6242_v28 }
 0x731   :  { %4039 = vmatmul.msk.bf16.vlgmr.msra.gmra.mxu2 %vm657_vm6, %v7475_v19  ;;  %4505 = vrcp.f32 %v2142_v47 }
 0x732   :  { %4128 = vrot.lane.b32.xlu2 %v4127_v33, %s4632_s13  ;;  %v1235_v2 = vpop.f32.mrf.mxu3  ;;  %4507 = vrcp.f32 %v6231_v54 }
 0x733   :  { %v4162_v34 = vpack.i.bf16 %v1235_v2, %v1233_v39 }
 0x735   :  { %v2403_v7 = vpop.permute.xlu1 %2402  ;;  %v4502_v9 = vpop.eup %4501 }
 0x736   :  { %2427 = vmatpush.bf16.msrb.mxu2 %v2403_v7  ;;  %v2356_v20 = vpop.xlane.xlu0 %2355  ;;  %v4504_v30 = vpop.eup %4503  ;;  %v2173_v12 = vmul.f32 %v4502_v9, %v6211_v13 }
 0x737   :  { %2582 = vrot.lane.b32.xlu0 %v7476_v53, %s4620_s9  ;;  %v4506_v8 = vpop.eup %4505  ;;  %v1962_v42 = vmul.f32 %v4504_v30, %v6061_v38 }
 0x738   :  { %v4508_v28 = vpop.eup %4507  ;;  %v2172_v58 = vmul.f32 %v4506_v8, %v6203_v18 }
 0x739   :  { %v1963_v51 = vmul.f32 %v4508_v28, %v6053_v59 }
 0x73a   :  { %4143 = vrot.lane.b32.xlu2 %v4142_v57, %s4632_s13  ;;  %v1238_v54 = vpop.f32.mrf.mxu3  ;;  %v2180_v46 = vpack.c.bf16 %v2173_v12, %v2172_v58 }
 0x73b   :  { %v1968_v48 = vpack.c.bf16 %v1963_v51, %v1962_v42 }
 0x73d   :  { %v2401_v6 = vpop.permute.xlu1 %2400 }
 0x73e   :  { %2428 = vmatpush.bf16.msrb.mxu2 %v2401_v6 }
 0x741   :  { %4040 = vmatmul.msk.bf16.gmra.mxu2 %vm657_vm6, %v7477_v61 }
 0x742   :  { %4158 = vrot.lane.b32.xlu2 %v4157_v29, %s4632_s13  ;;  %v1240_v38 = vpop.f32.mrf.mxu3 }
 0x743   :  { %v4177_v13 = vpack.i.bf16 %v1240_v38, %v1238_v54 }
 0x744   :  { %4133 = vrot.lane.b32.xlu1 %v4132_v16, %s4633_s14 }
 0x745   :  { %v2185_v5 = vpop.permute.xlu1 %2184 }
 0x748   :  { %v2187_v10 = vpop.permute.xlu0 %2186 }
 0x749   :  { %2214 = vmatpush.bf16.msrb.mxu3 %v2187_v10 }
 0x74a   :  { %4173 = vrot.lane.b32.xlu2 %v4172_v50, %s4632_s13 }
 0x74c   :  { %4148 = vrot.lane.b32.xlu1 %v4147_v56, %s4633_s14 }
 0x74d   :  { %v2399_v60 = vpop.permute.xlu1 %2398  ;;  %2215 = vmatpush.bf16.msrb.mxu3 %v2185_v5 }
 0x74e   :  { %2429 = vmatpush.bf16.msrb.mxu2 %v2399_v60 }
 0x750   :  { %4047 = vmatmul.msk.bf16.vlgmr.msrb.gmra.mxu3 %vm657_vm6, %v2180_v46 }
 0x751   :  { %4041 = vmatmul.msk.bf16.gmra.mxu2 %vm657_vm6, %v1968_v48 }
 0x754   :  { %4163 = vrot.lane.b32.xlu1 %v4162_v34, %s4633_s14 }
 0x757   :  { %v2359_v43 = vpop.xlane.xlu2 %2358 }
 0x758   :  { %4509 = vrcp.f32 %v2359_v43 }
 0x759   :  { %4511 = vrcp.f32 %v2356_v20 }
 0x75c   :  { %4178 = vrot.lane.b32.xlu1 %v4177_v13, %s4633_s14 }
 0x75e   :  { %v4510_v18 = vpop.eup %4509 }
 0x75f   :  { %v2362_v59 = vpop.xlane.xlu2 %2361  ;;  %v4512_v27 = vpop.eup %4511  ;;  %v2387_v25 = vmul.f32 %v4510_v18, %v6240_v36 }
 0x760   :  { %v2386_v52 = vmul.f32 %v4512_v27, %v6219_v55 }
 0x761   :  { %4042 = vmatmul.msk.bf16.gmra.mxu2 %vm657_vm6, %v1969_v49 }
 0x762   :  { %v2394_v0 = vpack.c.bf16 %v2387_v25, %v2386_v52 }
 0x767   :  { %v2365_v62 = vpop.xlane.xlu2 %2364 }
 0x768   :  { %4513 = vrcp.f32 %v2365_v62 }
 0x769   :  { %4515 = vrcp.f32 %v2362_v59 }
 0x76c   :  { %v1437_v14 = vpop.f32.mrf.mxu2 }
 0x76e   :  { %v4514_v63 = vpop.eup %4513 }
 0x76f   :  { %v4516_v36 = vpop.eup %4515  ;;  %v2389_v55 = vmul.f32 %v4514_v63, %v6258_v31 }
 0x770   :  { %v2388_v33 = vmul.f32 %v4516_v36, %v6251_v17 }
 0x771   :  { %4055 = vmatmul.msk.bf16.vlgmr.msrb.gmra.mxu2 %vm657_vm6, %v2394_v0 }
 0x772   :  { %v2395_v53 = vpack.c.bf16 %v2389_v55, %v2388_v33 }
 0x773   :  { %v2148_v45 = vpop.xlane.xlu0 %2147 }
 0x774   :  { %v1439_v44 = vpop.f32.mrf.mxu2  ;;  %4517 = vrcp.f32 %v2148_v45 }
 0x775   :  { %v4137_v23 = vpack.i.bf16 %v1439_v44, %v1437_v14  ;;  %v2154_v49 = vpop.xlane.xlu2 %2153 }
 0x777   :  { %4138 = vrot.lane.b32.xlu0 %v4137_v23, %s4634_s15 }
 0x778   :  { %v2151_v47 = vpop.xlane.xlu1 %2150 }
 0x779   :  { %4519 = vrcp.f32 %v2151_v47 }
 0x77a   :  { %v4518_v4 = vpop.eup %4517 }
 0x77b   :  { %v2174_v39 = vmul.f32 %v4518_v4, %v6270_v26  ;;  %v2368_v6 = vpop.xlane.xlu0 %2367  ;;  %v6386_v26 = vpop.f32.mrf.mxu3 }
 0x77c   :  { %v1442_v3 = vpop.f32.mrf.mxu2  ;;  %4521 = vrcp.f32 %v2368_v6 }
 0x77d   :  { %v2157_v19 = vpop.xlane.xlu2 %2156 }
 0x77e   :  { %4523 = vrcp.f32 %v2157_v19 }
 0x77f   :  { %v4520_v7 = vpop.eup %4519  ;;  %2580 = vrot.lane.b32.xlu0 %v7479_v24, %s4620_s9  ;;  %4525 = vrcp.f32 %v2154_v49 }
 0x780   :  { %v2175_v57 = vmul.f32 %v4520_v7, %v6276_v1 }
 0x781   :  { %4056 = vmatmul.msk.bf16.gmra.mxu2 %vm657_vm6, %v2395_v53 }
 0x782   :  { %v2181_v20 = vpack.c.bf16 %v2175_v57, %v2174_v39  ;;  %v4522_v16 = vpop.eup %4521 }
 0x783   :  { %v2390_v9 = vmul.f32 %v4522_v16, %v6281_v21  ;;  %v6394_v28 = vpop.f32.mrf.mxu3 }
 0x784   :  { %v1444_v31 = vpop.f32.mrf.mxu2  ;;  %4048 = vmatmul.msk.bf16.gmra.mxu3 %vm657_vm6, %v2181_v20  ;;  %v4524_v61 = vpop.eup %4523 }
 0x785   :  { %v4152_v17 = vpack.i.bf16 %v1444_v31, %v1442_v3  ;;  %v2371_v29 = vpop.xlane.xlu2 %2370  ;;  %v4526_v1 = vpop.eup %4525  ;;  %v2177_v30 = vmul.f32 %v4524_v61, %v6285_v22  ;;  %v7481_v61 = vld [vmem:[#allocation12_spill] sm:$0xff] }
 0x786   :  { %4527 = vrcp.f32 %v2371_v29  ;;  %v2176_v8 = vmul.f32 %v4526_v1, %v6274_v15  ;;  %v2160_v56 = vpop.xlane.xlu1 %2159  ;;  %v7480_v29 = vld [vmem:[#allocation13_spill] sm:$0xff] }
 0x787   :  { %4153 = vrot.lane.b32.xlu0 %v4152_v17, %s4634_s15  ;;  %4529 = vrcp.f32 %v2160_v56 }
 0x788   :  { %v2182_v50 = vpack.c.bf16 %v2177_v30, %v2176_v8 }
 0x78c   :  { %v4528_v2 = vpop.eup %4527 }
 0x78d   :  { %v1447_v5 = vpop.f32.mrf.mxu2  ;;  %v2391_v10 = vmul.f32 %v4528_v2, %v6298_v35  ;;  %v2374_v21 = vpop.xlane.xlu2 %2373 }
 0x78e   :  { %v4530_v22 = vpop.eup %4529  ;;  %v6397_v35 = vpop.f32.mrf.mxu3 }
 0x78f   :  { %v2396_v32 = vpack.c.bf16 %v2391_v10, %v2390_v9  ;;  %v2178_v60 = vmul.f32 %v4530_v22, %v6300_v11 }
 0x791   :  { %4057 = vmatmul.msk.bf16.gmra.mxu2 %vm657_vm6, %v2396_v32 }
 0x794   :  { %4049 = vmatmul.msk.bf16.gmra.mxu3 %vm657_vm6, %v2182_v50 }
 0x795   :  { %v1449_v12 = vpop.f32.mrf.mxu2  ;;  %v4129_v33 = vpop.permute.xlu2 %4128 }
 0x796   :  { %v4167_v42 = vpack.i.bf16 %v1449_v12, %v1447_v5  ;;  %v2163_v54 = vpop.xlane.xlu0 %2162  ;;  %v6404_v59 = vpop.f32.mrf.mxu3  ;;  %v4131_v24 = vunpack.i.h.bf16 %v4129_v33  ;;  %v4130_v53 = vunpack.i.l.bf16 %v4129_v33 }
 0x797   :  { %4531 = vrcp.f32 %v2163_v54 }
 0x798   :  { %4168 = vrot.lane.b32.xlu0 %v4167_v42, %s4634_s15  ;;  %4533 = vrcp.f32 %v2374_v21  ;;  %v1554_v16 = vsel %vm603_vm5, %v7480_v29, %v4131_v24  ;;  %v1553_v1 = vsel %vm603_vm5, %v7481_v61, %v4130_v53 }
 0x79d   :  { %v4532_v15 = vpop.eup %4531  ;;  %v4144_v50 = vpop.permute.xlu2 %4143 }
 0x79e   :  { %v2377_v58 = vpop.xlane.xlu1 %2376  ;;  %v2179_v51 = vmul.f32 %v4532_v15, %v6325_v41  ;;  %v4534_v46 = vpop.eup %4533  ;;  %v4146_v42 = vunpack.i.h.bf16 %v4144_v50  ;;  %v4145_v54 = vunpack.i.l.bf16 %v4144_v50 }
 0x79f   :  { %4535 = vrcp.f32 %v2377_v58  ;;  %v2392_v13 = vmul.f32 %v4534_v46, %v6316_v40  ;;  %v6407_v25 = vpop.f32.mrf.mxu3  ;;  %v7482_v46 = vld [vmem:[#allocation15_spill] sm:$0xff] }
 0x7a0   :  { %v2183_v48 = vpack.c.bf16 %v2179_v51, %v2178_v60 }
 0x7a4   :  { %v1452_v38 = vpop.f32.mrf.mxu2  ;;  %4050 = vmatmul.msk.bf16.gmra.mxu3 %vm657_vm6, %v2183_v48  ;;  %v1556_v48 = vsel %vm603_vm5, %v7482_v46, %v4146_v42  ;;  %v7487_v42 = vld [vmem:[#allocation5_spill] sm:$0xff] }
 0x7a5   :  { %v4536_v34 = vpop.eup %4535 }
 0x7a6   :  { %v2393_v43 = vmul.f32 %v4536_v34, %v6330_v37  ;;  %v7483_v34 = vld [vmem:[#allocation14_spill] sm:$0xff] }
 0x7a7   :  { %v6410_v52 = vpop.f32.mrf.mxu3 }
 0x7a8   :  { %v2397_v18 = vpack.c.bf16 %v2393_v43, %v2392_v13 }
 0x7a9   :  { %v2583_v11 = vpop.permute.xlu0 %2582 }
 0x7aa   :  { %4058 = vmatmul.msk.bf16.gmra.mxu2 %vm657_vm6, %v2397_v18  ;;  %2616 = vmatpush.bf16.msra.mxu1 %v2583_v11 }
 0x7ac   :  { %v1454_v27 = vpop.f32.mrf.mxu2 }
 0x7ad   :  { %v4182_v41 = vpack.i.bf16 %v1454_v27, %v1452_v38  ;;  %v1555_v38 = vsel %vm603_vm5, %v7483_v34, %v4145_v54 }
 0x7af   :  { %4183 = vrot.lane.b32.xlu0 %v4182_v41, %s4634_s15  ;;  %v6413_v37 = vpop.f32.mrf.mxu3 }
 0x7b4   :  { %v2003_v14 = vpop.f32.mrf.mxu2 }
 0x7b6   :  { %v4134_v19 = vpop.permute.xlu1 %4133 }
 0x7b7   :  { %v6415_v45 = vpop.f32.mrf.mxu3  ;;  %v4136_v39 = vunpack.i.h.bf16 %v4134_v19  ;;  %v4135_v57 = vunpack.i.l.bf16 %v4134_v19  ;;  %v7485_v19 = vld [vmem:[#allocation16_spill] sm:$0xff] }
 0x7b9   :  { %v1563_v2 = vsel %vm1561_vm7, %v1554_v16, %v4136_v39  ;;  %v1562_v5 = vsel %vm1561_vm7, %v1553_v1, %v4135_v57 }
 0x7bc   :  { %v2005_v62 = vpop.f32.mrf.mxu2 }
 0x7bd   :  { %v4187_v40 = vpack.i.bf16 %v2005_v62, %v2003_v14  ;;  %v4159_v14 = vpop.permute.xlu2 %4158 }
 0x7be   :  { %v4149_v56 = vpop.permute.xlu1 %4148 }
 0x7bf   :  { %4188 = vrot.lane.b32.xlu2 %v4187_v40, %s4632_s13  ;;  %v4151_v21 = vunpack.i.h.bf16 %v4149_v56  ;;  %v4150_v22 = vunpack.i.l.bf16 %v4149_v56  ;;  %v7486_v56 = vld [vmem:[#allocation18_spill] sm:$0xff] }
 0x7c1   :  { %v1565_v13 = vsel %vm1561_vm7, %v1556_v48, %v4151_v21  ;;  %v1564_v43 = vsel %vm1561_vm7, %v1555_v38, %v4150_v22 }
 0x7c4   :  { %v2008_v0 = vpop.f32.mrf.mxu2 }
 0x7c5   :  { %v4174_v16 = vpop.permute.xlu2 %4173 }
 0x7c6   :  { %v4164_v40 = vpop.permute.xlu1 %4163 }
 0x7cc   :  { %v2010_v44 = vpop.f32.mrf.mxu2 }
 0x7cd   :  { %v4202_v23 = vpack.i.bf16 %v2010_v44, %v2008_v0  ;;  %v4161_v0 = vunpack.i.h.bf16 %v4159_v14  ;;  %v4160_v44 = vunpack.i.l.bf16 %v4159_v14 }
 0x7ce   :  { %v4179_v61 = vpop.permute.xlu1 %4178 }
 0x7cf   :  { %4203 = vrot.lane.b32.xlu2 %v4202_v23, %s4632_s13 }
 0x7d3   :  { %v2217_v49 = vpop.f32.mrf.mxu3 }
 0x7d4   :  { %v2013_v63 = vpop.f32.mrf.mxu2 }
 0x7db   :  { %v2219_v47 = vpop.f32.mrf.mxu3 }
 0x7dc   :  { %v4192_v36 = vpack.i.bf16 %v2219_v47, %v2217_v49  ;;  %v2015_v55 = vpop.f32.mrf.mxu2  ;;  %v4166_v49 = vunpack.i.h.bf16 %v4164_v40 }
 0x7dd   :  { %v4217_v3 = vpack.i.bf16 %v2015_v55, %v2013_v63  ;;  %v4165_v63 = vunpack.i.l.bf16 %v4164_v40 }
 0x7de   :  { %4193 = vrot.lane.b32.xlu1 %v4192_v36, %s4633_s14 }
 0x7df   :  { %4218 = vrot.lane.b32.xlu2 %v4217_v3, %s4632_s13 }
 0x7e4   :  { %v2018_v4 = vpop.f32.mrf.mxu2 }
 0x7e9   :  { %v4139_v7 = vpop.permute.xlu0 %4138 }
 0x7ea   :  { %v4141_v6 = vunpack.i.h.bf16 %v4139_v7  ;;  %v4140_v20 = vunpack.i.l.bf16 %v4139_v7  ;;  %v1557_v7 = vsel %vm603_vm5, %v7485_v19, %v4160_v44 }
 0x7eb   :  { %v1566_v53 = vsel %vm1561_vm7, %v1557_v7, %v4165_v63 }
 0x7ec   :  { %v2020_v31 = vpop.f32.mrf.mxu2  ;;  %v1572_v9 = vsel %vm1570_vm8, %v1563_v2, %v4141_v6  ;;  %v1571_v30 = vsel %vm1570_vm8, %v1562_v5, %v4140_v20  ;;  %v4176_v2 = vunpack.i.h.bf16 %v4174_v16  ;;  %v4175_v5 = vunpack.i.l.bf16 %v4174_v16 }
 0x7ed   :  { %v4232_v17 = vpack.i.bf16 %v2020_v31, %v2018_v4  ;;  %v2571_v8 = vpack.c.bf16 %v1572_v9, %v1571_v30  ;;  %v7484_v4 = vld [vmem:[#allocation17_spill] sm:$0xff]  ;;  %v4181_v30 = vunpack.i.h.bf16 %v4179_v61 }
 0x7ee   :  { %v1558_v33 = vsel %vm603_vm5, %v7484_v4, %v4161_v0  ;;  %v1559_v54 = vsel %vm603_vm5, %v7487_v42, %v4175_v5 }
 0x7ef   :  { %4233 = vrot.lane.b32.xlu2 %v4232_v17, %s4632_s13  ;;  %v1567_v24 = vsel %vm1561_vm7, %v1558_v33, %v4166_v49 }
 0x7f1   :  { %v2581_v10 = vpop.permute.xlu0 %2580 }
 0x7f2   :  { %2617 = vmatpush.bf16.msra.mxu1 %v2581_v10  ;;  %v4180_v10 = vunpack.i.l.bf16 %v4179_v61 }
 0x7f4   :  { %v2431_v32 = vpop.f32.mrf.mxu2 }
 0x7f5   :  { %4059 = vmatmul.msk.bf16.vlgmr.msra.gmra.mxu1 %vm37_vm0, %v2571_v8 }
 0x7f9   :  { %v4154_v12 = vpop.permute.xlu0 %4153 }
 0x7fa   :  { %v4156_v15 = vunpack.i.h.bf16 %v4154_v12  ;;  %v4155_v58 = vunpack.i.l.bf16 %v4154_v12  ;;  %v1560_v12 = vsel %vm603_vm5, %v7486_v56, %v4176_v2 }
 0x7fc   :  { %v2433_v51 = vpop.f32.mrf.mxu2  ;;  %v1574_v18 = vsel %vm1570_vm8, %v1565_v13, %v4156_v15  ;;  %v1573_v27 = vsel %vm1570_vm8, %v1564_v43, %v4155_v58  ;;  %v1569_v15 = vsel %vm1561_vm7, %v1560_v12, %v4181_v30  ;;  %v1568_v58 = vsel %vm1561_vm7, %v1559_v54, %v4180_v10 }
 0x7fd   :  { %v4197_v60 = vpack.i.bf16 %v2433_v51, %v2431_v32  ;;  %v2572_v41 = vpack.c.bf16 %v1574_v18, %v1573_v27 }
 0x7ff   :  { %4198 = vrot.lane.b32.xlu0 %v4197_v60, %s4634_s15 }
 0x804   :  { %v2436_v11 = vpop.f32.mrf.mxu2 }
 0x805   :  { %4060 = vmatmul.msk.bf16.gmra.mxu1 %vm37_vm0, %v2572_v41 }
 0x807   :  { %v2222_v62 = vpop.f32.mrf.mxu3 }
 0x80a   :  { %v4169_v23 = vpop.permute.xlu0 %4168 }
 0x80b   :  { %v4171_v47 = vunpack.i.h.bf16 %v4169_v23  ;;  %v4170_v36 = vunpack.i.l.bf16 %v4169_v23 }
 0x80c   :  { %v2438_v55 = vpop.f32.mrf.mxu2 }
 0x80d   :  { %v4212_v3 = vpack.i.bf16 %v2438_v55, %v2436_v11  ;;  %v1576_v57 = vsel %vm1570_vm8, %v1567_v24, %v4171_v47  ;;  %v1575_v6 = vsel %vm1570_vm8, %v1566_v53, %v4170_v36 }
 0x80e   :  { %v2573_v31 = vpack.c.bf16 %v1576_v57, %v1575_v6  ;;  %v4603_v6 = vld [vmem:[%s7423_s0 + $0x8] sm:$0xff] }
 0x80f   :  { %4213 = vrot.lane.b32.xlu0 %v4212_v3, %s4634_s15  ;;  %v2224_v39 = vpop.f32.mrf.mxu3 }
 0x810   :  { %v4207_v20 = vpack.i.bf16 %v2224_v39, %v2222_v62  ;;  %v6467_v62 = vld [vmem:[%s7424_s2] sm:$0xff] }
 0x811   :  { %v6470_v40 = vperm.slane %v6467_v62, 5 }
 0x812   :  { %4208 = vrot.lane.b32.xlu1 %v4207_v20, %s4633_s14 }
 0x814   :  { %v2441_v17 = vpop.f32.mrf.mxu2 }
 0x815   :  { %4061 = vmatmul.msk.bf16.gmra.mxu1 %vm37_vm0, %v2573_v31 }
 0x817   :  { %v2227_v29 = vpop.f32.mrf.mxu3 }
 0x819   :  { %v4189_v27 = vpop.permute.xlu2 %4188 }
 0x81a   :  { %v4191_v11 = vunpack.i.h.bf16 %v4189_v27  ;;  %v4190_v14 = vunpack.i.l.bf16 %v4189_v27 }
 0x81c   :  { %v2443_v1 = vpop.f32.mrf.mxu2  ;;  %v2548_v49 = vsel %vm603_vm5, %v6394_v28, %v4191_v11  ;;  %v2547_v63 = vsel %vm603_vm5, %v6386_v26, %v4190_v14  ;;  %v4602_v28 = vld [vmem:[%s7423_s0] sm:$0xff] }
 0x81d   :  { %v4227_v9 = vpack.i.bf16 %v2443_v1, %v2441_v17 }
 0x81f   :  { %v2229_v8 = vpop.f32.mrf.mxu3  ;;  %4228 = vrot.lane.b32.xlu0 %v4227_v9, %s4634_s15  ;;  %v4604_v9 = vld [vmem:[%s7423_s0 + $0x10] sm:$0xff] }
 0x820   :  { %v4222_v32 = vpack.i.bf16 %v2229_v8, %v2227_v29 }
 0x821   :  { %v4184_v50 = vpop.permute.xlu0 %4183 }
 0x822   :  { %v4186_v21 = vunpack.i.h.bf16 %v4184_v50  ;;  %v4185_v22 = vunpack.i.l.bf16 %v4184_v50  ;;  %4223 = vrot.lane.b32.xlu1 %v4222_v32, %s4633_s14 }
 0x824   :  { %v1578_v51 = vsel %vm1570_vm8, %v1569_v15, %v4186_v21  ;;  %v1577_v60 = vsel %vm1570_vm8, %v1568_v58, %v4185_v22 }
 0x825   :  { %v2574_v46 = vpack.c.bf16 %v1578_v51, %v1577_v60 }
 0x827   :  { %v2232_v48 = vpop.f32.mrf.mxu3  ;;  %4062 = vmatmul.msk.bf16.gmra.mxu1 %vm37_vm0, %v2574_v46 }
 0x829   :  { %v4204_v31 = vpop.permute.xlu2 %4203 }
 0x82a   :  { %v4206_v29 = vunpack.i.h.bf16 %v4204_v31  ;;  %v4205_v16 = vunpack.i.l.bf16 %v4204_v31 }
 0x82c   :  { %v2550_v32 = vsel %vm603_vm5, %v6404_v59, %v4206_v29  ;;  %v2549_v50 = vsel %vm603_vm5, %v6397_v35, %v4205_v16  ;;  %v4605_v35 = vld [vmem:[%s7423_s0 + $0x18] sm:$0xff]  ;;  %v4608_v16 = vld [vmem:[%s7423_s0 + $0x30] sm:$0xff] }
 0x82d   :  { %v2446_v34 = vpop.f32.mrf.mxu2 }
 0x82f   :  { %v2234_v38 = vpop.f32.mrf.mxu3 }
 0x830   :  { %v4237_v13 = vpack.i.bf16 %v2234_v38, %v2232_v48 }
 0x832   :  { %4238 = vrot.lane.b32.xlu1 %v4237_v13, %s4633_s14 }
 0x835   :  { %v2448_v43 = vpop.f32.mrf.mxu2 }
 0x836   :  { %v4242_v18 = vpack.i.bf16 %v2448_v43, %v2446_v34 }
 0x838   :  { %4243 = vrot.lane.b32.xlu0 %v4242_v18, %s4634_s15 }
 0x839   :  { %v4219_v46 = vpop.permute.xlu2 %4218 }
 0x83a   :  { %v4221_v34 = vunpack.i.h.bf16 %v4219_v46  ;;  %v4220_v38 = vunpack.i.l.bf16 %v4219_v46 }
 0x850   :  { %v4194_v41 = vpop.permute.xlu1 %4193 }
 0x851   :  { %v4196_v0 = vunpack.i.h.bf16 %v4194_v41  ;;  %v4195_v44 = vunpack.i.l.bf16 %v4194_v41  ;;  %v4606_v41 = vld [vmem:[%s7423_s0 + $0x20] sm:$0xff] }
 0x853   :  { %v2556_v3 = vsel %vm1561_vm7, %v2548_v49, %v4196_v0  ;;  %v2555_v4 = vsel %vm1561_vm7, %v2547_v63, %v4195_v44  ;;  %v2552_v44 = vsel %vm603_vm5, %v6410_v52, %v4221_v34 }
 0x871   :  { %v4199_v23 = vpop.permute.xlu0 %4198 }
 0x872   :  { %v4201_v47 = vunpack.i.h.bf16 %v4199_v23  ;;  %v4200_v36 = vunpack.i.l.bf16 %v4199_v23  ;;  %v2619_v55 = vpop.f32.mrf.mxu1  ;;  %v2551_v23 = vsel %vm603_vm5, %v6407_v25, %v4220_v38  ;;  %v4607_v25 = vld [vmem:[%s7423_s0 + $0x28] sm:$0xff] }
 0x873   :  { %v2620_v33 = vadd.f32 %v2619_v55, %v6470_v40 }
 0x874   :  { %v2564_v19 = vsel %vm1570_vm8, %v2556_v3, %v4201_v47  ;;  %v2563_v7 = vsel %vm1570_vm8, %v2555_v4, %v4200_v36 }
 0x875   :  { %v2575_v24 = vpack.c.bf16 %v2564_v19, %v2563_v7  ;;  %v6484_v53 = vadd.f32 %v4602_v28, %v2620_v33  ;;  %v4234_v28 = vpop.permute.xlu2 %4233 }
 0x876   :  { %v4235_v31 = vunpack.i.l.bf16 %v4234_v28 }
 0x877   :  { %4063 = vmatmul.msk.bf16.gmra.mxu1 %vm37_vm0, %v2575_v24  ;;  %v2675_v26 = vsel %vm37_vm0, %v6484_v53, 0.0 }
 0x878   :  { %2676 = vadd.xlane.f32.xlu2 %v2675_v26 }
 0x87a   :  { %v2621_v39 = vpop.f32.mrf.mxu1 }
 0x87b   :  { %v2622_v57 = vadd.f32 %v2621_v39, %v6470_v40 }
 0x87d   :  { %v6493_v20 = vadd.f32 %v4603_v6, %v2622_v57  ;;  %v4236_v6 = vunpack.i.h.bf16 %v4234_v28 }
 0x87f   :  { %v2678_v17 = vsel %vm37_vm0, %v6493_v20, 0.0 }
 0x880   :  { %2679 = vadd.xlane.f32.xlu1 %v2678_v17 }
 0x881   :  { %v4214_v1 = vpop.permute.xlu0 %4213 }
 0x882   :  { %v2624_v61 = vpop.f32.mrf.mxu1  ;;  %v4216_v56 = vunpack.i.h.bf16 %v4214_v1  ;;  %v4215_v12 = vunpack.i.l.bf16 %v4214_v1 }
 0x883   :  { %v2625_v2 = vadd.f32 %v2624_v61, %v6470_v40 }
 0x884   :  { %v4209_v5 = vpop.permute.xlu1 %4208 }
 0x885   :  { %v6501_v30 = vadd.f32 %v4604_v9, %v2625_v2  ;;  %v4211_v10 = vunpack.i.h.bf16 %v4209_v5  ;;  %v4210_v8 = vunpack.i.l.bf16 %v4209_v5  ;;  %v2554_v5 = vsel %vm603_vm5, %v6415_v45, %v4236_v6 }
 0x886   :  { %v2553_v9 = vsel %vm603_vm5, %v6413_v37, %v4235_v31  ;;  %v4612_v31 = vld [vmem:[%s7423_s0 + $0x50] sm:$0xff] }
 0x887   :  { %v2558_v42 = vsel %vm1561_vm7, %v2550_v32, %v4211_v10  ;;  %v2557_v54 = vsel %vm1561_vm7, %v2549_v50, %v4210_v8  ;;  %v2681_v21 = vsel %vm37_vm0, %v6501_v30, 0.0 }
 0x888   :  { %2682 = vadd.xlane.f32.xlu0 %v2681_v21  ;;  %v2565_v22 = vsel %vm1570_vm8, %v2557_v54, %v4215_v12  ;;  %v2566_v15 = vsel %vm1570_vm8, %v2558_v42, %v4216_v56  ;;  %v7488_v21 = vld [vmem:[#allocation2_spill] sm:$0xff] }
 0x889   :  { %v2576_v58 = vpack.c.bf16 %v2566_v15, %v2565_v22 }
 0x88a   :  { %v2626_v51 = vpop.f32.mrf.mxu1 }
 0x88b   :  { %v2627_v59 = vadd.f32 %v2626_v51, %v6470_v40  ;;  %4064 = vmatmul.msk.bf16.gmra.mxu1 %vm37_vm0, %v2576_v58 }
 0x88d   :  { %v6518_v60 = vadd.f32 %v4605_v35, %v2627_v59 }
 0x88f   :  { %v2684_v48 = vsel %vm37_vm0, %v6518_v60, 0.0 }
 0x890   :  { %2685 = vadd.xlane.f32.xlu2 %v2684_v48  ;;  %v4609_v48 = vld [vmem:[%s7423_s0 + $0x38] sm:$0xff] }
 0x891   :  { %v4229_v43 = vpop.permute.xlu0 %4228 }
 0x892   :  { %v2629_v13 = vpop.f32.mrf.mxu1  ;;  %v4231_v49 = vunpack.i.h.bf16 %v4229_v43  ;;  %v4230_v63 = vunpack.i.l.bf16 %v4229_v43 }
 0x893   :  { %v2630_v18 = vadd.f32 %v2629_v13, %v6470_v40 }
 0x894   :  { %v4224_v27 = vpop.permute.xlu1 %4223 }
 0x895   :  { %v6526_v11 = vadd.f32 %v4606_v41, %v2630_v18  ;;  %v4226_v14 = vunpack.i.h.bf16 %v4224_v27  ;;  %v4225_v0 = vunpack.i.l.bf16 %v4224_v27 }
 0x897   :  { %v2560_v47 = vsel %vm1561_vm7, %v2552_v44, %v4226_v14  ;;  %v2559_v36 = vsel %vm1561_vm7, %v2551_v23, %v4225_v0  ;;  %v2687_v55 = vsel %vm37_vm0, %v6526_v11, 0.0  ;;  %v4610_v0 = vld [vmem:[%s7423_s0 + $0x40] sm:$0xff] }
 0x898   :  { %2688 = vadd.xlane.f32.xlu1 %v2687_v55  ;;  %v2567_v3 = vsel %vm1570_vm8, %v2559_v36, %v4230_v63  ;;  %v2568_v4 = vsel %vm1570_vm8, %v2560_v47, %v4231_v49 }
 0x899   :  { %v2577_v33 = vpack.c.bf16 %v2568_v4, %v2567_v3 }
 0x89a   :  { %v2631_v19 = vpop.f32.mrf.mxu1 }
 0x89b   :  { %v2632_v52 = vadd.f32 %v2631_v19, %v6470_v40  ;;  %4065 = vmatmul.msk.bf16.gmra.mxu1 %vm37_vm0, %v2577_v33  ;;  %v4611_v33 = vld [vmem:[%s7423_s0 + $0x48] sm:$0xff] }
 0x89d   :  { %v6543_v7 = vadd.f32 %v4607_v25, %v2632_v52 }
 0x89f   :  { %v2690_v24 = vsel %vm37_vm0, %v6543_v7, 0.0 }
 0x8a0   :  { %2691 = vadd.xlane.f32.xlu2 %v2690_v24 }
 0x8a4   :  { %v4239_v26 = vpop.permute.xlu1 %4238  ;;  %v2634_v39 = vpop.f32.mrf.mxu1 }
 0x8a5   :  { %v2635_v57 = vadd.f32 %v2634_v39, %v6470_v40  ;;  %v4241_v17 = vunpack.i.h.bf16 %v4239_v26  ;;  %v4240_v29 = vunpack.i.l.bf16 %v4239_v26 }
 0x8a7   :  { %v6551_v61 = vadd.f32 %v4608_v16, %v2635_v57  ;;  %v2562_v32 = vsel %vm1561_vm7, %v2554_v5, %v4241_v17  ;;  %v2561_v50 = vsel %vm1561_vm7, %v2553_v9, %v4240_v29 }
 0x8a9   :  { %v2693_v2 = vsel %vm37_vm0, %v6551_v61, 0.0 }
 0x8aa   :  { %v4244_v1 = vpop.permute.xlu0 %4243  ;;  %2694 = vadd.xlane.f32.xlu2 %v2693_v2 }
 0x8ab   :  { %v4246_v10 = vunpack.i.h.bf16 %v4244_v1  ;;  %v4245_v8 = vunpack.i.l.bf16 %v4244_v1 }
 0x8ac   :  { %v2636_v22 = vpop.f32.mrf.mxu1 }
 0x8ad   :  { %v2570_v56 = vsel %vm1570_vm8, %v2562_v32, %v4246_v10  ;;  %v2569_v12 = vsel %vm1570_vm8, %v2561_v50, %v4245_v8  ;;  %v2637_v58 = vadd.f32 %v2636_v22, %v6470_v40  ;;  %v4613_v32 = vld [vmem:[%s7423_s0 + $0x58] sm:$0xff] }
 0x8ae   :  { %v2578_v42 = vpack.c.bf16 %v2570_v56, %v2569_v12 }
 0x8af   :  { %v6576_v34 = vadd.f32 %v4609_v48, %v2637_v58  ;;  %v4614_v58 = vld [vmem:[%s7423_s0 + $0x60] sm:$0xff] }
 0x8b0   :  { %4066 = vmatmul.msk.bf16.gmra.mxu1 %vm37_vm0, %v2578_v42 }
 0x8b1   :  { %v2696_v27 = vsel %vm37_vm0, %v6576_v34, 0.0 }
 0x8eb   :  { %v2677_v54 = vpop.xlane.xlu2 %2676 }
 0x8ec   :  { %v2723_v45 = vmul.f32 %v2677_v54, %v7488_v21 }
 0x8ee   :  { %v6566_v37 = vsub.f32 %v6484_v53, %v2723_v45 }
 0x8f0   :  { %v2755_v15 = vmul.f32 %v6566_v37, %v6566_v37 }
 0x8f2   :  { %v2771_v51 = vsel %vm37_vm0, %v2755_v15, 0.0 }
 0x8f3   :  { %v2680_v59 = vpop.xlane.xlu1 %2679  ;;  %2772 = vadd.xlane.f32.xlu0 %v2771_v51 }
 0x8f4   :  { %v2724_v35 = vmul.f32 %v2680_v59, %v7488_v21  ;;  %v2639_v46 = vpop.f32.mrf.mxu1 }
 0x8f5   :  { %v2640_v43 = vadd.f32 %v2639_v46, %v6470_v40 }
 0x8f6   :  { %v6579_v38 = vsub.f32 %v6493_v20, %v2724_v35 }
 0x8f7   :  { %v6591_v44 = vadd.f32 %v4610_v0, %v2640_v43 }
 0x8f8   :  { %v2756_v13 = vmul.f32 %v6579_v38, %v6579_v38 }
 0x8f9   :  { %v2699_v55 = vsel %vm37_vm0, %v6591_v44, 0.0 }
 0x8fa   :  { %v2774_v18 = vsel %vm37_vm0, %v2756_v13, 0.0 }
 0x8fb   :  { %v2683_v41 = vpop.xlane.xlu0 %2682  ;;  %2775 = vadd.xlane.f32.xlu1 %v2774_v18  ;;  %2697 = vadd.xlane.f32.xlu0 %v2696_v27  ;;  %v4615_v27 = vld [vmem:[%s7423_s0 + $0x68] sm:$0xff] }
 0x8fc   :  { %v2725_v14 = vmul.f32 %v2683_v41, %v7488_v21  ;;  %v2641_v49 = vpop.f32.mrf.mxu1 }
 0x8fd   :  { %v2642_v47 = vadd.f32 %v2641_v49, %v6470_v40 }
 0x8fe   :  { %v6594_v23 = vsub.f32 %v6501_v30, %v2725_v14 }
 0x8ff   :  { %v6606_v19 = vadd.f32 %v4611_v33, %v2642_v47 }
 0x900   :  { %v2757_v63 = vmul.f32 %v6594_v23, %v6594_v23 }
 0x901   :  { %v2702_v26 = vsel %vm37_vm0, %v6606_v19, 0.0 }
 0x902   :  { %v2777_v36 = vsel %vm37_vm0, %v2757_v63, 0.0  ;;  %v4616_v63 = vld [vmem:[%s7423_s0 + $0x70] sm:$0xff] }
 0x903   :  { %2778 = vadd.xlane.f32.xlu1 %v2777_v36  ;;  %2700 = vadd.xlane.f32.xlu0 %v2699_v55  ;;  %v2686_v3 = vpop.xlane.xlu2 %2685  ;;  %v4109_v55 = vld [vmem:[%s7425_s1 + $0x14] sm:$0xf] }
 0x904   :  { %v2726_v4 = vmul.f32 %v2686_v3, %v7488_v21  ;;  %v4071_v3 = vld [vmem:[%s7425_s1 + $0x18] sm:$0xf0] }
 0x905   :  { %v6683_v33 = vor.u32 %v4109_v55, %v4071_v3 }
 0x906   :  { %v6609_v52 = vsub.f32 %v6518_v60, %v2726_v4 }
 0x907   :  { %3108 = vmatpush.bf16.msra.mxu3 %v6683_v33 }
 0x908   :  { %v2644_v25 = vpop.f32.mrf.mxu1  ;;  %v2758_v24 = vmul.f32 %v6609_v52, %v6609_v52 }
 0x909   :  { %v2645_v28 = vadd.f32 %v2644_v25, %v6470_v40 }
 0x90a   :  { %v2780_v39 = vsel %vm37_vm0, %v2758_v24, 0.0 }
 0x90b   :  { %2703 = vadd.xlane.f32.xlu1 %v2702_v26  ;;  %v2689_v57 = vpop.xlane.xlu1 %2688  ;;  %2781 = vadd.xlane.f32.xlu2 %v2780_v39  ;;  %v6621_v17 = vadd.f32 %v4612_v31, %v2645_v28  ;;  %v4107_v28 = vld [vmem:[%s7425_s1 + $0x4] sm:$0xf]  ;;  %v4067_v26 = vld [vmem:[%s7425_s1 + $0x8] sm:$0xf0] }
 0x90c   :  { %v2727_v6 = vmul.f32 %v2689_v57, %v7488_v21  ;;  %v6693_v39 = vor.u32 %v4107_v28, %v4067_v26 }
 0x90d   :  { %v2705_v5 = vsel %vm37_vm0, %v6621_v17, 0.0 }
 0x90e   :  { %v6624_v29 = vsub.f32 %v6526_v11, %v2727_v6  ;;  %3109 = vmatpush.bf16.msra.mxu3 %v6693_v39 }
 0x910   :  { %v2646_v16 = vpop.f32.mrf.mxu1  ;;  %v2759_v1 = vmul.f32 %v6624_v29, %v6624_v29 }
 0x911   :  { %v2647_v2 = vadd.f32 %v2646_v16, %v6470_v40 }
 0x912   :  { %v2783_v9 = vsel %vm37_vm0, %v2759_v1, 0.0 }
 0x913   :  { %2706 = vadd.xlane.f32.xlu1 %v2705_v5  ;;  %2784 = vadd.xlane.f32.xlu2 %v2783_v9  ;;  %v2692_v10 = vpop.xlane.xlu2 %2691  ;;  %v6636_v50 = vadd.f32 %v4613_v32, %v2647_v2 }
 0x914   :  { %v2728_v8 = vmul.f32 %v2692_v10, %v7488_v21 }
 0x915   :  { %v2708_v45 = vsel %vm37_vm0, %v6636_v50, 0.0 }
 0x916   :  { %v6639_v56 = vsub.f32 %v6543_v7, %v2728_v8 }
 0x918   :  { %v2649_v12 = vpop.f32.mrf.mxu1  ;;  %v2760_v42 = vmul.f32 %v6639_v56, %v6639_v56 }
 0x919   :  { %v2650_v54 = vadd.f32 %v2649_v12, %v6470_v40 }
 0x91a   :  { %v2786_v22 = vsel %vm37_vm0, %v2760_v42, 0.0 }
 0x91b   :  { %2709 = vadd.xlane.f32.xlu2 %v2708_v45  ;;  %2787 = vadd.xlane.f32.xlu0 %v2786_v22  ;;  %v6650_v51 = vadd.f32 %v4614_v58, %v2650_v54 }
 0x91d   :  { %v2695_v15 = vpop.xlane.xlu2 %2694  ;;  %v2711_v48 = vsel %vm37_vm0, %v6650_v51, 0.0 }
 0x91e   :  { %v2729_v59 = vmul.f32 %v2695_v15, %v7488_v21 }
 0x920   :  { %v6654_v35 = vsub.f32 %v6551_v61, %v2729_v59  ;;  %v2651_v46 = vpop.f32.mrf.mxu1 }
 0x921   :  { %v2652_v43 = vadd.f32 %v2651_v46, %v6470_v40 }
 0x922   :  { %v2761_v13 = vmul.f32 %v6654_v35, %v6654_v35 }
 0x923   :  { %2712 = vadd.xlane.f32.xlu2 %v2711_v48  ;;  %v6665_v41 = vadd.f32 %v4615_v27, %v2652_v43 }
 0x924   :  { %v2789_v18 = vsel %vm37_vm0, %v2761_v13, 0.0 }
 0x925   :  { %2790 = vadd.xlane.f32.xlu0 %v2789_v18  ;;  %v2714_v0 = vsel %vm37_vm0, %v6665_v41, 0.0 }
 0x92d   :  { %v2654_v14 = vpop.f32.mrf.mxu1  ;;  %2715 = vadd.xlane.f32.xlu0 %v2714_v0 }
 0x92e   :  { %v2655_v49 = vadd.f32 %v2654_v14, %v6470_v40 }
 0x930   :  { %v6673_v47 = vadd.f32 %v4616_v63, %v2655_v49 }
 0x932   :  { %v2717_v36 = vsel %vm37_vm0, %v6673_v47, 0.0 }
 0x935   :  { %2718 = vadd.xlane.f32.xlu0 %v2717_v36  ;;  %v2656_v48 = vpop.f32.mrf.mxu1 }
 0x936   :  { %v2657_v14 = vadd.f32 %v2656_v48, %v6470_v40  ;;  %v4617_v40 = vld [vmem:[%s7423_s0 + $0x78] sm:$0xff] }
 0x938   :  { %v6724_v26 = vadd.f32 %v4617_v40, %v2657_v14 }
 0x93a   :  { %7489 = vst [vmem:[#allocation6_spill] sm:$0xff] %v6724_v26 }
 0x966   :  { %v2773_v4 = vpop.xlane.xlu0 %2772 }
 0x967   :  { %v2819_v25 = vmul.f32 %v2773_v4, %v7488_v21 }
 0x969   :  { %v2835_v24 = vadd.f32 1e-05, %v2819_v25  ;;  %v6719_v25 = vperm.slane %v6467_v62, 6 }
 0x96b   :  { %4537 = vrsqrt.f32 %v2835_v24  ;;  %vm2857_vm10 = vweird.f32 %v2835_v24 }
 0x96e   :  { %v2776_v57 = vpop.xlane.xlu1 %2775  ;;  %v2698_v6 = vpop.xlane.xlu0 %2697 }
 0x96f   :  { %v2820_v31 = vmul.f32 %v2776_v57, %v7488_v21  ;;  %v2730_v16 = vmul.f32 %v2698_v6, %v7488_v21 }
 0x971   :  { %v4538_v1 = vpop.eup %4537  ;;  %v2836_v2 = vadd.f32 1e-05, %v2820_v31  ;;  %v6699_v5 = vsub.f32 %v6576_v34, %v2730_v16 }
 0x972   :  { %v2852_v9 = vmul.f32 %v4538_v1, %v2835_v24  ;;  %vm2858_vm9 = vweird.f32 %v4538_v1 }
 0x973   :  { %4539 = vrsqrt.f32 %v2836_v2  ;;  %v2762_v10 = vmul.f32 %v6699_v5, %v6699_v5  ;;  %vm2859_vm11 = vmor %vm2857_vm10, %vm2858_vm9  ;;  %vm2867_vm13 = vweird.f32 %v2836_v2 }
 0x974   :  { %v2853_v8 = vmul.f32 %v4538_v1, %v2852_v9 }
 0x975   :  { %v2792_v32 = vsel %vm37_vm0, %v2762_v10, 0.0  ;;  %v6734_v10 = vperm.slane %v6467_v62, 7 }
 0x976   :  { %v2854_v12 = vmul.f32 0.5, %v2853_v8  ;;  %v2779_v42 = vpop.xlane.xlu1 %2778  ;;  %2793 = vadd.xlane.f32.xlu1 %v2792_v32  ;;  %v2701_v54 = vpop.xlane.xlu0 %2700 }
 0x977   :  { %v2821_v45 = vmul.f32 %v2779_v42, %v7488_v21  ;;  %v2731_v22 = vmul.f32 %v2701_v54, %v7488_v21  ;;  %v2720_v42 = vsel %vm37_vm0, %v6724_v26, 0.0 }
 0x978   :  { %v2855_v15 = vsub.f32 1.5, %v2854_v12 }
 0x979   :  { %v4540_v58 = vpop.eup %4539  ;;  %v6706_v59 = vadd.f32 1e-05, %v2821_v45  ;;  %v6709_v46 = vsub.f32 %v6591_v44, %v2731_v22 }
 0x97a   :  { %v2856_v13 = vmul.f32 %v4538_v1, %v2855_v15  ;;  %v2862_v43 = vmul.f32 %v4540_v58, %v2836_v2  ;;  %vm2868_vm12 = vweird.f32 %v4540_v58 }
 0x97b   :  { %4541 = vrsqrt.f32 %v6706_v59  ;;  %v2763_v18 = vmul.f32 %v6709_v46, %v6709_v46  ;;  %vm2869_vm14 = vmor %vm2867_vm13, %vm2868_vm12  ;;  %vm2877_vm1 = vweird.f32 %v6706_v59 }
 0x97c   :  { %v2863_v27 = vmul.f32 %v4540_v58, %v2862_v43  ;;  %v2860_v49 = vsel %vm2859_vm11, %v4538_v1, %v2856_v13 }
 0x97d   :  { %v2795_v0 = vsel %vm37_vm0, %v2763_v18, 0.0  ;;  %v3011_v57 = vmul.f32 %v2860_v49, %v6566_v37 }
 0x97e   :  { %v2864_v63 = vmul.f32 0.5, %v2863_v27  ;;  %v2704_v36 = vpop.xlane.xlu1 %2703  ;;  %2796 = vadd.xlane.f32.xlu1 %v2795_v0  ;;  %v2782_v55 = vpop.xlane.xlu2 %2781 }
 0x97f   :  { %v2732_v3 = vmul.f32 %v2704_v36, %v7488_v21  ;;  %v2822_v4 = vmul.f32 %v2782_v55, %v7488_v21  ;;  %v3028_v37 = vmul.f32 %v6719_v25, %v3011_v57 }
 0x980   :  { %v2865_v28 = vsub.f32 1.5, %v2864_v63 }
 0x981   :  { %v4542_v24 = vpop.eup %4541  ;;  %v6728_v6 = vsub.f32 %v6606_v19, %v2732_v3  ;;  %v2838_v31 = vadd.f32 1e-05, %v2822_v4 }
 0x982   :  { %v2866_v16 = vmul.f32 %v4540_v58, %v2865_v28  ;;  %v2872_v1 = vmul.f32 %v4542_v24, %v6706_v59  ;;  %vm2878_vm15 = vweird.f32 %v4542_v24 }
 0x983   :  { %4543 = vrsqrt.f32 %v2838_v31  ;;  %v2764_v9 = vmul.f32 %v6728_v6, %v6728_v6  ;;  %vm2879_vm2 = vmor %vm2877_vm1, %vm2878_vm15  ;;  %vm2887_vm4 = vweird.f32 %v2838_v31 }
 0x984   :  { %v2870_v8 = vsel %vm2869_vm14, %v4540_v58, %v2866_v16  ;;  %v2873_v32 = vmul.f32 %v4542_v24, %v2872_v1 }
 0x985   :  { %v3012_v12 = vmul.f32 %v2870_v8, %v6579_v38  ;;  %v2798_v2 = vsel %vm37_vm0, %v2764_v9, 0.0  ;;  %v3045_v38 = vadd.f32 %v6734_v10, %v3028_v37 }
 0x986   :  { %v2874_v54 = vmul.f32 0.5, %v2873_v32  ;;  %v2707_v45 = vpop.xlane.xlu1 %2706  ;;  %2721 = vadd.xlane.f32.xlu1 %v2720_v42  ;;  %2799 = vadd.xlane.f32.xlu2 %v2798_v2  ;;  %v2785_v22 = vpop.xlane.xlu2 %2784 }
 0x987   :  { %v3029_v15 = vmul.f32 %v6719_v25, %v3012_v12  ;;  %v2733_v62 = vmul.f32 %v2707_v45, %v7488_v21  ;;  %v2823_v58 = vmul.f32 %v2785_v22, %v7488_v21 }
 0x988   :  { %v2875_v48 = vsub.f32 1.5, %v2874_v54 }
 0x989   :  { %v4544_v13 = vpop.eup %4543  ;;  %v3046_v43 = vadd.f32 %v6734_v10, %v3029_v15  ;;  %v6747_v18 = vsub.f32 %v6621_v17, %v2733_v62  ;;  %v2839_v27 = vadd.f32 1e-05, %v2823_v58 }
 0x98a   :  { %v2876_v14 = vmul.f32 %v4542_v24, %v2875_v48  ;;  %v2882_v0 = vmul.f32 %v4544_v13, %v2838_v31  ;;  %vm2888_vm3 = vweird.f32 %v4544_v13 }
 0x98b   :  { %v3061_v49 = vpack.c.bf16 %v3046_v43, %v3045_v38  ;;  %4545 = vrsqrt.f32 %v2839_v27  ;;  %v2765_v63 = vmul.f32 %v6747_v18, %v6747_v18  ;;  %vm2889_vm5 = vmor %vm2887_vm4, %vm2888_vm3  ;;  %vm2897_vm7 = vweird.f32 %v2839_v27 }
 0x98c   :  { %v2883_v36 = vmul.f32 %v4544_v13, %v2882_v0  ;;  %v2880_v3 = vsel %vm2879_vm2, %v4542_v24, %v2876_v14 }
 0x98d   :  { %4075 = vmatmul.msk.bf16.vlgmr.msra.gmra.mxu3 %vm37_vm0, %v3061_v49  ;;  %v2801_v55 = vsel %vm37_vm0, %v2765_v63, 0.0  ;;  %v3013_v59 = vmul.f32 %v2880_v3, %v6594_v23 }
 0x98e   :  { %v2884_v4 = vmul.f32 0.5, %v2883_v36  ;;  %2802 = vadd.xlane.f32.xlu2 %v2801_v55  ;;  %v2788_v28 = vpop.xlane.xlu0 %2787  ;;  %v2710_v40 = vpop.xlane.xlu2 %2709 }
 0x98f   :  { %v2824_v57 = vmul.f32 %v2788_v28, %v7488_v21  ;;  %v2734_v16 = vmul.f32 %v2710_v40, %v7488_v21  ;;  %v3030_v23 = vmul.f32 %v6719_v25, %v3013_v59 }
 0x990   :  { %v2885_v1 = vsub.f32 1.5, %v2884_v4 }
 0x991   :  { %v4546_v9 = vpop.eup %4545  ;;  %v2840_v8 = vadd.f32 1e-05, %v2824_v57  ;;  %v6758_v32 = vsub.f32 %v6636_v50, %v2734_v16 }
 0x992   :  { %v2886_v37 = vmul.f32 %v4544_v13, %v2885_v1  ;;  %v2892_v24 = vmul.f32 %v4546_v9, %v2839_v27  ;;  %vm2898_vm6 = vweird.f32 %v4546_v9 }
 0x993   :  { %4547 = vrsqrt.f32 %v2840_v8  ;;  %v2766_v12 = vmul.f32 %v6758_v32, %v6758_v32  ;;  %vm2899_vm8 = vmor %vm2897_vm7, %vm2898_vm6  ;;  %vm2907_vm10 = vweird.f32 %v2840_v8 }
 0x994   :  { %v2890_v42 = vsel %vm2889_vm5, %v4544_v13, %v2886_v37  ;;  %v2893_v2 = vmul.f32 %v4546_v9, %v2892_v24  ;;  %v3047_v13 = vadd.f32 %v6734_v10, %v3030_v23 }
 0x995   :  { %v3014_v54 = vmul.f32 %v2890_v42, %v6609_v52  ;;  %v2804_v45 = vsel %vm37_vm0, %v2766_v12, 0.0 }
 0x996   :  { %v2894_v22 = vmul.f32 0.5, %v2893_v2  ;;  %2805 = vadd.xlane.f32.xlu0 %v2804_v45  ;;  %v2713_v15 = vpop.xlane.xlu2 %2712 }
 0x997   :  { %v2735_v62 = vmul.f32 %v2713_v15, %v7488_v21  ;;  %v3031_v31 = vmul.f32 %v6719_v25, %v3014_v54 }
 0x998   :  { %v2895_v58 = vsub.f32 1.5, %v2894_v22  ;;  %v2791_v48 = vpop.xlane.xlu0 %2790 }
 0x999   :  { %v4548_v38 = vpop.eup %4547  ;;  %v6768_v43 = vsub.f32 %v6650_v51, %v2735_v62  ;;  %v3048_v52 = vadd.f32 %v6734_v10, %v3031_v31  ;;  %v2825_v15 = vmul.f32 %v2791_v48, %v7488_v21 }
 0x99a   :  { %v2896_v14 = vmul.f32 %v4546_v9, %v2895_v58  ;;  %v2902_v0 = vmul.f32 %v4548_v38, %v2840_v8  ;;  %vm2908_vm9 = vweird.f32 %v4548_v38 }
 0x99b   :  { %v3062_v49 = vpack.c.bf16 %v3048_v52, %v3047_v13  ;;  %v2767_v63 = vmul.f32 %v6768_v43, %v6768_v43  ;;  %vm2909_vm11 = vmor %vm2907_vm10, %vm2908_vm9  ;;  %v2841_v62 = vadd.f32 1e-05, %v2825_v15 }
 0x99c   :  { %v2903_v36 = vmul.f32 %v4548_v38, %v2902_v0  ;;  %v2900_v3 = vsel %vm2899_vm8, %v4546_v9, %v2896_v14 }
 0x99d   :  { %4076 = vmatmul.msk.bf16.gmra.mxu3 %vm37_vm0, %v3062_v49  ;;  %v2807_v55 = vsel %vm37_vm0, %v2767_v63, 0.0  ;;  %v3015_v57 = vmul.f32 %v2900_v3, %v6624_v29  ;;  %4549 = vrsqrt.f32 %v2841_v62  ;;  %vm2917_vm13 = vweird.f32 %v2841_v62 }
 0x99e   :  { %v2904_v4 = vmul.f32 0.5, %v2903_v36  ;;  %2808 = vadd.xlane.f32.xlu1 %v2807_v55 }
 0x99f   :  { %v3032_v24 = vmul.f32 %v6719_v25, %v3015_v57 }
 0x9a0   :  { %v2905_v28 = vsub.f32 1.5, %v2904_v4  ;;  %v2716_v40 = vpop.xlane.xlu0 %2715 }
 0x9a1   :  { %v2736_v16 = vmul.f32 %v2716_v40, %v7488_v21  ;;  %v3049_v2 = vadd.f32 %v6734_v10, %v3032_v24 }
 0x9a2   :  { %v2906_v1 = vmul.f32 %v4548_v38, %v2905_v28 }
 0x9a3   :  { %v6779_v27 = vsub.f32 %v6665_v41, %v2736_v16  ;;  %v4550_v31 = vpop.eup %4549 }
 0x9a4   :  { %v2910_v59 = vsel %vm2909_vm11, %v4548_v38, %v2906_v1  ;;  %v2912_v58 = vmul.f32 %v4550_v31, %v2841_v62  ;;  %vm2918_vm12 = vweird.f32 %v4550_v31 }
 0x9a5   :  { %v3016_v37 = vmul.f32 %v2910_v59, %v6639_v56  ;;  %v2768_v9 = vmul.f32 %v6779_v27, %v6779_v27  ;;  %vm2919_vm14 = vmor %vm2917_vm13, %vm2918_vm12 }
 0x9a6   :  { %v2913_v38 = vmul.f32 %v4550_v31, %v2912_v58 }
 0x9a7   :  { %v2810_v12 = vsel %vm37_vm0, %v2768_v9, 0.0  ;;  %v3033_v29 = vmul.f32 %v6719_v25, %v3016_v37 }
 0x9a8   :  { %2811 = vadd.xlane.f32.xlu2 %v2810_v12  ;;  %v2719_v42 = vpop.xlane.xlu0 %2718  ;;  %v2914_v0 = vmul.f32 0.5, %v2913_v38 }
 0x9a9   :  { %v2737_v8 = vmul.f32 %v2719_v42, %v7488_v21  ;;  %v3050_v54 = vadd.f32 %v6734_v10, %v3033_v29 }
 0x9aa   :  { %v2915_v49 = vsub.f32 1.5, %v2914_v0 }
 0x9ab   :  { %v6791_v45 = vsub.f32 %v6673_v47, %v2737_v8  ;;  %v3063_v56 = vpack.c.bf16 %v3050_v54, %v3049_v2 }
 0x9ad   :  { %4077 = vmatmul.msk.bf16.gmra.mxu3 %vm37_vm0, %v3063_v56  ;;  %v2769_v23 = vmul.f32 %v6791_v45, %v6791_v45 }
 0x9af   :  { %v2813_v22 = vsel %vm37_vm0, %v2769_v23, 0.0 }
 0x9b0   :  { %2814 = vadd.xlane.f32.xlu0 %v2813_v22 }
 0x9c0   :  { %3866 = vrot.lane.b32.xlu2 %v6683_v33, %s4622_s29 }
 0x9c4   :  { %3864 = vrot.lane.b32.xlu0 %v6693_v39, %s4622_s29  ;;  %v2916_v39 = vmul.f32 %v4550_v31, %v2915_v49 }
 0x9c6   :  { %v2920_v4 = vsel %vm2919_vm14, %v4550_v31, %v2916_v39 }
 0x9c7   :  { %v3017_v9 = vmul.f32 %v2920_v4, %v6654_v35 }
 0x9c9   :  { %v3034_v35 = vmul.f32 %v6719_v25, %v3017_v9 }
 0x9e9   :  { %v2794_v13 = vpop.xlane.xlu1 %2793 }
 0x9ea   :  { %v2826_v52 = vmul.f32 %v2794_v13, %v7488_v21  ;;  %v3051_v13 = vadd.f32 %v6734_v10, %v3034_v35 }
 0x9ec   :  { %v2842_v14 = vadd.f32 1e-05, %v2826_v52 }
 0x9ee   :  { %4551 = vrsqrt.f32 %v2842_v14  ;;  %vm2927_vm1 = vweird.f32 %v2842_v14 }
 0x9f1   :  { %v2797_v63 = vpop.xlane.xlu1 %2796 }
 0x9f2   :  { %v2827_v33 = vmul.f32 %v2797_v63, %v7488_v21 }
 0x9f4   :  { %v4552_v36 = vpop.eup %4551  ;;  %v2843_v55 = vadd.f32 1e-05, %v2827_v33 }
 0x9f5   :  { %v2922_v48 = vmul.f32 %v4552_v36, %v2842_v14  ;;  %vm2928_vm15 = vweird.f32 %v4552_v36 }
 0x9f6   :  { %4553 = vrsqrt.f32 %v2843_v55  ;;  %vm2929_vm2 = vmor %vm2927_vm1, %vm2928_vm15  ;;  %vm2937_vm4 = vweird.f32 %v2843_v55 }
 0x9f7   :  { %v2923_v3 = vmul.f32 %v4552_v36, %v2922_v48  ;;  %v20_v48 = vld [vmem:[%s7424_s2 + $0x8] sm:$0x3] }
 0x9f9   :  { %v2924_v28 = vmul.f32 0.5, %v2923_v3  ;;  %v2722_v40 = vpop.xlane.xlu1 %2721  ;;  %v2800_v57 = vpop.xlane.xlu2 %2799 }
 0x9fa   :  { %v2738_v16 = vmul.f32 %v2722_v40, %v7488_v21  ;;  %v2828_v1 = vmul.f32 %v2800_v57, %v7488_v21  ;;  %v6830_v40 = vperm.slane %v20_v48, 0 }
 0x9fb   :  { %v2925_v59 = vsub.f32 1.5, %v2924_v28 }
 0x9fc   :  { %v4554_v37 = vpop.eup %4553  ;;  %v6808_v24 = vsub.f32 %v6724_v26, %v2738_v16  ;;  %v2844_v12 = vadd.f32 1e-05, %v2828_v1 }
 0x9fd   :  { %v2926_v29 = vmul.f32 %v4552_v36, %v2925_v59  ;;  %v2932_v42 = vmul.f32 %v4554_v37, %v2843_v55  ;;  %vm2938_vm3 = vweird.f32 %v4554_v37 }
 0x9fe   :  { %4555 = vrsqrt.f32 %v2844_v12  ;;  %v2770_v8 = vmul.f32 %v6808_v24, %v6808_v24  ;;  %vm2939_vm5 = vmor %vm2937_vm4, %vm2938_vm3  ;;  %vm2947_vm7 = vweird.f32 %v2844_v12 }
 0x9ff   :  { %v2930_v2 = vsel %vm2929_vm2, %v4552_v36, %v2926_v29  ;;  %v2933_v54 = vmul.f32 %v4554_v37, %v2932_v42 }
 0xa00   :  { %v3018_v56 = vmul.f32 %v2930_v2, %v6699_v5  ;;  %v2816_v23 = vsel %vm37_vm0, %v2770_v8, 0.0 }
 0xa01   :  { %v2934_v22 = vmul.f32 0.5, %v2933_v54  ;;  %2817 = vadd.xlane.f32.xlu1 %v2816_v23  ;;  %v2803_v15 = vpop.xlane.xlu2 %2802 }
 0xa02   :  { %v3035_v62 = vmul.f32 %v6719_v25, %v3018_v56  ;;  %v2829_v58 = vmul.f32 %v2803_v15, %v7488_v21 }
 0xa03   :  { %v2935_v31 = vsub.f32 1.5, %v2934_v22 }
 0xa04   :  { %v4556_v38 = vpop.eup %4555  ;;  %v3052_v52 = vadd.f32 %v6734_v10, %v3035_v62  ;;  %v6819_v63 = vadd.f32 1e-05, %v2829_v58 }
 0xa05   :  { %v2936_v14 = vmul.f32 %v4554_v37, %v2935_v31  ;;  %v2942_v5 = vmul.f32 %v4556_v38, %v2844_v12  ;;  %vm2948_vm6 = vweird.f32 %v4556_v38 }
 0xa06   :  { %v3064_v0 = vpack.c.bf16 %v3052_v52, %v3051_v13  ;;  %4557 = vrsqrt.f32 %v6819_v63  ;;  %vm2949_vm8 = vmor %vm2947_vm7, %vm2948_vm6  ;;  %vm2957_vm10 = vweird.f32 %v6819_v63 }
 0xa07   :  { %v2943_v49 = vmul.f32 %v4556_v38, %v2942_v5  ;;  %v2940_v33 = vsel %vm2939_vm5, %v4554_v37, %v2936_v14 }
 0xa08   :  { %4078 = vmatmul.msk.bf16.gmra.mxu3 %vm37_vm0, %v3064_v0  ;;  %v3019_v55 = vmul.f32 %v2940_v33, %v6709_v46 }
 0xa09   :  { %v2944_v36 = vmul.f32 0.5, %v2943_v49  ;;  %v2806_v39 = vpop.xlane.xlu0 %2805 }
 0xa0a   :  { %v2830_v3 = vmul.f32 %v2806_v39, %v7488_v21  ;;  %v3036_v37 = vmul.f32 %v6719_v25, %v3019_v55 }
 0xa0b   :  { %v2945_v4 = vsub.f32 1.5, %v2944_v36 }
 0xa0c   :  { %v6828_v28 = vadd.f32 1e-05, %v2830_v3  ;;  %v6835_v9 = vpop.eup %4557  ;;  %v3053_v54 = vadd.f32 %v6734_v10, %v3036_v37 }
 0xa0d   :  { %v2946_v57 = vmul.f32 %v4556_v38, %v2945_v4  ;;  %v2952_v2 = vmul.f32 %v6835_v9, %v6819_v63  ;;  %vm2958_vm9 = vweird.f32 %v6835_v9 }
 0xa0e   :  { %4559 = vrsqrt.f32 %v6828_v28  ;;  %vm6907_vm12 = vmor %vm2957_vm10, %vm2958_vm9  ;;  %vm2967_vm13 = vweird.f32 %v6828_v28 }
 0xa0f   :  { %v2950_v16 = vsel %vm2949_vm8, %v4556_v38, %v2946_v57  ;;  %v2953_v62 = vmul.f32 %v6835_v9, %v2952_v2 }
 0xa10   :  { %v3020_v1 = vmul.f32 %v2950_v16, %v6728_v6  ;;  %v3111_v59 = vpop.f32.mrf.mxu3 }
 0xa11   :  { %v6838_v29 = vadd.f32 %v3111_v59, %v6830_v40  ;;  %v2809_v46 = vpop.xlane.xlu1 %2808  ;;  %v2954_v33 = vmul.f32 0.5, %v2953_v62 }
 0xa12   :  { %v3037_v42 = vmul.f32 %v6719_v25, %v3020_v1  ;;  %v2831_v6 = vmul.f32 %v2809_v46, %v7488_v21 }
 0xa13   :  { %v6842_v8 = vmul.f32 0.70710677, %v6838_v29  ;;  %v2955_v59 = vsub.f32 1.5, %v2954_v33 }
 0xa14   :  { %v6844_v12 = vpop.eup %4559  ;;  %v3054_v56 = vadd.f32 %v6734_v10, %v3037_v42  ;;  %v6858_v31 = vadd.f32 1e-05, %v2831_v6 }
 0xa15   :  { %v2962_v23 = vmul.f32 %v6844_v12, %v6828_v28  ;;  %v3183_v35 = vmul.f32 %v6842_v8, %v6842_v8  ;;  %v2956_v62 = vmul.f32 %v6835_v9, %v2955_v59  ;;  %vm2968_vm11 = vweird.f32 %v6844_v12 }
 0xa16   :  { %v3065_v22 = vpack.c.bf16 %v3054_v56, %v3053_v54  ;;  %4561 = vrsqrt.f32 %v6858_v31  ;;  %vm2969_vm14 = vmor %vm2967_vm13, %vm2968_vm11  ;;  %vm2977_vm2 = vweird.f32 %v6858_v31 }
 0xa17   :  { %v6855_v15 = vmin.f32 %v3183_v35, 16.0  ;;  %v2963_v38 = vmul.f32 %v6844_v12, %v2962_v23 }
 0xa18   :  { %v3113_v58 = vpop.f32.mrf.mxu3  ;;  %4079 = vmatmul.msk.bf16.gmra.mxu3 %vm37_vm0, %v3065_v22 }
 0xa19   :  { %v3185_v13 = vmul.f32 2.1237322e-06, %v6855_v15  ;;  %v3196_v52 = vmul.f32 3.8918573e-05, %v6855_v15  ;;  %v6865_v14 = vadd.f32 %v3113_v58, %v6830_v40  ;;  %v2964_v48 = vmul.f32 0.5, %v2963_v38 }
 0xa1b   :  { %v3186_v5 = vadd.f32 0.00028619796, %v3185_v13  ;;  %v3197_v0 = vadd.f32 0.001143296, %v3196_v52  ;;  %v2812_v49 = vpop.xlane.xlu2 %2811  ;;  %v6868_v36 = vmul.f32 0.70710677, %v6865_v14 }
 0xa1c   :  { %v2832_v39 = vmul.f32 %v2812_v49, %v7488_v21  ;;  %v2965_v42 = vsub.f32 1.5, %v2964_v48  ;;  %v6886_v23 = vpop.eup %4561 }
 0xa1d   :  { %v3187_v3 = vmul.f32 %v3186_v5, %v6855_v15  ;;  %v3198_v4 = vmul.f32 %v3197_v0, %v6855_v15  ;;  %v3223_v55 = vmul.f32 %v6868_v36, %v6868_v36  ;;  %v2972_v0 = vmul.f32 %v6886_v23, %v6858_v31 }
 0xa1e   :  { %v6876_v1 = vadd.f32 1e-05, %v2832_v39  ;;  %v2966_v52 = vmul.f32 %v6844_v12, %v2965_v42  ;;  %vm2978_vm15 = vweird.f32 %v6886_v23 }
 0xa1f   :  { %v3188_v57 = vadd.f32 0.0036580483, %v3187_v3  ;;  %v3199_v16 = vadd.f32 0.014752088, %v3198_v4  ;;  %v6878_v37 = vmin.f32 %v3223_v55, 16.0  ;;  %v2960_v4 = vsel %vm6907_vm12, %v6835_v9, %v2956_v62  ;;  %vm6997_vm8 = vmor %vm2977_vm2, %vm2978_vm15 }
 0xa20   :  { %v3116_v46 = vpop.f32.mrf.mxu3  ;;  %4563 = vrsqrt.f32 %v6876_v1  ;;  %v2970_v59 = vsel %vm2969_vm14, %v6844_v12, %v2966_v52  ;;  %v2973_v28 = vmul.f32 %v6886_v23, %v2972_v0  ;;  %v3021_v9 = vmul.f32 %v2960_v4, %v6747_v18 }
 0xa21   :  { %v3200_v2 = vmul.f32 %v3199_v16, %v6855_v15  ;;  %v6882_v6 = vadd.f32 %v3116_v46, %v6830_v40  ;;  %v3225_v54 = vmul.f32 2.1237322e-06, %v6878_v37  ;;  %v3236_v56 = vmul.f32 3.8918573e-05, %v6878_v37 }
 0xa22   :  { %v3189_v35 = vmul.f32 %v3188_v57, %v6855_v15  ;;  %v3022_v62 = vmul.f32 %v2970_v59, %v6758_v32  ;;  %v2974_v0 = vmul.f32 0.5, %v2973_v28  ;;  %v3038_v32 = vmul.f32 %v6719_v25, %v3021_v9 }
 0xa23   :  { %v3201_v22 = vadd.f32 0.112945676, %v3200_v2  ;;  %v3226_v58 = vadd.f32 0.00028619796, %v3225_v54  ;;  %v3237_v38 = vadd.f32 0.001143296, %v3236_v56  ;;  %vm2987_vm3 = vweird.f32 %v6876_v1 }
 0xa24   :  { %v6893_v13 = vmul.f32 0.70710677, %v6882_v6  ;;  %v3190_v48 = vadd.f32 0.05243302, %v3189_v35  ;;  %v2975_v59 = vsub.f32 1.5, %v2974_v0 }
 0xa25   :  { %v3202_v5 = vmul.f32 %v3201_v22, %v6855_v15  ;;  %v3227_v49 = vmul.f32 %v3226_v58, %v6878_v37  ;;  %v3238_v33 = vmul.f32 %v3237_v38, %v6878_v37 }
 0xa26   :  { %v3263_v39 = vmul.f32 %v6893_v13, %v6893_v13  ;;  %v6915_v16 = vpop.eup %4563  ;;  %v3191_v35 = vmul.f32 %v3190_v48, %v6855_v15 }
 0xa27   :  { %v3203_v3 = vadd.f32 0.4994258, %v3202_v5  ;;  %v3228_v55 = vadd.f32 0.0036580483, %v3227_v49  ;;  %v3239_v57 = vadd.f32 0.014752088, %v3238_v33  ;;  %v2982_v58 = vmul.f32 %v6915_v16, %v6876_v1 }
 0xa28   :  { %v6919_v42 = vmin.f32 %v3263_v39, 16.0  ;;  %v3118_v2 = vpop.f32.mrf.mxu3  ;;  %v3192_v33 = vadd.f32 0.18741608, %v3191_v35  ;;  %v3055_v35 = vadd.f32 %v6734_v10, %v3038_v32  ;;  %vm2988_vm6 = vweird.f32 %v6915_v16 }
 0xa29   :  { %v3204_v46 = vmul.f32 %v3203_v3, %v6855_v15  ;;  %v3229_v54 = vmul.f32 %v3228_v55, %v6878_v37  ;;  %v3240_v56 = vmul.f32 %v3239_v57, %v6878_v37  ;;  %v6936_v49 = vadd.f32 %v3118_v2, %v6830_v40  ;;  %vm7011_vm10 = vmor %vm2987_vm3, %vm2988_vm6 }
 0xa2a   :  { %v3276_v38 = vmul.f32 3.8918573e-05, %v6919_v42  ;;  %v3265_v5 = vmul.f32 2.1237322e-06, %v6919_v42  ;;  %v2983_v48 = vmul.f32 %v6915_v16, %v2982_v58  ;;  %v3039_v3 = vmul.f32 %v6719_v25, %v3022_v62 }
 0xa2b   :  { %v6926_v22 = vadd.f32 1.0, %v3204_v46  ;;  %v3241_v12 = vadd.f32 0.112945676, %v3240_v56  ;;  %v3230_v52 = vadd.f32 0.05243302, %v3229_v54  ;;  %v6948_v54 = vmul.f32 0.5, %v6838_v29 }
 0xa2c   :  { %v3277_v39 = vadd.f32 0.001143296, %v3276_v38  ;;  %v3266_v55 = vadd.f32 0.00028619796, %v3265_v5  ;;  %v6945_v2 = vmul.f32 0.70710677, %v6936_v49  ;;  %v3193_v56 = vmul.f32 %v3192_v33, %v6855_v15 }
 0xa2d   :  { %4565 = vrcp.f32 %v6926_v22  ;;  %v3242_v18 = vmul.f32 %v3241_v12, %v6878_v37  ;;  %v3231_v4 = vmul.f32 %v3230_v52, %v6878_v37  ;;  %v2984_v38 = vmul.f32 0.5, %v2983_v48 }
 0xa2e   :  { %v3278_v57 = vmul.f32 %v3277_v39, %v6919_v42  ;;  %v3056_v52 = vadd.f32 %v6734_v10, %v3039_v3  ;;  %v3267_v0 = vmul.f32 %v3266_v55, %v6919_v42  ;;  %v3303_v29 = vmul.f32 %v6945_v2, %v6945_v2 }
 0xa2f   :  { %v3243_v63 = vadd.f32 0.4994258, %v3242_v18  ;;  %v3232_v5 = vadd.f32 0.18741608, %v3231_v4  ;;  %v6961_v33 = vmul.f32 %v6886_v23, %v2975_v59  ;;  %v3194_v39 = vadd.f32 1.1283791, %v3193_v56 }
 0xa30   :  { %v3279_v9 = vadd.f32 0.014752088, %v3278_v57  ;;  %v3121_v62 = vpop.f32.mrf.mxu3  ;;  %v3215_v32 = vand.u32 2147483647, %v6926_v22  ;;  %v6969_v4 = vmin.f32 %v3303_v29, 16.0  ;;  %v3066_v55 = vpack.c.bf16 %v3056_v52, %v3055_v35 }
 0xa31   :  { %v3244_v46 = vmul.f32 %v3243_v63, %v6878_v37  ;;  %v3217_v63 = vand.u32 2147483648, %v6926_v22  ;;  %vm3211_vm4 = vweird.f32 %v6926_v22  ;;  %v3233_v57 = vmul.f32 %v3232_v5, %v6878_v37 }
 0xa32   :  { %v3280_v18 = vmul.f32 %v3279_v9, %v6919_v42  ;;  %v2985_v59 = vsub.f32 1.5, %v2984_v38  ;;  %v3316_v26 = vmul.f32 3.8918573e-05, %v6969_v4  ;;  %4080 = vmatmul.msk.bf16.gmra.mxu3 %vm37_vm0, %v3066_v55  ;;  %v6981_v37 = vadd.f32 %v3121_v62, %v6830_v40 }
 0xa33   :  { %v4566_v28 = vpop.eup %4565  ;;  %v6953_v58 = vadd.f32 1.0, %v3244_v46  ;;  %v3268_v46 = vadd.f32 0.0036580483, %v3267_v0  ;;  %v3218_v35 = vor.u32 1.1754944e-38, %v3217_v63  ;;  %vm3216_vm7 = vcmp.eq.f32.partialorder %v3215_v32, 8.507059e+37 }
 0xa34   :  { %v3207_v12 = vmul.f32 %v4566_v28, %v6926_v22  ;;  %vm3212_vm1 = vweird.f32 %v4566_v28  ;;  %v3281_v3 = vadd.f32 0.112945676, %v3280_v18  ;;  %v3195_v18 = vmul.f32 %v3194_v39, %v6842_v8 }
 0xa35   :  { %4567 = vrcp.f32 %v6953_v58  ;;  %vm3213_vm5 = vmor %vm3211_vm4, %vm3212_vm1  ;;  %v3269_v8 = vmul.f32 %v3268_v46, %v6919_v42  ;;  %v3255_v63 = vand.u32 2147483647, %v6953_v58  ;;  %v3317_v62 = vadd.f32 0.001143296, %v3316_v26 }
 0xa36   :  { %v3208_v15 = vsub.f32 1.0, %v3207_v12  ;;  %v3282_v9 = vmul.f32 %v3281_v3, %v6919_v42  ;;  %v3305_v12 = vmul.f32 2.1237322e-06, %v6969_v4  ;;  %vm3251_vm11 = vweird.f32 %v6953_v58 }
 0xa37   :  { %v3318_v26 = vmul.f32 %v3317_v62, %v6969_v4  ;;  %v3270_v31 = vadd.f32 0.05243302, %v3269_v8  ;;  %vm3256_vm13 = vcmp.eq.f32.partialorder %v3255_v63, 8.507059e+37 }
 0xa38   :  { %v3209_v48 = vmul.f32 %v4566_v28, %v3208_v15  ;;  %v3283_v52 = vadd.f32 0.4994258, %v3282_v9  ;;  %v3306_v5 = vadd.f32 0.00028619796, %v3305_v12  ;;  %v2986_v15 = vmul.f32 %v6915_v16, %v2985_v59  ;;  %v3123_v39 = vpop.f32.mrf.mxu3 }
 0xa39   :  { %v7005_v46 = vadd.f32 %v3123_v39, %v6830_v40 }
 0xa3a   :  { %v3210_v56 = vadd.f32 %v4566_v28, %v3209_v48  ;;  %v3234_v48 = vadd.f32 1.1283791, %v3233_v57  ;;  %v3284_v3 = vmul.f32 %v3283_v52, %v6919_v42  ;;  %v3307_v32 = vmul.f32 %v3306_v5, %v6969_v4 }
 0xa3b   :  { %v4568_v22 = vpop.eup %4567  ;;  %v2990_v5 = vsel %vm7011_vm10, %v6915_v16, %v2986_v15  ;;  %v3271_v16 = vmul.f32 %v3270_v31, %v6919_v42  ;;  %v3867_v31 = vpop.permute.xlu2 %3866 }
 0xa3c   :  { %v3214_v38 = vsel %vm3213_vm5, %v4566_v28, %v3210_v56  ;;  %v3247_v29 = vmul.f32 %v4568_v22, %v6953_v58  ;;  %v3257_v28 = vand.u32 2147483648, %v6953_v58  ;;  %v6991_v56 = vmul.f32 0.70710677, %v6981_v37  ;;  %3900 = vmatpush.bf16.msrb.mxu0 %v3867_v31 }
 0xa3d   :  { %v3219_v0 = vsel %vm3216_vm7, %v3218_v35, %v3214_v38  ;;  %v7001_v59 = vadd.f32 1.0, %v3284_v3  ;;  %vm3252_vm9 = vweird.f32 %v4568_v22  ;;  %v2980_v38 = vsel %vm6997_vm8, %v6886_v23, %v6961_v33  ;;  %v7027_v3 = vpop.xlane.xlu0 %2814 }
 0xa3e   :  { %v3248_v55 = vsub.f32 1.0, %v3247_v29  ;;  %v3220_v9 = vmul.f32 %v3219_v0, %v3195_v18  ;;  %v3343_v35 = vmul.f32 %v6991_v56, %v6991_v56  ;;  %v3235_v52 = vmul.f32 %v3234_v48, %v6868_v36  ;;  %vm3253_vm12 = vmor %vm3251_vm11, %vm3252_vm9 }
 0xa3f   :  { %4569 = vrcp.f32 %v7001_v59  ;;  %v3308_v0 = vadd.f32 0.0036580483, %v3307_v32  ;;  %v3319_v29 = vadd.f32 0.014752088, %v3318_v26  ;;  %v3258_v39 = vor.u32 1.1754944e-38, %v3257_v28 }
 0xa40   :  { %v3249_v12 = vmul.f32 %v4568_v22, %v3248_v55  ;;  %v4083_v8 = vclamps-f32 %v3220_v9, 1.0  ;;  %v7029_v62 = vmin.f32 %v3343_v35, 16.0  ;;  %v7032_v36 = vmul.f32 0.70710677, %v7005_v46 }
 0xa41   :  { %v3320_v33 = vmul.f32 %v3319_v29, %v6969_v4  ;;  %v3152_v28 = vmul.f32 0.5, %v6865_v14  ;;  %v3309_v9 = vmul.f32 %v3308_v0, %v6969_v4  ;;  %v3023_v35 = vmul.f32 %v2980_v38, %v6768_v43 }
 0xa42   :  { %v3250_v1 = vadd.f32 %v4568_v22, %v3249_v12  ;;  %v3345_v58 = vmul.f32 2.1237322e-06, %v7029_v62  ;;  %v3356_v48 = vmul.f32 3.8918573e-05, %v7029_v62  ;;  %v3383_v55 = vmul.f32 %v7032_v36, %v7032_v36 }
 0xa43   :  { %v3321_v57 = vadd.f32 0.112945676, %v3320_v33  ;;  %v3823_v63 = vadd.f32 1.0, %v4083_v8  ;;  %v3024_v29 = vmul.f32 %v2990_v5, %v6779_v27  ;;  %vm3291_vm15 = vweird.f32 %v7001_v59 }
 0xa44   :  { %v3254_v23 = vsel %vm3253_vm12, %v4568_v22, %v3250_v1  ;;  %v3346_v26 = vadd.f32 0.00028619796, %v3345_v58  ;;  %v3357_v12 = vadd.f32 0.001143296, %v3356_v48  ;;  %v7044_v18 = vmin.f32 %v3383_v55, 16.0 }
 0xa45   :  { %v3259_v15 = vsel %vm3256_vm13, %v3258_v39, %v3254_v23  ;;  %v7042_v22 = vpop.eup %4569  ;;  %v3322_v0 = vmul.f32 %v3321_v57, %v6969_v4  ;;  %v3839_v43 = vmul.f32 %v3823_v63, %v6948_v54  ;;  %v3865_v48 = vpop.permute.xlu0 %3864  ;;  %v3041_v57 = vmul.f32 %v6719_v25, %v3024_v29 }
 0xa46   :  { %v3260_v32 = vmul.f32 %v3259_v15, %v3235_v52  ;;  %v3287_v14 = vmul.f32 %v7042_v22, %v7001_v59  ;;  %v3272_v52 = vadd.f32 0.18741608, %v3271_v16  ;;  %v3358_v39 = vmul.f32 %v3357_v12, %v7029_v62  ;;  %3901 = vmatpush.bf16.msrb.mxu0 %v3865_v48 }
 0xa47   :  { %v3385_v8 = vmul.f32 2.1237322e-06, %v7044_v18  ;;  %v3310_v15 = vadd.f32 0.05243302, %v3309_v9  ;;  %v3396_v58 = vmul.f32 3.8918573e-05, %v7044_v18  ;;  %v3347_v27 = vmul.f32 %v3346_v26, %v7029_v62 }
 0xa48   :  { %v4084_v1 = vclamps-f32 %v3260_v32, 1.0  ;;  %v3288_v33 = vsub.f32 1.0, %v3287_v14  ;;  %v3323_v38 = vadd.f32 0.4994258, %v3322_v0  ;;  %v3359_v5 = vadd.f32 0.014752088, %v3358_v39 }
 0xa49   :  { %v3386_v16 = vadd.f32 0.00028619796, %v3385_v8  ;;  %v3040_v32 = vmul.f32 %v6719_v25, %v3023_v35  ;;  %v3311_v63 = vmul.f32 %v3310_v15, %v6969_v4  ;;  %v3348_v14 = vadd.f32 0.0036580483, %v3347_v27 }
 0xa4a   :  { %v3824_v23 = vadd.f32 1.0, %v4084_v1  ;;  %v3289_v12 = vmul.f32 %v7042_v22, %v3288_v33  ;;  %v3324_v9 = vmul.f32 %v3323_v38, %v6969_v4  ;;  %v3360_v31 = vmul.f32 %v3359_v5, %v7029_v62 }
 0xa4b   :  { %v3397_v1 = vadd.f32 0.001143296, %v3396_v58  ;;  %v3273_v35 = vmul.f32 %v3272_v52, %v6919_v42  ;;  %v3387_v29 = vmul.f32 %v3386_v16, %v7044_v18  ;;  %v3058_v39 = vadd.f32 %v6734_v10, %v3041_v57 }
 0xa4c   :  { %v3840_v55 = vmul.f32 %v3824_v23, %v3152_v28  ;;  %v3325_v26 = vadd.f32 1.0, %v3324_v9  ;;  %v3361_v0 = vadd.f32 0.112945676, %v3360_v31  ;;  %v3290_v8 = vadd.f32 %v7042_v22, %v3289_v12 }
 0xa4d   :  { %v3398_v28 = vmul.f32 %v3397_v1, %v7044_v18  ;;  %vm3292_vm14 = vweird.f32 %v7042_v22  ;;  %v3057_v23 = vadd.f32 %v6734_v10, %v3040_v32  ;;  %v3297_v33 = vand.u32 2147483648, %v7001_v59 }
 0xa4e   :  { %v3855_v54 = vpack.c.bf16 %v3840_v55, %v3839_v43  ;;  %4571 = vrcp.f32 %v3325_v26  ;;  %v3312_v15 = vadd.f32 0.18741608, %v3311_v63  ;;  %v3362_v42 = vmul.f32 %v3361_v0, %v7029_v62  ;;  %vm3293_vm1 = vmor %vm3291_vm15, %vm3292_vm14 }
 0xa4f   :  { %v3295_v52 = vand.u32 2147483647, %v7001_v59  ;;  %v3349_v58 = vmul.f32 %v3348_v14, %v7029_v62  ;;  %v3399_v43 = vadd.f32 0.014752088, %v3398_v28  ;;  %v3067_v38 = vpack.c.bf16 %v3058_v39, %v3057_v23 }
 0xa50   :  { %4099 = vmatmul.msk.bf16.vlgmr.msrb.gmra.mxu0 %vm37_vm0, %v3855_v54  ;;  %v3363_v27 = vadd.f32 0.4994258, %v3362_v42  ;;  %v3388_v5 = vadd.f32 0.0036580483, %v3387_v29  ;;  %v3274_v48 = vadd.f32 1.1283791, %v3273_v35  ;;  %v3294_v55 = vsel %vm3293_vm1, %v7042_v22, %v3290_v8 }
 0xa51   :  { %v3400_v16 = vmul.f32 %v3399_v43, %v7044_v18  ;;  %4081 = vmatmul.msk.bf16.gmra.mxu3 %vm37_vm0, %v3067_v38  ;;  %v3298_v32 = vor.u32 1.1754944e-38, %v3297_v33  ;;  %v3313_v57 = vmul.f32 %v3312_v15, %v6969_v4  ;;  %vm3296_vm2 = vcmp.eq.f32.partialorder %v3295_v52, 8.507059e+37 }
 0xa52   :  { %v3364_v12 = vmul.f32 %v3363_v27, %v7029_v62  ;;  %v3350_v9 = vadd.f32 0.05243302, %v3349_v58  ;;  %v3389_v63 = vmul.f32 %v3388_v5, %v7044_v18  ;;  %v3275_v14 = vmul.f32 %v3274_v48, %v6893_v13 }
 0xa53   :  { %v3401_v31 = vadd.f32 0.112945676, %v3400_v16  ;;  %v3299_v1 = vsel %vm3296_vm2, %v3298_v32, %v3294_v55  ;;  %v3314_v28 = vadd.f32 1.1283791, %v3313_v57  ;;  %v3335_v29 = vand.u32 2147483647, %v3325_v26 }
 0xa54   :  { %v4572_v59 = vpop.eup %4571  ;;  %v3365_v22 = vadd.f32 1.0, %v3364_v12  ;;  %v3300_v39 = vmul.f32 %v3299_v1, %v3275_v14  ;;  %v3337_v4 = vand.u32 2147483648, %v3325_v26  ;;  %v3351_v8 = vmul.f32 %v3350_v9, %v7029_v62 }
 0xa55   :  { %v3327_v54 = vmul.f32 %v4572_v59, %v3325_v26  ;;  %v3402_v0 = vmul.f32 %v3401_v31, %v7044_v18  ;;  %vm3332_vm3 = vweird.f32 %v4572_v59  ;;  %v3390_v33 = vadd.f32 0.05243302, %v3389_v63 }
 0xa56   :  { %4573 = vrcp.f32 %v3365_v22  ;;  %v2833_v42 = vmul.f32 %v7027_v3, %v7488_v21  ;;  %vm3331_vm4 = vweird.f32 %v3325_v26  ;;  %v4085_v58 = vclamps-f32 %v3300_v39, 1.0 }
 0xa57   :  { %v3328_v35 = vsub.f32 1.0, %v3327_v54  ;;  %v3403_v15 = vadd.f32 0.4994258, %v3402_v0  ;;  %v3315_v43 = vmul.f32 %v3314_v28, %v6945_v2  ;;  %vm3333_vm5 = vmor %vm3331_vm4, %vm3332_vm3  ;;  %v3338_v38 = vor.u32 1.1754944e-38, %v3337_v4 }
 0xa58   :  { %v3352_v27 = vadd.f32 0.18741608, %v3351_v8  ;;  %vm3336_vm6 = vcmp.eq.f32.partialorder %v3335_v29, 8.507059e+37  ;;  %v3391_v48 = vmul.f32 %v3390_v33, %v7044_v18  ;;  %v7089_v32 = vadd.f32 1e-05, %v2833_v42 }
 0xa59   :  { %v3329_v23 = vmul.f32 %v4572_v59, %v3328_v35  ;;  %v3404_v13 = vmul.f32 %v3403_v15, %v7044_v18  ;;  %v3825_v26 = vadd.f32 1.0, %v4085_v58  ;;  %v3153_v54 = vmul.f32 0.5, %v6882_v6 }
 0xa5a   :  { %v3353_v9 = vmul.f32 %v3352_v27, %v7029_v62  ;;  %v3392_v1 = vadd.f32 0.18741608, %v3391_v48  ;;  %v3377_v63 = vand.u32 2147483648, %v3365_v22  ;;  %v3375_v28 = vand.u32 2147483647, %v3365_v22 }
 0xa5b   :  { %v3330_v52 = vadd.f32 %v4572_v59, %v3329_v23  ;;  %v3405_v55 = vadd.f32 1.0, %v3404_v13  ;;  %v3841_v35 = vmul.f32 %v3825_v26, %v3153_v54  ;;  %vm3371_vm8 = vweird.f32 %v3365_v22 }
 0xa5c   :  { %v4574_v16 = vpop.eup %4573  ;;  %v3354_v29 = vadd.f32 1.1283791, %v3353_v9  ;;  %v3393_v62 = vmul.f32 %v3392_v1, %v7044_v18  ;;  %v3378_v23 = vor.u32 1.1754944e-38, %v3377_v63  ;;  %vm3376_vm10 = vcmp.eq.f32.partialorder %v3375_v28, 8.507059e+37 }
 0xa5d   :  { %v3334_v5 = vsel %vm3333_vm5, %v4572_v59, %v3330_v52  ;;  %v3367_v12 = vmul.f32 %v4574_v16, %v3365_v22  ;;  %4575 = vrcp.f32 %v3405_v55  ;;  %v3154_v59 = vmul.f32 0.5, %v6936_v49 }
 0xa5e   :  { %v3339_v57 = vsel %vm3336_vm6, %v3338_v38, %v3334_v5  ;;  %4577 = vrsqrt.f32 %v7089_v32  ;;  %vm3372_vm7 = vweird.f32 %v4574_v16  ;;  %v3355_v42 = vmul.f32 %v3354_v29, %v6991_v56 }
 0xa5f   :  { %v3340_v3 = vmul.f32 %v3339_v57, %v3315_v43  ;;  %v3368_v2 = vsub.f32 1.0, %v3367_v12  ;;  %vm3373_vm9 = vmor %vm3371_vm8, %vm3372_vm7  ;;  %v3394_v58 = vadd.f32 1.1283791, %v3393_v62  ;;  %v3417_v43 = vand.u32 2147483648, %v3405_v55 }
 0xa60   :  { %v3415_v22 = vand.u32 2147483647, %v3405_v55  ;;  %vm3411_vm12 = vweird.f32 %v3405_v55  ;;  %v3155_v63 = vmul.f32 0.5, %v6981_v37  ;;  %vm2997_vm1 = vweird.f32 %v7089_v32 }
 0xa61   :  { %v4086_v31 = vclamps-f32 %v3340_v3, 1.0  ;;  %v3369_v0 = vmul.f32 %v4574_v16, %v3368_v2  ;;  %v3418_v48 = vor.u32 1.1754944e-38, %v3417_v43  ;;  %v3395_v57 = vmul.f32 %v3394_v58, %v7032_v36 }
 0xa62   :  { %vm3416_vm14 = vcmp.eq.f32.partialorder %v3415_v22, 8.507059e+37 }
 0xa63   :  { %v3826_v14 = vadd.f32 1.0, %v4086_v31  ;;  %v4576_v39 = vpop.eup %4575  ;;  %v3370_v8 = vadd.f32 %v4574_v16, %v3369_v0 }
 0xa64   :  { %v3407_v6 = vmul.f32 %v4576_v39, %v3405_v55  ;;  %v4578_v49 = vpop.eup %4577  ;;  %vm3412_vm11 = vweird.f32 %v4576_v39  ;;  %v3156_v55 = vmul.f32 0.5, %v7005_v46 }
 0xa65   :  { %v3842_v4 = vmul.f32 %v3826_v14, %v3154_v59  ;;  %v3374_v15 = vsel %vm3373_vm9, %v4574_v16, %v3370_v8  ;;  %v2992_v18 = vmul.f32 %v4578_v49, %v7089_v32  ;;  %vm3413_vm13 = vmor %vm3411_vm12, %vm3412_vm11  ;;  %vm2998_vm15 = vweird.f32 %v4578_v49 }
 0xa66   :  { %v3379_v52 = vsel %vm3376_vm10, %v3378_v23, %v3374_v15  ;;  %v3408_v13 = vsub.f32 1.0, %v3407_v6  ;;  %vm2999_vm2 = vmor %vm2997_vm1, %vm2998_vm15 }
 0xa67   :  { %v3856_v33 = vpack.c.bf16 %v3842_v4, %v3841_v35  ;;  %v3380_v38 = vmul.f32 %v3379_v52, %v3355_v42  ;;  %v2993_v12 = vmul.f32 %v4578_v49, %v2992_v18 }
 0xa68   :  { %v3409_v27 = vmul.f32 %v4576_v39, %v3408_v13 }
 0xa69   :  { %4100 = vmatmul.msk.bf16.gmra.mxu0 %vm37_vm0, %v3856_v33  ;;  %v4087_v16 = vclamps-f32 %v3380_v38, 1.0  ;;  %v2994_v59 = vmul.f32 0.5, %v2993_v12 }
 0xa6a   :  { %v3410_v5 = vadd.f32 %v4576_v39, %v3409_v27 }
 0xa6b   :  { %v3827_v2 = vadd.f32 1.0, %v4087_v16  ;;  %v2995_v28 = vsub.f32 1.5, %v2994_v59 }
 0xa6c   :  { %v3414_v56 = vsel %vm3413_vm13, %v4576_v39, %v3410_v5 }
 0xa6d   :  { %v3419_v3 = vsel %vm3416_vm14, %v3418_v48, %v3414_v56  ;;  %v3843_v0 = vmul.f32 %v3827_v2, %v3155_v63  ;;  %v2996_v39 = vmul.f32 %v4578_v49, %v2995_v28 }
 0xa6e   :  { %v3420_v26 = vmul.f32 %v3419_v3, %v3395_v57 }
 0xa6f   :  { %v3000_v8 = vsel %vm2999_vm2, %v4578_v49, %v2996_v39 }
 0xa70   :  { %v4088_v1 = vclamps-f32 %v3420_v26, 1.0  ;;  %v3025_v46 = vmul.f32 %v3000_v8, %v6791_v45 }
 0xa72   :  { %v3828_v14 = vadd.f32 1.0, %v4088_v1  ;;  %v3042_v42 = vmul.f32 %v6719_v25, %v3025_v46 }
 0xa74   :  { %v2818_v9 = vpop.xlane.xlu1 %2817  ;;  %v3844_v36 = vmul.f32 %v3828_v14, %v3156_v55  ;;  %v3059_v13 = vadd.f32 %v6734_v10, %v3042_v42 }
 0xa75   :  { %v2834_v31 = vmul.f32 %v2818_v9, %v7488_v21 }
 0xa76   :  { %v3857_v35 = vpack.c.bf16 %v3844_v36, %v3843_v0 }
 0xa77   :  { %v2850_v54 = vadd.f32 1e-05, %v2834_v31 }
 0xa79   :  { %4579 = vrsqrt.f32 %v2850_v54  ;;  %4101 = vmatmul.msk.bf16.gmra.mxu0 %vm37_vm0, %v3857_v35  ;;  %vm3007_vm4 = vweird.f32 %v2850_v54 }
 0xa7f   :  { %v4580_v29 = vpop.eup %4579 }
 0xa80   :  { %v3002_v21 = vmul.f32 %v4580_v29, %v2850_v54  ;;  %vm3008_vm3 = vweird.f32 %v4580_v29 }
 0xa81   :  { %vm3009_vm5 = vmor %vm3007_vm4, %vm3008_vm3 }
 0xa82   :  { %v3003_v4 = vmul.f32 %v4580_v29, %v3002_v21 }
 0xa84   :  { %v3004_v37 = vmul.f32 0.5, %v3003_v4 }
 0xa86   :  { %v3005_v62 = vsub.f32 1.5, %v3004_v37 }
 0xa88   :  { %v3006_v23 = vmul.f32 %v4580_v29, %v3005_v62 }
 0xa8a   :  { %v3010_v6 = vsel %vm3009_vm5, %v4580_v29, %v3006_v23 }
 0xa8b   :  { %v3026_v33 = vmul.f32 %v3010_v6, %v6808_v24  ;;  %v3126_v15 = vpop.f32.mrf.mxu3 }
 0xa8c   :  { %v7109_v52 = vadd.f32 %v3126_v15, %v6830_v40 }
 0xa8d   :  { %v3043_v32 = vmul.f32 %v6719_v25, %v3026_v33 }
 0xa8e   :  { %v7113_v49 = vmul.f32 0.70710677, %v7109_v52 }
 0xa8f   :  { %v3060_v45 = vadd.f32 %v6734_v10, %v3043_v32 }
 0xa90   :  { %v3423_v58 = vmul.f32 %v7113_v49, %v7113_v49 }
 0xa91   :  { %v3068_v43 = vpack.c.bf16 %v3060_v45, %v3059_v13 }
 0xa92   :  { %v3424_v24 = vmin.f32 %v3423_v58, 16.0 }
 0xa93   :  { %v3128_v38 = vpop.f32.mrf.mxu3  ;;  %4082 = vmatmul.msk.bf16.gmra.mxu3 %vm37_vm0, %v3068_v43 }
 0xa94   :  { %v3425_v27 = vmul.f32 2.1237322e-06, %v3424_v24  ;;  %v3436_v22 = vmul.f32 3.8918573e-05, %v3424_v24  ;;  %v7121_v18 = vadd.f32 %v3128_v38, %v6830_v40 }
 0xa96   :  { %v3426_v25 = vadd.f32 0.00028619796, %v3425_v27  ;;  %v3437_v5 = vadd.f32 0.001143296, %v3436_v22  ;;  %v7124_v48 = vmul.f32 0.70710677, %v7121_v18 }
 0xa98   :  { %v3427_v16 = vmul.f32 %v3426_v25, %v3424_v24  ;;  %v3438_v10 = vmul.f32 %v3437_v5, %v3424_v24  ;;  %v3463_v57 = vmul.f32 %v7124_v48, %v7124_v48 }
 0xa9a   :  { %v3439_v56 = vadd.f32 0.014752088, %v3438_v10  ;;  %v3428_v3 = vadd.f32 0.0036580483, %v3427_v16  ;;  %v7128_v12 = vmin.f32 %v3463_v57, 16.0 }
 0xa9b   :  { %v3131_v26 = vpop.f32.mrf.mxu3 }
 0xa9c   :  { %v3440_v9 = vmul.f32 %v3439_v56, %v3424_v24  ;;  %v7131_v31 = vadd.f32 %v3131_v26, %v6830_v40  ;;  %v3465_v2 = vmul.f32 2.1237322e-06, %v7128_v12  ;;  %v3476_v1 = vmul.f32 3.8918573e-05, %v7128_v12 }
 0xa9d   :  { %v3429_v59 = vmul.f32 %v3428_v3, %v3424_v24 }
 0xa9e   :  { %v3441_v54 = vadd.f32 0.112945676, %v3440_v9  ;;  %v3466_v63 = vadd.f32 0.00028619796, %v3465_v2  ;;  %v3477_v55 = vadd.f32 0.001143296, %v3476_v1 }
 0xa9f   :  { %v7136_v14 = vmul.f32 0.70710677, %v7131_v31  ;;  %v3430_v39 = vadd.f32 0.05243302, %v3429_v59 }
 0xaa0   :  { %v3442_v0 = vmul.f32 %v3441_v54, %v3424_v24  ;;  %v3467_v36 = vmul.f32 %v3466_v63, %v7128_v12  ;;  %v3478_v28 = vmul.f32 %v3477_v55, %v7128_v12 }
 0xaa1   :  { %v3503_v35 = vmul.f32 %v7136_v14, %v7136_v14  ;;  %v3431_v32 = vmul.f32 %v3430_v39, %v3424_v24 }
 0xaa2   :  { %v3443_v29 = vadd.f32 0.4994258, %v3442_v0  ;;  %v3479_v21 = vadd.f32 0.014752088, %v3478_v28  ;;  %v3468_v62 = vadd.f32 0.0036580483, %v3467_v36 }
 0xaa3   :  { %v7142_v4 = vmin.f32 %v3503_v35, 16.0  ;;  %v3133_v8 = vpop.f32.mrf.mxu3  ;;  %v3432_v25 = vadd.f32 0.18741608, %v3431_v32 }
 0xaa4   :  { %v3444_v37 = vmul.f32 %v3443_v29, %v3424_v24  ;;  %v7145_v46 = vadd.f32 %v3133_v8, %v6830_v40  ;;  %v3480_v23 = vmul.f32 %v3479_v21, %v7128_v12  ;;  %v3469_v58 = vmul.f32 %v3468_v62, %v7128_v12 }
 0xaa5   :  { %v3505_v6 = vmul.f32 2.1237322e-06, %v7142_v4  ;;  %v3516_v15 = vmul.f32 3.8918573e-05, %v7142_v4  ;;  %v3433_v54 = vmul.f32 %v3432_v25, %v3424_v24 }
 0xaa6   :  { %v3445_v33 = vadd.f32 1.0, %v3444_v37  ;;  %v7151_v42 = vmul.f32 0.70710677, %v7145_v46  ;;  %v3481_v13 = vadd.f32 0.112945676, %v3480_v23 }
 0xaa7   :  { %v3506_v45 = vadd.f32 0.00028619796, %v3505_v6  ;;  %v3517_v27 = vadd.f32 0.001143296, %v3516_v15  ;;  %v3470_v16 = vadd.f32 0.05243302, %v3469_v58 }
 0xaa8   :  { %4581 = vrcp.f32 %v3445_v33  ;;  %v3482_v43 = vmul.f32 %v3481_v13, %v7128_v12  ;;  %v3543_v22 = vmul.f32 %v7151_v42, %v7151_v42  ;;  %v3455_v39 = vand.u32 2147483647, %v3445_v33 }
 0xaa9   :  { %v3507_v38 = vmul.f32 %v3506_v45, %v7142_v4  ;;  %v3518_v10 = vmul.f32 %v3517_v27, %v7142_v4  ;;  %v3471_v55 = vmul.f32 %v3470_v16, %v7128_v12  ;;  %v3457_v21 = vand.u32 2147483648, %v3445_v33 }
 0xaaa   :  { %v3483_v5 = vadd.f32 0.4994258, %v3482_v43  ;;  %v7159_v57 = vmin.f32 %v3543_v22, 16.0  ;;  %v3434_v23 = vadd.f32 1.1283791, %v3433_v54  ;;  %vm3451_vm7 = vweird.f32 %v3445_v33 }
 0xaab   :  { %v3508_v3 = vadd.f32 0.0036580483, %v3507_v38  ;;  %v3519_v9 = vadd.f32 0.014752088, %v3518_v10  ;;  %v3472_v6 = vadd.f32 0.18741608, %v3471_v55 }
 0xaac   :  { %v3484_v56 = vmul.f32 %v3483_v5, %v7128_v12  ;;  %v3545_v2 = vmul.f32 2.1237322e-06, %v7159_v57  ;;  %v3556_v1 = vmul.f32 3.8918573e-05, %v7159_v57  ;;  %v3458_v43 = vor.u32 1.1754944e-38, %v3457_v21 }
 0xaad   :  { %v3520_v0 = vmul.f32 %v3519_v9, %v7142_v4  ;;  %v3509_v29 = vmul.f32 %v3508_v3, %v7142_v4  ;;  %vm3456_vm9 = vcmp.eq.f32.partialorder %v3455_v39, 8.507059e+37  ;;  %v3435_v5 = vmul.f32 %v3434_v23, %v7113_v49 }
 0xaae   :  { %v4582_v26 = vpop.eup %4581  ;;  %v3485_v63 = vadd.f32 1.0, %v3484_v56  ;;  %v3546_v36 = vadd.f32 0.00028619796, %v3545_v2  ;;  %v3557_v28 = vadd.f32 0.001143296, %v3556_v1 }
 0xaaf   :  { %v3447_v59 = vmul.f32 %v4582_v26, %v3445_v33  ;;  %v3521_v8 = vadd.f32 0.112945676, %v3520_v0  ;;  %vm3452_vm6 = vweird.f32 %v4582_v26  ;;  %v3510_v13 = vadd.f32 0.05243302, %v3509_v29 }
 0xab0   :  { %4583 = vrcp.f32 %v3485_v63  ;;  %v3547_v62 = vmul.f32 %v3546_v36, %v7159_v57  ;;  %v3558_v24 = vmul.f32 %v3557_v28, %v7159_v57  ;;  %vm3453_vm8 = vmor %vm3451_vm7, %vm3452_vm6  ;;  %v3473_v33 = vmul.f32 %v3472_v6, %v7128_v12 }
 0xab1   :  { %v3448_v35 = vsub.f32 1.0, %v3447_v59  ;;  %v3522_v15 = vmul.f32 %v3521_v8, %v7142_v4  ;;  %v3511_v56 = vmul.f32 %v3510_v13, %v7142_v4  ;;  %v3497_v59 = vand.u32 2147483648, %v3485_v63 }
 0xab2   :  { %v3548_v45 = vadd.f32 0.0036580483, %v3547_v62  ;;  %v3559_v58 = vadd.f32 0.014752088, %v3558_v24  ;;  %v3474_v0 = vadd.f32 1.1283791, %v3473_v33  ;;  %vm3491_vm11 = vweird.f32 %v3485_v63 }
 0xab3   :  { %v3449_v37 = vmul.f32 %v4582_v26, %v3448_v35  ;;  %v3523_v38 = vadd.f32 0.4994258, %v3522_v15  ;;  %v3495_v36 = vand.u32 2147483647, %v3485_v63  ;;  %v3512_v12 = vadd.f32 0.18741608, %v3511_v56 }
 0xab4   :  { %v3560_v25 = vmul.f32 %v3559_v58, %v7159_v57  ;;  %v3549_v9 = vmul.f32 %v3548_v45, %v7159_v57  ;;  %v3498_v8 = vor.u32 1.1754944e-38, %v3497_v59  ;;  %v3475_v62 = vmul.f32 %v3474_v0, %v7124_v48 }
 0xab5   :  { %v3450_v32 = vadd.f32 %v4582_v26, %v3449_v37  ;;  %v3524_v3 = vmul.f32 %v3523_v38, %v7142_v4  ;;  %v3136_v35 = vpop.f32.mrf.mxu3  ;;  %vm3496_vm13 = vcmp.eq.f32.partialorder %v3495_v36, 8.507059e+37  ;;  %v3513_v15 = vmul.f32 %v3512_v12, %v7142_v4 }
 0xab6   :  { %v4584_v27 = vpop.eup %4583  ;;  %v3561_v2 = vadd.f32 0.112945676, %v3560_v25  ;;  %v3550_v28 = vadd.f32 0.05243302, %v3549_v9  ;;  %v7181_v37 = vadd.f32 %v3136_v35, %v6830_v40  ;;  %v3157_v38 = vmul.f32 0.5, %v7109_v52 }
 0xab7   :  { %v3454_v22 = vsel %vm3453_vm8, %v4582_v26, %v3450_v32  ;;  %v3487_v10 = vmul.f32 %v4584_v27, %v3485_v63  ;;  %v7176_v26 = vadd.f32 1.0, %v3524_v3  ;;  %vm3492_vm10 = vweird.f32 %v4584_v27 }
 0xab8   :  { %v3459_v16 = vsel %vm3456_vm9, %v3458_v43, %v3454_v22  ;;  %v3562_v55 = vmul.f32 %v3561_v2, %v7159_v57  ;;  %vm3493_vm12 = vmor %vm3491_vm11, %vm3492_vm10  ;;  %v3551_v32 = vmul.f32 %v3550_v28, %v7159_v57  ;;  %v7188_v63 = vmul.f32 0.70710677, %v7181_v37 }
 0xab9   :  { %v3488_v1 = vsub.f32 1.0, %v3487_v10  ;;  %v3460_v54 = vmul.f32 %v3459_v16, %v3435_v5  ;;  %4585 = vrcp.f32 %v7176_v26  ;;  %v3158_v4 = vmul.f32 0.5, %v7121_v18 }
 0xaba   :  { %v3563_v39 = vadd.f32 0.4994258, %v3562_v55  ;;  %v3583_v48 = vmul.f32 %v7188_v63, %v7188_v63  ;;  %v3514_v25 = vadd.f32 1.1283791, %v3513_v15  ;;  %v3552_v5 = vadd.f32 0.18741608, %v3551_v32 }
 0xabb   :  { %v3489_v49 = vmul.f32 %v4584_v27, %v3488_v1  ;;  %v4089_v21 = vclamps-f32 %v3460_v54, 1.0  ;;  %v3535_v52 = vand.u32 2147483647, %v7176_v26  ;;  %v3537_v2 = vand.u32 2147483648, %v7176_v26 }
 0xabc   :  { %v3564_v23 = vmul.f32 %v3563_v39, %v7159_v57  ;;  %v7198_v56 = vmin.f32 %v3583_v48, 16.0  ;;  %vm3531_vm15 = vweird.f32 %v7176_v26  ;;  %v3553_v55 = vmul.f32 %v3552_v5, %v7159_v57 }
 0xabd   :  { %v3490_v29 = vadd.f32 %v4584_v27, %v3489_v49  ;;  %v3829_v43 = vadd.f32 1.0, %v4089_v21  ;;  %v3138_v16 = vpop.f32.mrf.mxu3  ;;  %v3515_v21 = vmul.f32 %v3514_v25, %v7136_v14  ;;  %vm3536_vm2 = vcmp.eq.f32.partialorder %v3535_v52, 8.507059e+37 }
 0xabe   :  { %v7190_v45 = vadd.f32 1.0, %v3564_v23  ;;  %v7201_v3 = vadd.f32 %v3138_v16, %v6830_v40  ;;  %v3585_v54 = vmul.f32 2.1237322e-06, %v7198_v56  ;;  %v3596_v59 = vmul.f32 3.8918573e-05, %v7198_v56 }
 0xabf   :  { %v3494_v24 = vsel %vm3493_vm12, %v4584_v27, %v3490_v29  ;;  %v4586_v58 = vpop.eup %4585  ;;  %v3845_v9 = vmul.f32 %v3829_v43, %v3157_v38  ;;  %v4618_v29 = vld [vmem:[%s7424_s2 + $0x8] sm:$0x3] }
 0xac0   :  { %v3499_v6 = vsel %vm3496_vm13, %v3498_v8, %v3494_v24  ;;  %v3527_v22 = vmul.f32 %v4586_v58, %v7176_v26  ;;  %4587 = vrcp.f32 %v7190_v45  ;;  %vm3532_vm14 = vweird.f32 %v4586_v58 }
 0xac1   :  { %v3500_v13 = vmul.f32 %v3499_v6, %v3475_v62  ;;  %v7210_v0 = vmul.f32 0.70710677, %v7201_v3  ;;  %v3586_v12 = vadd.f32 0.00028619796, %v3585_v54  ;;  %v3597_v28 = vadd.f32 0.001143296, %v3596_v59  ;;  %vm3533_vm1 = vmor %vm3531_vm15, %vm3532_vm14 }
 0xac2   :  { %v3528_v10 = vsub.f32 1.0, %v3527_v22  ;;  %v7215_v39 = vperm.slane %v4618_v29, 1  ;;  %v3538_v26 = vor.u32 1.1754944e-38, %v3537_v2  ;;  %v3554_v6 = vadd.f32 1.1283791, %v3553_v55 }
 0xac3   :  { %v4090_v27 = vclamps-f32 %v3500_v13, 1.0  ;;  %v3623_v57 = vmul.f32 %v7210_v0, %v7210_v0  ;;  %v3587_v24 = vmul.f32 %v3586_v12, %v7198_v56  ;;  %v3598_v15 = vmul.f32 %v3597_v28, %v7198_v56 }
 0xac4   :  { %v3529_v18 = vmul.f32 %v4586_v58, %v3528_v10  ;;  %v3575_v13 = vand.u32 2147483647, %v7190_v45  ;;  %v3577_v43 = vand.u32 2147483648, %v7190_v45  ;;  %vm3571_vm4 = vweird.f32 %v7190_v45 }
 0xac5   :  { %v3830_v33 = vadd.f32 1.0, %v4090_v27  ;;  %v7225_v32 = vmin.f32 %v3623_v57, 16.0  ;;  %v3588_v48 = vadd.f32 0.0036580483, %v3587_v24  ;;  %v3599_v38 = vadd.f32 0.014752088, %v3598_v15 }
 0xac6   :  { %v3530_v36 = vadd.f32 %v4586_v58, %v3529_v18  ;;  %v4588_v35 = vpop.eup %4587  ;;  %v3578_v18 = vor.u32 1.1754944e-38, %v3577_v43  ;;  %vm3576_vm6 = vcmp.eq.f32.partialorder %v3575_v13, 8.507059e+37 }
 0xac7   :  { %v3846_v1 = vmul.f32 %v3830_v33, %v3158_v4  ;;  %v3567_v62 = vmul.f32 %v4588_v35, %v7190_v45  ;;  %v3625_v27 = vmul.f32 2.1237322e-06, %v7225_v32  ;;  %v3636_v22 = vmul.f32 3.8918573e-05, %v7225_v32 }
 0xac8   :  { %v3534_v8 = vsel %vm3533_vm1, %v4586_v58, %v3530_v36  ;;  %vm3572_vm3 = vweird.f32 %v4588_v35  ;;  %v3589_v16 = vmul.f32 %v3588_v48, %v7198_v56  ;;  %v3600_v33 = vmul.f32 %v3599_v38, %v7198_v56 }
 0xac9   :  { %v3858_v49 = vpack.c.bf16 %v3846_v1, %v3845_v9  ;;  %v3539_v23 = vsel %vm3536_vm2, %v3538_v26, %v3534_v8  ;;  %v3568_v14 = vsub.f32 1.0, %v3567_v62  ;;  %v3626_v10 = vadd.f32 0.00028619796, %v3625_v27  ;;  %vm3573_vm5 = vmor %vm3571_vm4, %vm3572_vm3 }
 0xaca   :  { %v3540_v25 = vmul.f32 %v3539_v23, %v3515_v21  ;;  %v3637_v9 = vadd.f32 0.001143296, %v3636_v22  ;;  %v3590_v1 = vadd.f32 0.05243302, %v3589_v16  ;;  %v3601_v54 = vadd.f32 0.112945676, %v3600_v33 }
 0xacb   :  { %4102 = vmatmul.msk.bf16.gmra.mxu0 %vm37_vm0, %v3858_v49  ;;  %v3569_v5 = vmul.f32 %v4588_v35, %v3568_v14  ;;  %v3627_v59 = vmul.f32 %v3626_v10, %v7225_v32  ;;  %v3555_v36 = vmul.f32 %v3554_v6, %v7151_v42  ;;  %v3160_v48 = vmul.f32 0.5, %v7145_v46 }
 0xacc   :  { %v3638_v55 = vmul.f32 %v3637_v9, %v7225_v32  ;;  %v4091_v49 = vclamps-f32 %v3540_v25, 1.0  ;;  %v3602_v45 = vmul.f32 %v3601_v54, %v7198_v56  ;;  %v3591_v26 = vmul.f32 %v3590_v1, %v7198_v56 }
 0xacd   :  { %v3903_v58 = vpop.f32.mrf.mxu0  ;;  %v3570_v2 = vadd.f32 %v4588_v35, %v3569_v5  ;;  %v3628_v28 = vadd.f32 0.0036580483, %v3627_v59 }
 0xace   :  { %v3904_v4 = vadd.f32 %v3903_v58, %v7215_v39  ;;  %v3639_v29 = vadd.f32 0.014752088, %v3638_v55  ;;  %v3603_v8 = vadd.f32 0.4994258, %v3602_v45  ;;  %v3831_v15 = vadd.f32 1.0, %v4091_v49 }
 0xacf   :  { %v3629_v62 = vmul.f32 %v3628_v28, %v7225_v32  ;;  %v3592_v22 = vadd.f32 0.18741608, %v3591_v26 }
 0xad0   :  { %v3943_v52 = vadd.f32 %v3904_v4, %v6484_v53  ;;  %v3574_v53 = vsel %vm3573_vm5, %v4588_v35, %v3570_v2  ;;  %v3640_v24 = vmul.f32 %v3639_v29, %v7225_v32  ;;  %v3159_v35 = vmul.f32 0.5, %v7131_v31 }
 0xad1   :  { %v3579_v12 = vsel %vm3576_vm6, %v3578_v18, %v3574_v53  ;;  %v3604_v6 = vmul.f32 %v3603_v8, %v7198_v56  ;;  %v3630_v38 = vadd.f32 0.05243302, %v3629_v62  ;;  %v3593_v9 = vmul.f32 %v3592_v22, %v7198_v56 }
 0xad2   :  { %3959 = vst.msk [vmem:[%s7426_s3] sm:$0xff] %vm37_vm0, %v3943_v52  ;;  %v3580_v21 = vmul.f32 %v3579_v12, %v3555_v36  ;;  %v3641_v14 = vadd.f32 0.112945676, %v3640_v24  ;;  %v3847_v31 = vmul.f32 %v3831_v15, %v3159_v35 }
 0xad3   :  { %v3605_v4 = vadd.f32 1.0, %v3604_v6  ;;  %v3631_v16 = vmul.f32 %v3630_v38, %v7225_v32  ;;  %v3594_v36 = vadd.f32 1.1283791, %v3593_v9 }
 0xad4   :  { %v4092_v42 = vclamps-f32 %v3580_v21, 1.0  ;;  %v3141_v13 = vpop.f32.mrf.mxu3  ;;  %v3642_v25 = vmul.f32 %v3641_v14, %v7225_v32 }
 0xad5   :  { %v3905_v57 = vpop.f32.mrf.mxu0  ;;  %v7253_v27 = vadd.f32 %v3141_v13, %v6830_v40  ;;  %4589 = vrcp.f32 %v3605_v4  ;;  %v3632_v18 = vadd.f32 0.18741608, %v3631_v16  ;;  %v3615_v56 = vand.u32 2147483647, %v3605_v4 }
 0xad6   :  { %v3906_v23 = vadd.f32 %v3905_v57, %v7215_v39  ;;  %v3832_v58 = vadd.f32 1.0, %v4092_v42  ;;  %v3643_v33 = vadd.f32 0.4994258, %v3642_v25  ;;  %v3617_v45 = vand.u32 2147483648, %v3605_v4 }
 0xad7   :  { %v3633_v21 = vmul.f32 %v3632_v18, %v7225_v32  ;;  %v3595_v8 = vmul.f32 %v3594_v36, %v7188_v63  ;;  %vm3611_vm8 = vweird.f32 %v3605_v4  ;;  %vm7284_vm9 = vcmp.eq.f32.partialorder %v3615_v56, 8.507059e+37 }
 0xad8   :  { %v3944_v43 = vadd.f32 %v3906_v23, %v6493_v20  ;;  %v3848_v5 = vmul.f32 %v3832_v58, %v3160_v48  ;;  %v7261_v20 = vmul.f32 0.70710677, %v7253_v27  ;;  %v3644_v52 = vmul.f32 %v3643_v33, %v7225_v32 }
 0xad9   :  { %v3618_v42 = vor.u32 1.1754944e-38, %v3617_v45  ;;  %v3634_v14 = vadd.f32 1.1283791, %v3633_v21 }
 0xada   :  { %3960 = vst.msk [vmem:[%s7426_s3 + $0x8] sm:$0xff] %vm37_vm0, %v3944_v43  ;;  %v3859_v46 = vpack.c.bf16 %v3848_v5, %v3847_v31  ;;  %v3663_v10 = vmul.f32 %v7261_v20, %v7261_v20  ;;  %v3645_v54 = vadd.f32 1.0, %v3644_v52 }
 0xadb   :  { %v4590_v49 = vpop.eup %4589 }
 0xadc   :  { %v7268_v2 = vmin.f32 %v3663_v10, 16.0  ;;  %4103 = vmatmul.msk.bf16.gmra.mxu0 %vm37_vm0, %v3859_v46  ;;  %v3143_v1 = vpop.f32.mrf.mxu3  ;;  %v3607_v12 = vmul.f32 %v4590_v49, %v3605_v4  ;;  %4591 = vrcp.f32 %v3645_v54  ;;  %vm3612_vm7 = vweird.f32 %v4590_v49 }
 0xadd   :  { %v7273_v55 = vadd.f32 %v3143_v1, %v6830_v40  ;;  %vm3613_vm10 = vmor %vm3611_vm8, %vm3612_vm7  ;;  %v3655_v58 = vand.u32 2147483647, %v3645_v54  ;;  %v3657_v38 = vand.u32 2147483648, %v3645_v54  ;;  %vm3651_vm12 = vweird.f32 %v3645_v54 }
 0xade   :  { %v3665_v59 = vmul.f32 2.1237322e-06, %v7268_v2  ;;  %v3676_v53 = vmul.f32 3.8918573e-05, %v7268_v2  ;;  %v3608_v29 = vsub.f32 1.0, %v3607_v12  ;;  %v3635_v12 = vmul.f32 %v3634_v14, %v7210_v0 }
 0xadf   :  { %v7278_v57 = vmul.f32 0.70710677, %v7273_v55  ;;  %vm3656_vm13 = vcmp.eq.f32.partialorder %v3655_v58, 8.507059e+37  ;;  %v3658_v45 = vor.u32 1.1754944e-38, %v3657_v38  ;;  %v3162_v58 = vmul.f32 0.5, %v7201_v3 }
 0xae0   :  { %v3666_v28 = vadd.f32 0.00028619796, %v3665_v59  ;;  %v3677_v26 = vadd.f32 0.001143296, %v3676_v53  ;;  %v3609_v62 = vmul.f32 %v4590_v49, %v3608_v29 }
 0xae1   :  { %v3703_v23 = vmul.f32 %v7278_v57, %v7278_v57 }
 0xae2   :  { %v3678_v24 = vmul.f32 %v3677_v26, %v7268_v2  ;;  %v3667_v32 = vmul.f32 %v3666_v28, %v7268_v2  ;;  %v4592_v35 = vpop.eup %4591  ;;  %v3610_v6 = vadd.f32 %v4590_v49, %v3609_v62 }
 0xae3   :  { %v7289_v63 = vmin.f32 %v3703_v23, 16.0  ;;  %v3647_v48 = vmul.f32 %v4592_v35, %v3645_v54  ;;  %vm3652_vm11 = vweird.f32 %v4592_v35 }
 0xae4   :  { %v3679_v13 = vadd.f32 0.014752088, %v3678_v24  ;;  %v3614_v4 = vsel %vm3613_vm10, %v4590_v49, %v3610_v6  ;;  %v3668_v33 = vadd.f32 0.0036580483, %v3667_v32  ;;  %vm3653_vm14 = vmor %vm3651_vm12, %vm3652_vm11 }
 0xae5   :  { %v3705_v31 = vmul.f32 2.1237322e-06, %v7289_v63  ;;  %v3716_v5 = vmul.f32 3.8918573e-05, %v7289_v63  ;;  %v3619_v46 = vsel %vm7284_vm9, %v3618_v42, %v3614_v4  ;;  %v3648_v16 = vsub.f32 1.0, %v3647_v48 }
 0xae6   :  { %v3908_v43 = vpop.f32.mrf.mxu0  ;;  %v3680_v25 = vmul.f32 %v3679_v13, %v7268_v2  ;;  %v3620_v9 = vmul.f32 %v3619_v46, %v3595_v8  ;;  %v3669_v28 = vmul.f32 %v3668_v33, %v7268_v2 }
 0xae7   :  { %v3909_v22 = vadd.f32 %v3908_v43, %v7215_v39  ;;  %v3706_v1 = vadd.f32 0.00028619796, %v3705_v31  ;;  %v3717_v18 = vadd.f32 0.001143296, %v3716_v5  ;;  %v3649_v59 = vmul.f32 %v4592_v35, %v3648_v16 }
 0xae8   :  { %v3681_v52 = vadd.f32 0.112945676, %v3680_v25  ;;  %v4093_v56 = vclamps-f32 %v3620_v9, 1.0  ;;  %v3670_v32 = vadd.f32 0.05243302, %v3669_v28 }
 0xae9   :  { %v3945_v10 = vadd.f32 %v3909_v22, %v6501_v30  ;;  %v3707_v36 = vmul.f32 %v3706_v1, %v7289_v63  ;;  %v3718_v53 = vmul.f32 %v3717_v18, %v7289_v63  ;;  %v3650_v30 = vadd.f32 %v4592_v35, %v3649_v59 }
 0xaea   :  { %v3682_v49 = vmul.f32 %v3681_v52, %v7268_v2  ;;  %v3833_v14 = vadd.f32 1.0, %v4093_v56  ;;  %v3671_v22 = vmul.f32 %v3670_v32, %v7268_v2 }
 0xaeb   :  { %3961 = vst.msk [vmem:[%s7426_s3 + $0x10] sm:$0xff] %vm37_vm0, %v3945_v10  ;;  %v3654_v26 = vsel %vm3653_vm14, %v4592_v35, %v3650_v30  ;;  %v3708_v8 = vadd.f32 0.0036580483, %v3707_v36  ;;  %v3719_v62 = vadd.f32 0.014752088, %v3718_v53  ;;  %v3161_v35 = vmul.f32 0.5, %v7181_v37 }
 0xaec   :  { %v3683_v29 = vadd.f32 0.4994258, %v3682_v49  ;;  %v3659_v23 = vsel %vm3656_vm13, %v3658_v45, %v3654_v26  ;;  %v3672_v52 = vadd.f32 0.18741608, %v3671_v22 }
 0xaed   :  { %v3660_v42 = vmul.f32 %v3659_v23, %v3635_v12  ;;  %v3720_v0 = vmul.f32 %v3719_v62, %v7289_v63  ;;  %v3709_v43 = vmul.f32 %v3708_v8, %v7289_v63  ;;  %v3849_v4 = vmul.f32 %v3833_v14, %v3161_v35 }
 0xaee   :  { %v3910_v21 = vpop.f32.mrf.mxu0  ;;  %v3684_v15 = vmul.f32 %v3683_v29, %v7268_v2  ;;  %v3673_v49 = vmul.f32 %v3672_v52, %v7268_v2 }
 0xaef   :  { %v3911_v24 = vadd.f32 %v3910_v21, %v7215_v39  ;;  %v4094_v13 = vclamps-f32 %v3660_v42, 1.0  ;;  %v3721_v48 = vadd.f32 0.112945676, %v3720_v0  ;;  %v3710_v31 = vadd.f32 0.05243302, %v3709_v43 }
 0xaf0   :  { %v3685_v6 = vadd.f32 1.0, %v3684_v15  ;;  %v3674_v28 = vadd.f32 1.1283791, %v3673_v49 }
 0xaf1   :  { %v3946_v54 = vadd.f32 %v3911_v24, %v6518_v60  ;;  %v3834_v38 = vadd.f32 1.0, %v4094_v13  ;;  %v3722_v60 = vmul.f32 %v3721_v48, %v7289_v63  ;;  %v3711_v1 = vmul.f32 %v3710_v31, %v7289_v63 }
 0xaf2   :  { %4593 = vrcp.f32 %v3685_v6  ;;  %v3697_v53 = vand.u32 2147483648, %v3685_v6  ;;  %v3695_v30 = vand.u32 2147483647, %v3685_v6  ;;  %vm3691_vm1 = vweird.f32 %v3685_v6 }
 0xaf3   :  { %3962 = vst.msk [vmem:[%s7426_s3 + $0x18] sm:$0xff] %vm37_vm0, %v3946_v54  ;;  %v3850_v25 = vmul.f32 %v3834_v38, %v3162_v58  ;;  %v3723_v5 = vadd.f32 0.4994258, %v3722_v60  ;;  %v3712_v12 = vadd.f32 0.18741608, %v3711_v1  ;;  %v3675_v23 = vmul.f32 %v3674_v28, %v7261_v20 }
 0xaf4   :  { %v3698_v8 = vor.u32 1.1754944e-38, %v3697_v53  ;;  %vm3696_vm3 = vcmp.eq.f32.partialorder %v3695_v30, 8.507059e+37  ;;  %v3163_v38 = vmul.f32 0.5, %v7253_v27  ;;  %v3164_v60 = vmul.f32 0.5, %v7273_v55 }
 0xaf5   :  { %v3860_v33 = vpack.c.bf16 %v3850_v25, %v3849_v4  ;;  %v3724_v10 = vmul.f32 %v3723_v5, %v7289_v63  ;;  %v3713_v62 = vmul.f32 %v3712_v12, %v7289_v63 }
 0xaf6   :  { %v3913_v46 = vpop.f32.mrf.mxu0 }
 0xaf7   :  { %v3914_v16 = vadd.f32 %v3913_v46, %v7215_v39  ;;  %v3725_v18 = vadd.f32 1.0, %v3724_v10  ;;  %4104 = vmatmul.msk.bf16.gmra.mxu0 %vm37_vm0, %v3860_v33  ;;  %v3714_v42 = vadd.f32 1.1283791, %v3713_v62 }
 0xaf8   :  { %v4594_v9 = vpop.eup %4593 }
 0xaf9   :  { %v3947_v37 = vadd.f32 %v3914_v16, %v6526_v11  ;;  %v3687_v3 = vmul.f32 %v4594_v9, %v3685_v6  ;;  %4595 = vrcp.f32 %v3725_v18  ;;  %vm3692_vm15 = vweird.f32 %v4594_v9 }
 0xafa   :  { %vm3693_vm2 = vmor %vm3691_vm1, %vm3692_vm15  ;;  %v3737_v0 = vand.u32 2147483648, %v3725_v18  ;;  %v3735_v32 = vand.u32 2147483647, %v3725_v18  ;;  %vm3731_vm5 = vweird.f32 %v3725_v18  ;;  %v3715_v13 = vmul.f32 %v3714_v42, %v7278_v57 }
 0xafb   :  { %3963 = vst.msk [vmem:[%s7426_s3 + $0x20] sm:$0xff] %vm37_vm0, %v3947_v37  ;;  %v3688_v59 = vsub.f32 1.0, %v3687_v3 }
 0xafc   :  { %v3738_v63 = vor.u32 1.1754944e-38, %v3737_v0  ;;  %vm3736_vm7 = vcmp.eq.f32.partialorder %v3735_v32, 8.507059e+37 }
 0xafd   :  { %v3689_v36 = vmul.f32 %v4594_v9, %v3688_v59 }
 0xafe   :  { %v3915_v11 = vpop.f32.mrf.mxu0 }
 0xaff   :  { %v3916_v56 = vadd.f32 %v3915_v11, %v7215_v39  ;;  %v3690_v45 = vadd.f32 %v4594_v9, %v3689_v36  ;;  %v4596_v21 = vpop.eup %4595 }
 0xb00   :  { %v3727_v2 = vmul.f32 %v4596_v21, %v3725_v18  ;;  %vm3732_vm4 = vweird.f32 %v4596_v21 }
 0xb01   :  { %v3948_v29 = vadd.f32 %v3916_v56, %v6543_v7  ;;  %v3694_v26 = vsel %vm3693_vm2, %v4594_v9, %v3690_v45  ;;  %vm3733_vm6 = vmor %vm3731_vm5, %vm3732_vm4 }
 0xb02   :  { %v3699_v24 = vsel %vm3696_vm3, %v3698_v8, %v3694_v26  ;;  %v3728_v15 = vsub.f32 1.0, %v3727_v2 }
 0xb03   :  { %3964 = vst.msk [vmem:[%s7426_s3 + $0x28] sm:$0xff] %vm37_vm0, %v3948_v29  ;;  %v3700_v54 = vmul.f32 %v3699_v24, %v3675_v23 }
 0xb04   :  { %v3729_v7 = vmul.f32 %v4596_v21, %v3728_v15 }
 0xb05   :  { %v4095_v14 = vclamps-f32 %v3700_v54, 1.0 }
 0xb06   :  { %v3730_v6 = vadd.f32 %v4596_v21, %v3729_v7 }
 0xb07   :  { %v3835_v58 = vadd.f32 1.0, %v4095_v14 }
 0xb08   :  { %v3734_v43 = vsel %vm3733_vm6, %v4596_v21, %v3730_v6 }
 0xb09   :  { %v3739_v48 = vsel %vm3736_vm7, %v3738_v63, %v3734_v43  ;;  %v3851_v31 = vmul.f32 %v3835_v58, %v3163_v38 }
 0xb0a   :  { %v3740_v35 = vmul.f32 %v3739_v48, %v3715_v13 }
 0xb0c   :  { %v4096_v20 = vclamps-f32 %v3740_v35, 1.0 }
 0xb0e   :  { %v3836_v22 = vadd.f32 1.0, %v4096_v20 }
 0xb10   :  { %v3852_v5 = vmul.f32 %v3836_v22, %v3164_v60 }
 0xb12   :  { %v3861_v57 = vpack.c.bf16 %v3852_v5, %v3851_v31 }
 0xb14   :  { %4105 = vmatmul.msk.bf16.gmra.mxu0 %vm37_vm0, %v3861_v57 }
 0xb16   :  { %v3146_v4 = vpop.f32.mrf.mxu3 }
 0xb17   :  { %v7342_v25 = vadd.f32 %v3146_v4, %v6830_v40 }
 0xb19   :  { %v7345_v46 = vmul.f32 0.70710677, %v7342_v25 }
 0xb1b   :  { %v3743_v16 = vmul.f32 %v7345_v46, %v7345_v46 }
 0xb1d   :  { %v3744_v33 = vmin.f32 %v3743_v16, 16.0 }
 0xb1e   :  { %v3148_v27 = vpop.f32.mrf.mxu3 }
 0xb1f   :  { %v3745_v10 = vmul.f32 2.1237322e-06, %v3744_v33  ;;  %v3756_v55 = vmul.f32 3.8918573e-05, %v3744_v33  ;;  %v7351_v9 = vadd.f32 %v3148_v27, %v6830_v40 }
 0xb21   :  { %v3746_v52 = vadd.f32 0.00028619796, %v3745_v10  ;;  %v3757_v37 = vadd.f32 0.001143296, %v3756_v55  ;;  %v7354_v3 = vmul.f32 0.70710677, %v7351_v9 }
 0xb23   :  { %v3758_v1 = vmul.f32 %v3757_v37, %v3744_v33  ;;  %v3783_v18 = vmul.f32 %v7354_v3, %v7354_v3  ;;  %v3747_v59 = vmul.f32 %v3746_v52, %v3744_v33 }
 0xb25   :  { %v3759_v49 = vadd.f32 0.014752088, %v3758_v1  ;;  %v3784_v36 = vmin.f32 %v3783_v18, 16.0  ;;  %v3748_v30 = vadd.f32 0.0036580483, %v3747_v59 }
 0xb27   :  { %v3760_v53 = vmul.f32 %v3759_v49, %v3744_v33  ;;  %v3785_v12 = vmul.f32 2.1237322e-06, %v3784_v36  ;;  %v3796_v11 = vmul.f32 3.8918573e-05, %v3784_v36  ;;  %v3749_v26 = vmul.f32 %v3748_v30, %v3744_v33 }
 0xb29   :  { %v3761_v56 = vadd.f32 0.112945676, %v3760_v53  ;;  %v3786_v45 = vadd.f32 0.00028619796, %v3785_v12  ;;  %v3797_v40 = vadd.f32 0.001143296, %v3796_v11 }
 0xb2a   :  { %v3750_v15 = vadd.f32 0.05243302, %v3749_v26 }
 0xb2b   :  { %v3762_v28 = vmul.f32 %v3761_v56, %v3744_v33  ;;  %v3787_v29 = vmul.f32 %v3786_v45, %v3784_v36  ;;  %v3798_v21 = vmul.f32 %v3797_v40, %v3784_v36 }
 0xb2c   :  { %v3751_v32 = vmul.f32 %v3750_v15, %v3744_v33 }
 0xb2d   :  { %v3763_v8 = vadd.f32 0.4994258, %v3762_v28  ;;  %v3788_v62 = vadd.f32 0.0036580483, %v3787_v29  ;;  %v3799_v2 = vadd.f32 0.014752088, %v3798_v21 }
 0xb2e   :  { %v3752_v43 = vadd.f32 0.18741608, %v3751_v32 }
 0xb2f   :  { %v3764_v24 = vmul.f32 %v3763_v8, %v3744_v33  ;;  %v3800_v23 = vmul.f32 %v3799_v2, %v3784_v36  ;;  %v3789_v0 = vmul.f32 %v3788_v62, %v3784_v36  ;;  %v3165_v62 = vmul.f32 0.5, %v7342_v25 }
 0xb30   :  { %v3753_v38 = vmul.f32 %v3752_v43, %v3744_v33  ;;  %v3166_v2 = vmul.f32 0.5, %v7351_v9 }
 0xb31   :  { %v3765_v42 = vadd.f32 1.0, %v3764_v24  ;;  %v3801_v54 = vadd.f32 0.112945676, %v3800_v23  ;;  %v3790_v6 = vadd.f32 0.05243302, %v3789_v0 }
 0xb32   :  { %v3754_v57 = vadd.f32 1.1283791, %v3753_v38 }
 0xb33   :  { %4597 = vrcp.f32 %v3765_v42  ;;  %v3802_v7 = vmul.f32 %v3801_v54, %v3784_v36  ;;  %v3791_v35 = vmul.f32 %v3790_v6, %v3784_v36  ;;  %v3777_v22 = vand.u32 2147483648, %v3765_v42 }
 0xb34   :  { %v3775_v31 = vand.u32 2147483647, %v3765_v42  ;;  %vm3771_vm9 = vweird.f32 %v3765_v42  ;;  %v3755_v1 = vmul.f32 %v3754_v57, %v7345_v46 }
 0xb35   :  { %v3803_v63 = vadd.f32 0.4994258, %v3802_v7  ;;  %v3792_v4 = vadd.f32 0.18741608, %v3791_v35  ;;  %v3778_v10 = vor.u32 1.1754944e-38, %v3777_v22 }
 0xb36   :  { %vm3776_vm11 = vcmp.eq.f32.partialorder %v3775_v31, 8.507059e+37 }
 0xb37   :  { %v3804_v14 = vmul.f32 %v3803_v63, %v3784_v36  ;;  %v3793_v55 = vmul.f32 %v3792_v4, %v3784_v36  ;;  %v7498_v4 = vld [vmem:[#allocation6_spill] sm:$0xff] }
 0xb39   :  { %v4598_v13 = vpop.eup %4597  ;;  %v3805_v58 = vadd.f32 1.0, %v3804_v14  ;;  %v3794_v33 = vadd.f32 1.1283791, %v3793_v55 }
 0xb3a   :  { %v3767_v48 = vmul.f32 %v4598_v13, %v3765_v42  ;;  %vm3772_vm8 = vweird.f32 %v4598_v13 }
 0xb3b   :  { %4599 = vrcp.f32 %v3805_v58  ;;  %vm3773_vm10 = vmor %vm3771_vm9, %vm3772_vm8  ;;  %v3817_v59 = vand.u32 2147483648, %v3805_v58  ;;  %v3815_v12 = vand.u32 2147483647, %v3805_v58  ;;  %vm3811_vm13 = vweird.f32 %v3805_v58 }
 0xb3c   :  { %v3768_v20 = vsub.f32 1.0, %v3767_v48  ;;  %v3795_v40 = vmul.f32 %v3794_v33, %v7354_v3 }
 0xb3d   :  { %v3818_v56 = vor.u32 1.1754944e-38, %v3817_v59  ;;  %vm3816_vm15 = vcmp.eq.f32.partialorder %v3815_v12, 8.507059e+37 }
 0xb3e   :  { %v3769_v60 = vmul.f32 %v4598_v13, %v3768_v20 }
 0xb40   :  { %v3770_v5 = vadd.f32 %v4598_v13, %v3769_v60 }
 0xb41   :  { %v4600_v16 = vpop.eup %4599 }
 0xb42   :  { %v3774_v27 = vsel %vm3773_vm10, %v4598_v13, %v3770_v5  ;;  %v3807_v52 = vmul.f32 %v4600_v16, %v3805_v58  ;;  %vm3812_vm12 = vweird.f32 %v4600_v16 }
 0xb43   :  { %v3779_v37 = vsel %vm3776_vm11, %v3778_v10, %v3774_v27  ;;  %vm3813_vm14 = vmor %vm3811_vm13, %vm3812_vm12 }
 0xb44   :  { %v3808_v18 = vsub.f32 1.0, %v3807_v52  ;;  %v3780_v49 = vmul.f32 %v3779_v37, %v3755_v1 }
 0xb46   :  { %v3809_v53 = vmul.f32 %v4600_v16, %v3808_v18  ;;  %v4097_v36 = vclamps-f32 %v3780_v49, 1.0 }
 0xb48   :  { %v3810_v11 = vadd.f32 %v4600_v16, %v3809_v53  ;;  %v3918_v30 = vpop.f32.mrf.mxu0  ;;  %v3837_v26 = vadd.f32 1.0, %v4097_v36 }
 0xb49   :  { %v3919_v45 = vadd.f32 %v3918_v30, %v7215_v39 }
 0xb4a   :  { %v3814_v28 = vsel %vm3813_vm14, %v4600_v16, %v3810_v11  ;;  %v3853_v15 = vmul.f32 %v3837_v26, %v3165_v62 }
 0xb4b   :  { %v3819_v46 = vsel %vm3816_vm15, %v3818_v56, %v3814_v28  ;;  %v3949_v29 = vadd.f32 %v3919_v45, %v6551_v61 }
 0xb4c   :  { %v3820_v21 = vmul.f32 %v3819_v46, %v3795_v40 }
 0xb4d   :  { %3965 = vst.msk [vmem:[%s7426_s3 + $0x30] sm:$0xff] %vm37_vm0, %v3949_v29 }
 0xb4e   :  { %v4098_v8 = vclamps-f32 %v3820_v21, 1.0 }
 0xb50   :  { %v3838_v24 = vadd.f32 1.0, %v4098_v8  ;;  %v3920_v23 = vpop.f32.mrf.mxu0 }
 0xb51   :  { %v3921_v3 = vadd.f32 %v3920_v23, %v7215_v39 }
 0xb52   :  { %v3854_v42 = vmul.f32 %v3838_v24, %v3166_v2 }
 0xb53   :  { %v3950_v61 = vadd.f32 %v3921_v3, %v6576_v34 }
 0xb54   :  { %v3862_v0 = vpack.c.bf16 %v3854_v42, %v3853_v15 }
 0xb55   :  { %3966 = vst.msk [vmem:[%s7426_s3 + $0x38] sm:$0xff] %vm37_vm0, %v3950_v61 }
 0xb56   :  { %4106 = vmatmul.msk.bf16.gmra.mxu0 %vm37_vm0, %v3862_v0 }
 0xb59   :  { %v3923_v54 = vpop.f32.mrf.mxu0 }
 0xb5a   :  { %v3924_v25 = vadd.f32 %v3923_v54, %v7215_v39 }
 0xb5c   :  { %v3951_v9 = vadd.f32 %v3924_v25, %v6591_v44 }
 0xb5e   :  { %3967 = vst.msk [vmem:[%s7426_s3 + $0x40] sm:$0xff] %vm37_vm0, %v3951_v9 }
 0xb61   :  { %v3925_v7 = vpop.f32.mrf.mxu0 }
 0xb62   :  { %v3926_v34 = vadd.f32 %v3925_v7, %v7215_v39 }
 0xb64   :  { %v3952_v32 = vadd.f32 %v3926_v34, %v6606_v19 }
 0xb66   :  { %3968 = vst.msk [vmem:[%s7426_s3 + $0x48] sm:$0xff] %vm37_vm0, %v3952_v32 }
 0xb74   :  { %v3928_v6 = vpop.f32.mrf.mxu0 }
 0xb75   :  { %v3929_v63 = vadd.f32 %v3928_v6, %v7215_v39 }
 0xb77   :  { %v3953_v44 = vadd.f32 %v3929_v63, %v6621_v17 }
 0xb79   :  { %3969 = vst.msk [vmem:[%s7426_s3 + $0x50] sm:$0xff] %vm37_vm0, %v3953_v44 }
 0xb7c   :  { %v3930_v14 = vpop.f32.mrf.mxu0 }
 0xb7d   :  { %v3931_v13 = vadd.f32 %v3930_v14, %v7215_v39 }
 0xb7f   :  { %v3954_v19 = vadd.f32 %v3931_v13, %v6636_v50 }
 0xb81   :  { %3970 = vst.msk [vmem:[%s7426_s3 + $0x58] sm:$0xff] %vm37_vm0, %v3954_v19 }
 0xb91   :  { %v3933_v43 = vpop.f32.mrf.mxu0 }
 0xb92   :  { %v3934_v48 = vadd.f32 %v3933_v43, %v7215_v39 }
 0xb94   :  { %v3955_v17 = vadd.f32 %v3934_v48, %v6650_v51 }
 0xb96   :  { %3971 = vst.msk [vmem:[%s7426_s3 + $0x60] sm:$0xff] %vm37_vm0, %v3955_v17 }
 0xb99   :  { %v3935_v35 = vpop.f32.mrf.mxu0 }
 0xb9a   :  { %v3936_v58 = vadd.f32 %v3935_v35, %v7215_v39 }
 0xb9c   :  { %v3956_v50 = vadd.f32 %v3936_v58, %v6665_v41 }
 0xb9e   :  { %3972 = vst.msk [vmem:[%s7426_s3 + $0x68] sm:$0xff] %vm37_vm0, %v3956_v50 }
 0xbd3   :  { %v3938_v20 = vpop.f32.mrf.mxu0 }
 0xbd4   :  { %v3939_v38 = vadd.f32 %v3938_v20, %v7215_v39 }
 0xbd6   :  { %v3957_v51 = vadd.f32 %v3939_v38, %v6673_v47 }
 0xbd8   :  { %3973 = vst.msk [vmem:[%s7426_s3 + $0x70] sm:$0xff] %vm37_vm0, %v3957_v51 }
 0xbdb   :  { %v3940_v60 = vpop.f32.mrf.mxu0 }
 0xbdc   :  { %v3941_v22 = vadd.f32 %v3940_v60, %v7215_v39 }
 0xbde   :  { %v3958_v41 = vadd.f32 %v3941_v22, %v7498_v4 }
 0xbe0   :  { %3974 = vst.msk [vmem:[%s7426_s3 + $0x78] sm:$0xff] %vm37_vm0, %v3958_v41 }

</bundles_post_ra>
